<compile_context>
chip_gen: v7x
topology: tpu7x:2x2x1
jax: 0.10.0
libtpu: 0.0.40
codegen_flags: <defaults>
</compile_context>

<pallas_src>
import functools

import jax
import jax.numpy as jnp
from jax.experimental import pallas as pl
from jax.experimental.pallas import tpu as pltpu

_TM = 4096                     # pixel-tile (lanes per grid step)
_ACT_DTYPE = jnp.bfloat16      # activation / weight storage dtype


# ----------------------------------------------------------------------------
# Pallas kernels   (slab layout: (channels, pixels) — pixels on lanes)
# ----------------------------------------------------------------------------
def _logsigmoid(y):
    # log(sigmoid(y)) = min(y, 0) - log1p(exp(-|y|))   (numerically stable)
    return jnp.minimum(y, 0.0) - jnp.log1p(jnp.exp(-jnp.abs(y)))


def _matmul_f32(w, x):
    """W(cout,cin) @ X(cin,M) with f32 accumulation; VPU path for cin == 1."""
    if w.shape[1] == 1:
        # (cout,1) * (1,M) broadcast — avoids a K=1 MXU matmul.
        return w.astype(jnp.float32) * x.astype(jnp.float32)
    return jnp.dot(w, x, preferred_element_type=jnp.float32)


def _pw_kernel(x_ref, w_ref, s_ref, o_ref, *, act):
    """Single fused layer: act(W' @ x + shift')."""
    y = _matmul_f32(w_ref[...], x_ref[...]) + s_ref[...]
    if act == "relu":
        y = jnp.maximum(y, 0.0)
    else:  # logsigmoid
        y = _logsigmoid(y)
    o_ref[...] = y.astype(o_ref.dtype)


def _dectrack_kernel(x_ref, w1_ref, s1_ref, w2_ref, s2_ref, w3_ref, s3_ref,
                     o_ref):
    """Fused DecoderTrack: CnvMod -> DecMod -> Map (three chained matmuls)."""
    h = _matmul_f32(w1_ref[...], x_ref[...]) + s1_ref[...]
    h = jnp.maximum(h, 0.0).astype(w2_ref.dtype)     # single cast per stage
    h = _matmul_f32(w2_ref[...], h) + s2_ref[...]
    h = jnp.maximum(h, 0.0).astype(w3_ref.dtype)
    y = _matmul_f32(w3_ref[...], h) + s3_ref[...]
    o_ref[...] = _logsigmoid(y).astype(o_ref.dtype)


# ----------------------------------------------------------------------------
# pallas_call wrappers (flat (C, M) slab, pixel-tiled grid on the lane axis)
# ----------------------------------------------------------------------------
def _tile_and_grid(m):
    if m <= _TM:
        return m, 1                    # whole slab in one step (fits VMEM)
    # >= 2 lane-dense tiles (multiple of 128) so a v7x megacore can shard the
    # "parallel" grid axis across its two TensorCores.
    return _TM, pl.cdiv(m, _TM)


def _pointwise_cm(x2d, w, shift, act):
    cin, m = x2d.shape
    cout = w.shape[0]
    tm, grid = _tile_and_grid(m)
    return pl.pallas_call(
        functools.partial(_pw_kernel, act=act),
        out_shape=jax.ShapeDtypeStruct((cout, m), _ACT_DTYPE),
        grid=(grid,),
        in_specs=[
            pl.BlockSpec((cin, tm), lambda i: (0, i)),
            pl.BlockSpec((cout, cin), lambda i: (0, 0)),
            pl.BlockSpec((cout, 1), lambda i: (0, 0)),
        ],
        out_specs=pl.BlockSpec((cout, tm), lambda i: (0, i)),
        compiler_params=pltpu.CompilerParams(dimension_semantics=("parallel",)),
    )(x2d, w, shift)


def _dectrack_cm(x2d, cnv, dec, mp_):
    c0, m = x2d.shape
    c1 = cnv["w"].shape[0]
    c2 = dec["w"].shape[0]
    c3 = mp_["w"].shape[0]
    tm, grid = _tile_and_grid(m)
    return pl.pallas_call(
        _dectrack_kernel,
        out_shape=jax.ShapeDtypeStruct((c3, m), _ACT_DTYPE),
        grid=(grid,),
        in_specs=[
            pl.BlockSpec((c0, tm), lambda i: (0, i)),
            pl.BlockSpec((c1, c0), lambda i: (0, 0)),
            pl.BlockSpec((c1, 1), lambda i: (0, 0)),
            pl.BlockSpec((c2, c1), lambda i: (0, 0)),
            pl.BlockSpec((c2, 1), lambda i: (0, 0)),
            pl.BlockSpec((c3, c2), lambda i: (0, 0)),
            pl.BlockSpec((c3, 1), lambda i: (0, 0)),
        ],
        out_specs=pl.BlockSpec((c3, tm), lambda i: (0, i)),
        compiler_params=pltpu.CompilerParams(dimension_semantics=("parallel",)),
    )(x2d, cnv["w"], cnv["shift"], dec["w"], dec["shift"],
      mp_["w"], mp_["shift"])


# ----------------------------------------------------------------------------
# Module-level appliers (channel-major (C, N, H, W) glue around the kernels)
# ----------------------------------------------------------------------------
def _pad_border(y, border):
    """Spatial 1-pixel border filled with the per-channel constant `border`."""
    c, n, h, w = y.shape
    out = jnp.broadcast_to(border.astype(y.dtype).reshape(c, 1, 1, 1),
                           (c, n, h + 2, w + 2))
    return out.at[:, :, 1:-1, 1:-1].set(y)


def maxpool2(x):  # nn.MaxPool2d(2) — tiny reduction, kept as XLA glue
    c, n, h, w = x.shape
    h2, w2 = h // 2, w // 2
    x = x[:, :, : h2 * 2, : w2 * 2].reshape(c, n, h2, 2, w2, 2)
    return jnp.max(x, axis=(3, 5))


def cnvmod_apply(p, x):
    # Conv2d(k=1,s=1,p=1) + BN + ReLU: interior via kernel, constant border.
    c, n, h, w = x.shape
    y = _pointwise_cm(x.reshape(c, n * h * w), p["w"], p["shift"], "relu")
    return _pad_border(y.reshape(-1, n, h, w), p["border"])


def decmod_apply(p, x):
    # ConvTranspose2d(k=1,s=1,p=1) + BN + ReLU: border crop, then pointwise.
    x = x[:, :, 1:-1, 1:-1]
    c, n, h, w = x.shape
    y = _pointwise_cm(x.reshape(c, n * h * w), p["w"], p["shift"], "relu")
    return y.reshape(-1, n, h, w)


# TODO(synk): the border fill + MaxPool2d remain XLA glue; a further win would
# fuse them into the Pallas kernel (grid over pooled output rows).
def encmod_apply(p, x):  # EncMod = CnvMod + MaxPool2d(2)
    return maxpool2(cnvmod_apply(p, x))


def sub_encoder_apply(ps, x):
    for p in ps:
        x = encmod_apply(p, x)
    return x


def encoder_track_apply(p, x_stage1):
    x = sub_encoder_apply(p["enc"][1:], x_stage1)   # stage 1 done (batched)
    x = decmod_apply(p["dec"], x)
    x = encmod_apply(p["enc2"], x)
    return x


def decoder_track_apply(p, x):
    # Fused CnvMod -> DecMod -> Map; Map's zero-pad border becomes the
    # per-channel constant logsigmoid(bias).
    c, n, h, w = x.shape
    y = _dectrack_cm(x.reshape(c, n * h * w), p["cnv"], p["dec"], p["map"])
    return _pad_border(y.reshape(-1, n, h, w), p["map"]["border"])


# ----------------------------------------------------------------------------
# Parameter init (deterministic; bias + eval-mode BN folded into W'/shift')
# ----------------------------------------------------------------------------
class _KeyGen:
    def __init__(self, key):
        self.key = key

    def __call__(self):
        self.key, k = jax.random.split(self.key)
        return k


def _init_layer(key, cin, cout, eps, act):
    kw, kb = jax.random.split(key)
    w = jax.random.normal(kw, (cout, cin), jnp.float32) / jnp.sqrt(float(cin))
    b = 0.01 * jax.random.normal(kb, (cout,), jnp.float32)
    if eps is None:  # no BatchNorm (Map block)
        scale = jnp.ones((cout,), jnp.float32)
    else:  # BN eval mode, PyTorch-init stats: gamma=1, beta=0, mean=0, var=1
        scale = jnp.full((cout,), 1.0 / jnp.sqrt(1.0 + eps), jnp.float32)
    w_folded = (w * scale[:, None]).astype(_ACT_DTYPE)          # (cout, cin)
    shift = (b * scale).reshape(cout, 1).astype(jnp.float32)    # b*scale + 0
    s0 = shift[:, 0]
    if act == "relu":
        border = jnp.maximum(s0, 0.0)
    else:  # logsigmoid
        border = jnp.minimum(s0, 0.0) - jnp.log1p(jnp.exp(-jnp.abs(s0)))
    return dict(w=w_folded, shift=shift, border=border)


def init_cond1_params(key):
    kg = _KeyGen(key)

    def cnv(ci, co):
        return _init_layer(kg(), ci, co, eps=1e-3, act="relu")   # CnvMod

    def dec(ci, co):
        return _init_layer(kg(), ci, co, eps=1e-5, act="relu")   # DecMod

    def mp_(ci, co):
        return _init_layer(kg(), ci, co, eps=None, act="logsigmoid")  # Map

    def sub_encoder(n):
        chs = [(1 if i == 0 else 2 ** (i + 1), 2 ** (i + 2)) for i in range(n)]
        return [cnv(ci, co) for ci, co in chs]

    def decoder(c0, c1, c2, c3):
        return dict(cnv=cnv(c0, c1), dec=dec(c1, c2), map=mp_(c2, c3))

    p = dict(
        encoder=dict(enc=sub_encoder(5), dec=dec(64, 64), enc2=cnv(64, 128)),
        decoderA=decoder(256, 128, 64, 32),
        decoderB=decoder(32, 64, 32, 16),
        decoderC=decoder(16, 32, 16, 8),
        decoderD=decoder(8, 16, 8, 4),
        decoderE=decoder(4, 8, 4, 2),
        subD=sub_encoder(4),
        subC=sub_encoder(3),
        subB=sub_encoder(2),
        subA=sub_encoder(1),
    )

    # decoderA sees concat((e, e)) on channels; [Wl | Wr] @ [e; e] == (Wl+Wr)@e
    # so pre-fold the two 128-wide halves and run the track with cin=128.
    wa = p["decoderA"]["cnv"]["w"].astype(jnp.float32)
    p["decoderA"]["cnv"]["w"] = (wa[:, :128] + wa[:, 128:]).astype(_ACT_DTYPE)

    # Batch the five first-stage CnvMod(1, 4) blocks that all consume the raw
    # input: one launch with cout = 20, split after the pooled output.
    s1 = [p["encoder"]["enc"][0], p["subD"][0], p["subC"][0], p["subB"][0],
          p["subA"][0]]
    p["stage1"] = dict(
        w=jnp.concatenate([l["w"] for l in s1], axis=0),
        shift=jnp.concatenate([l["shift"] for l in s1], axis=0),
        border=jnp.concatenate([l["border"] for l in s1], axis=0),
    )
    return p


# ----------------------------------------------------------------------------
# Cond1.forward (channel-major (C, N, H, W) internally; NCHW at boundaries)
# ----------------------------------------------------------------------------
def cond1_forward(params, a_nchw):
    a = jnp.transpose(a_nchw, (1, 0, 2, 3)).astype(_ACT_DTYPE)   # (C, N, H, W)

    # Batched first stage: encoder + 4 sub-encoders share CnvMod(1,4)+Pool on a.
    s1 = encmod_apply(params["stage1"], a)                       # (20, N, 33, 33)
    s1_enc, s1_d, s1_c, s1_b, s1_a = (s1[0:4], s1[4:8], s1[8:12],
                                      s1[12:16], s1[16:20])

    # encoder(a) is deterministic (eval-mode BN) -> compute once, reuse.
    e = encoder_track_apply(params["encoder"], s1_enc)           # (128, N, 1, 1)
    # TODO(synk): source concatenates encoder(a) with itself on dim 0 (batch),
    # which mismatches decoderA's 256-channel input; we use the channel-concat
    # semantics (as in Cond), realized exactly via the pre-folded weight.
    x = decoder_track_apply(params["decoderA"], e)

    def twice(y):   # duplicate along the batch axis (axis 1 in (C, N, H, W))
        return jnp.concatenate((y, y), axis=1)

    skip_a = twice(sub_encoder_apply(params["subD"][1:], s1_d))
    skip_b = twice(sub_encoder_apply(params["subC"][1:], s1_c))
    skip_c = twice(sub_encoder_apply(params["subB"][1:], s1_b))
    skip_d = twice(s1_a)                                         # subA == stage 1

    def cat_skip(x, skip, cap):
        skip = skip[:, :, :cap, :cap]
        # TODO(synk): spatial sizes never match in the original Cond1; crop
        # both operands to the common minimum before the batch-dim concat.
        hh = min(x.shape[2], skip.shape[2])
        ww = min(x.shape[3], skip.shape[3])
        return jnp.concatenate((x[:, :, :hh, :ww], skip[:, :, :hh, :ww]),
                               axis=1)

    x = cat_skip(x, skip_a, 228)
    x = decoder_track_apply(params["decoderB"], x)
    x = cat_skip(x, skip_b, 223)
    x = decoder_track_apply(params["decoderC"], x)
    x = cat_skip(x, skip_c, 218)
    x = decoder_track_apply(params["decoderD"], x)
    x = cat_skip(x, skip_d, 213)
    x = decoder_track_apply(params["decoderE"], x)

    return jnp.transpose(x, (1, 0, 2, 3)).astype(jnp.float32)    # back to NCHW


if __name__ == "__main__":
    key = jax.random.PRNGKey(0)
    pkey, xkey = jax.random.split(key)
    params = init_cond1_params(pkey)
    # Input: NCHW, single channel (first EncMod is Conv2d(1, 4, ...)).
    a = jax.random.normal(xkey, (2, 1, 64, 64), jnp.float32)

    out = jax.jit(cond1_forward)(params, a)
    out = jax.block_until_ready(out)

    assert out.shape == (18, 2, 11, 11), out.shape
    assert bool(jnp.all(jnp.isfinite(out)))
    assert bool(jnp.all(out <= 0.0))  # final LogSigmoid output is non-positive
    print("KERNEL_OK")
</pallas_src>

<mosaic_0001>
module attributes {stable_mosaic.version = 11 : i64} {
  func.func @_pw_kernel(%arg0: i32, %arg1: memref<1x4096xbf16, #tpu.memory_space<vmem>>, %arg2: memref<20x1xbf16, #tpu.memory_space<vmem>>, %arg3: memref<20x1xf32, #tpu.memory_space<vmem>>, %arg4: memref<20x4096xbf16, #tpu.memory_space<vmem>>) attributes {dimension_semantics = [#tpu.dimension_semantics<parallel>], iteration_bounds = array<i64: 2>, scalar_prefetch = 0 : i64, scratch_operands = 0 : i64, tpu.core_type = #tpu.core_type<tc>, window_params = [{transform_indices = @transform_0, window_bounds = array<i64: 1, 4096>}, {pipeline_mode = #tpu.pipeline_mode<synchronous>, transform_indices = @transform_1, window_bounds = array<i64: 20, 1>}, {pipeline_mode = #tpu.pipeline_mode<synchronous>, transform_indices = @transform_2, window_bounds = array<i64: 20, 1>}, {transform_indices = @transform_3, window_bounds = array<i64: 20, 4096>}]} {
    %c0 = arith.constant 0 : index
    %c0_0 = arith.constant 0 : index
    %0 = vector.load %arg2[%c0, %c0_0] : memref<20x1xbf16, #tpu.memory_space<vmem>>, vector<20x1xbf16>
    %c0_1 = arith.constant 0 : index
    %c0_2 = arith.constant 0 : index
    %1 = vector.load %arg1[%c0_1, %c0_2] : memref<1x4096xbf16, #tpu.memory_space<vmem>>, vector<1x4096xbf16>
    %2 = arith.extf %0 : vector<20x1xbf16> to vector<20x1xf32>
    %3 = arith.extf %1 : vector<1x4096xbf16> to vector<1x4096xf32>
    %4 = vector.broadcast %2 : vector<20x1xf32> to vector<20x4096xf32>
    %5 = vector.broadcast %3 : vector<1x4096xf32> to vector<20x4096xf32>
    %6 = arith.mulf %4, %5 : vector<20x4096xf32>
    %c0_3 = arith.constant 0 : index
    %c0_4 = arith.constant 0 : index
    %7 = vector.load %arg3[%c0_3, %c0_4] : memref<20x1xf32, #tpu.memory_space<vmem>>, vector<20x1xf32>
    %8 = vector.broadcast %7 : vector<20x1xf32> to vector<20x4096xf32>
    %9 = arith.addf %6, %8 : vector<20x4096xf32>
    %cst = arith.constant 0.000000e+00 : f32
    %10 = vector.broadcast %cst : f32 to vector<20x4096xf32>
    %11 = arith.maximumf %9, %10 : vector<20x4096xf32>
    %12 = arith.truncf %11 : vector<20x4096xf32> to vector<20x4096xbf16>
    %c0_5 = arith.constant 0 : index
    %c0_6 = arith.constant 0 : index
    %13 = vector.load %arg4[%c0_5, %c0_6] : memref<20x4096xbf16, #tpu.memory_space<vmem>>, vector<20x4096xbf16>
    tpu.vector_store %arg4[%c0_5, %c0_6], %12 {strides = array<i32>} : memref<20x4096xbf16, #tpu.memory_space<vmem>>, vector<20x4096xbf16>,
    return
  }
  func.func @transform_0(%arg0: i32) -> (i32, i32) {
    %c0_i32 = arith.constant 0 : i32
    %c0_i32_0 = arith.constant 0 : i32
    return %c0_i32, %arg0 : i32, i32
  }
  func.func @transform_1(%arg0: i32) -> (i32, i32) {
    %c0_i32 = arith.constant 0 : i32
    %c0_i32_0 = arith.constant 0 : i32
    %c0_i32_1 = arith.constant 0 : i32
    return %c0_i32, %c0_i32_0 : i32, i32
  }
  func.func @transform_2(%arg0: i32) -> (i32, i32) {
    %c0_i32 = arith.constant 0 : i32
    %c0_i32_0 = arith.constant 0 : i32
    %c0_i32_1 = arith.constant 0 : i32
    return %c0_i32, %c0_i32_0 : i32, i32
  }
  func.func @transform_3(%arg0: i32) -> (i32, i32) {
    %c0_i32 = arith.constant 0 : i32
    %c0_i32_0 = arith.constant 0 : i32
    return %c0_i32, %arg0 : i32, i32
  }
}

module attributes {stable_mosaic.version = 11 : i64} {
  func.func @_pw_kernel(%arg0: i32, %arg1: memref<4x2178xbf16, #tpu.memory_space<vmem>>, %arg2: memref<8x4xbf16, #tpu.memory_space<vmem>>, %arg3: memref<8x1xf32, #tpu.memory_space<vmem>>, %arg4: memref<8x2178xbf16, #tpu.memory_space<vmem>>) attributes {dimension_semantics = [#tpu.dimension_semantics<parallel>], iteration_bounds = array<i64: 1>, scalar_prefetch = 0 : i64, scratch_operands = 0 : i64, tpu.core_type = #tpu.core_type<tc>, window_params = [{transform_indices = @transform_0, window_bounds = array<i64: 4, 2178>}, {pipeline_mode = #tpu.pipeline_mode<synchronous>, transform_indices = @transform_1, window_bounds = array<i64: 8, 4>}, {pipeline_mode = #tpu.pipeline_mode<synchronous>, transform_indices = @transform_2, window_bounds = array<i64: 8, 1>}, {transform_indices = @transform_3, window_bounds = array<i64: 8, 2178>}]} {
    %c0 = arith.constant 0 : index
    %c0_0 = arith.constant 0 : index
    %0 = vector.load %arg2[%c0, %c0_0] : memref<8x4xbf16, #tpu.memory_space<vmem>>, vector<8x4xbf16>
    %c0_1 = arith.constant 0 : index
    %c0_2 = arith.constant 0 : index
    %1 = vector.load %arg1[%c0_1, %c0_2] : memref<4x2178xbf16, #tpu.memory_space<vmem>>, vector<4x2178xbf16>
    %cst = arith.constant dense<0.000000e+00> : vector<8x2178xf32>
    %2 = tpu.matmul %0, %1, %cst {dimension_numbers = #tpu.dot_dimension_numbers<[1], [0], [0], [1], [0, 0, 1, 1], [], []>} : vector<8x4xbf16>, vector<4x2178xbf16>, vector<8x2178xf32> -> vector<8x2178xf32>
    %c0_3 = arith.constant 0 : index
    %c0_4 = arith.constant 0 : index
    %3 = vector.load %arg3[%c0_3, %c0_4] : memref<8x1xf32, #tpu.memory_space<vmem>>, vector<8x1xf32>
    %4 = vector.broadcast %3 : vector<8x1xf32> to vector<8x2178xf32>
    %5 = arith.addf %2, %4 : vector<8x2178xf32>
    %cst_5 = arith.constant 0.000000e+00 : f32
    %6 = vector.broadcast %cst_5 : f32 to vector<8x2178xf32>
    %7 = arith.maximumf %5, %6 : vector<8x2178xf32>
    %8 = arith.truncf %7 : vector<8x2178xf32> to vector<8x2178xbf16>
    %c0_6 = arith.constant 0 : index
    %c0_7 = arith.constant 0 : index
    %9 = vector.load %arg4[%c0_6, %c0_7] : memref<8x2178xbf16, #tpu.memory_space<vmem>>, vector<8x2178xbf16>
    tpu.vector_store %arg4[%c0_6, %c0_7], %8 {strides = array<i32>} : memref<8x2178xbf16, #tpu.memory_space<vmem>>, vector<8x2178xbf16>,
    return
  }
  func.func @transform_0(%arg0: i32) -> (i32, i32) {
    %c0_i32 = arith.constant 0 : i32
    %c0_i32_0 = arith.constant 0 : i32
    return %c0_i32, %arg0 : i32, i32
  }
  func.func @transform_1(%arg0: i32) -> (i32, i32) {
    %c0_i32 = arith.constant 0 : i32
    %c0_i32_0 = arith.constant 0 : i32
    %c0_i32_1 = arith.constant 0 : i32
    return %c0_i32, %c0_i32_0 : i32, i32
  }
  func.func @transform_2(%arg0: i32) -> (i32, i32) {
    %c0_i32 = arith.constant 0 : i32
    %c0_i32_0 = arith.constant 0 : i32
    %c0_i32_1 = arith.constant 0 : i32
    return %c0_i32, %c0_i32_0 : i32, i32
  }
  func.func @transform_3(%arg0: i32) -> (i32, i32) {
    %c0_i32 = arith.constant 0 : i32
    %c0_i32_0 = arith.constant 0 : i32
    return %c0_i32, %arg0 : i32, i32
  }
}

module attributes {stable_mosaic.version = 11 : i64} {
  func.func @_pw_kernel(%arg0: i32, %arg1: memref<8x578xbf16, #tpu.memory_space<vmem>>, %arg2: memref<16x8xbf16, #tpu.memory_space<vmem>>, %arg3: memref<16x1xf32, #tpu.memory_space<vmem>>, %arg4: memref<16x578xbf16, #tpu.memory_space<vmem>>) attributes {dimension_semantics = [#tpu.dimension_semantics<parallel>], iteration_bounds = array<i64: 1>, scalar_prefetch = 0 : i64, scratch_operands = 0 : i64, tpu.core_type = #tpu.core_type<tc>, window_params = [{transform_indices = @transform_0, window_bounds = array<i64: 8, 578>}, {pipeline_mode = #tpu.pipeline_mode<synchronous>, transform_indices = @transform_1, window_bounds = array<i64: 16, 8>}, {pipeline_mode = #tpu.pipeline_mode<synchronous>, transform_indices = @transform_2, window_bounds = array<i64: 16, 1>}, {transform_indices = @transform_3, window_bounds = array<i64: 16, 578>}]} {
    %c0 = arith.constant 0 : index
    %c0_0 = arith.constant 0 : index
    %0 = vector.load %arg2[%c0, %c0_0] : memref<16x8xbf16, #tpu.memory_space<vmem>>, vector<16x8xbf16>
    %c0_1 = arith.constant 0 : index
    %c0_2 = arith.constant 0 : index
    %1 = vector.load %arg1[%c0_1, %c0_2] : memref<8x578xbf16, #tpu.memory_space<vmem>>, vector<8x578xbf16>
    %cst = arith.constant dense<0.000000e+00> : vector<16x578xf32>
    %2 = tpu.matmul %0, %1, %cst {dimension_numbers = #tpu.dot_dimension_numbers<[1], [0], [0], [1], [0, 0, 1, 1], [], []>} : vector<16x8xbf16>, vector<8x578xbf16>, vector<16x578xf32> -> vector<16x578xf32>
    %c0_3 = arith.constant 0 : index
    %c0_4 = arith.constant 0 : index
    %3 = vector.load %arg3[%c0_3, %c0_4] : memref<16x1xf32, #tpu.memory_space<vmem>>, vector<16x1xf32>
    %4 = vector.broadcast %3 : vector<16x1xf32> to vector<16x578xf32>
    %5 = arith.addf %2, %4 : vector<16x578xf32>
    %cst_5 = arith.constant 0.000000e+00 : f32
    %6 = vector.broadcast %cst_5 : f32 to vector<16x578xf32>
    %7 = arith.maximumf %5, %6 : vector<16x578xf32>
    %8 = arith.truncf %7 : vector<16x578xf32> to vector<16x578xbf16>
    %c0_6 = arith.constant 0 : index
    %c0_7 = arith.constant 0 : index
    %9 = vector.load %arg4[%c0_6, %c0_7] : memref<16x578xbf16, #tpu.memory_space<vmem>>, vector<16x578xbf16>
    tpu.vector_store %arg4[%c0_6, %c0_7], %8 {strides = array<i32>} : memref<16x578xbf16, #tpu.memory_space<vmem>>, vector<16x578xbf16>,
    return
  }
  func.func @transform_0(%arg0: i32) -> (i32, i32) {
    %c0_i32 = arith.constant 0 : i32
    %c0_i32_0 = arith.constant 0 : i32
    return %c0_i32, %arg0 : i32, i32
  }
  func.func @transform_1(%arg0: i32) -> (i32, i32) {
    %c0_i32 = arith.constant 0 : i32
    %c0_i32_0 = arith.constant 0 : i32
    %c0_i32_1 = arith.constant 0 : i32
    return %c0_i32, %c0_i32_0 : i32, i32
  }
  func.func @transform_2(%arg0: i32) -> (i32, i32) {
    %c0_i32 = arith.constant 0 : i32
    %c0_i32_0 = arith.constant 0 : i32
    %c0_i32_1 = arith.constant 0 : i32
    return %c0_i32, %c0_i32_0 : i32, i32
  }
  func.func @transform_3(%arg0: i32) -> (i32, i32) {
    %c0_i32 = arith.constant 0 : i32
    %c0_i32_0 = arith.constant 0 : i32
    return %c0_i32, %arg0 : i32, i32
  }
}

module attributes {stable_mosaic.version = 11 : i64} {
  func.func @_pw_kernel(%arg0: i32, %arg1: memref<16x162xbf16, #tpu.memory_space<vmem>>, %arg2: memref<32x16xbf16, #tpu.memory_space<vmem>>, %arg3: memref<32x1xf32, #tpu.memory_space<vmem>>, %arg4: memref<32x162xbf16, #tpu.memory_space<vmem>>) attributes {dimension_semantics = [#tpu.dimension_semantics<parallel>], iteration_bounds = array<i64: 1>, scalar_prefetch = 0 : i64, scratch_operands = 0 : i64, tpu.core_type = #tpu.core_type<tc>, window_params = [{transform_indices = @transform_0, window_bounds = array<i64: 16, 162>}, {pipeline_mode = #tpu.pipeline_mode<synchronous>, transform_indices = @transform_1, window_bounds = array<i64: 32, 16>}, {pipeline_mode = #tpu.pipeline_mode<synchronous>, transform_indices = @transform_2, window_bounds = array<i64: 32, 1>}, {transform_indices = @transform_3, window_bounds = array<i64: 32, 162>}]} {
    %c0 = arith.constant 0 : index
    %c0_0 = arith.constant 0 : index
    %0 = vector.load %arg2[%c0, %c0_0] : memref<32x16xbf16, #tpu.memory_space<vmem>>, vector<32x16xbf16>
    %c0_1 = arith.constant 0 : index
    %c0_2 = arith.constant 0 : index
    %1 = vector.load %arg1[%c0_1, %c0_2] : memref<16x162xbf16, #tpu.memory_space<vmem>>, vector<16x162xbf16>
    %cst = arith.constant dense<0.000000e+00> : vector<32x162xf32>
    %2 = tpu.matmul %0, %1, %cst {dimension_numbers = #tpu.dot_dimension_numbers<[1], [0], [0], [1], [0, 0, 1, 1], [], []>} : vector<32x16xbf16>, vector<16x162xbf16>, vector<32x162xf32> -> vector<32x162xf32>
    %c0_3 = arith.constant 0 : index
    %c0_4 = arith.constant 0 : index
    %3 = vector.load %arg3[%c0_3, %c0_4] : memref<32x1xf32, #tpu.memory_space<vmem>>, vector<32x1xf32>
    %4 = vector.broadcast %3 : vector<32x1xf32> to vector<32x162xf32>
    %5 = arith.addf %2, %4 : vector<32x162xf32>
    %cst_5 = arith.constant 0.000000e+00 : f32
    %6 = vector.broadcast %cst_5 : f32 to vector<32x162xf32>
    %7 = arith.maximumf %5, %6 : vector<32x162xf32>
    %8 = arith.truncf %7 : vector<32x162xf32> to vector<32x162xbf16>
    %c0_6 = arith.constant 0 : index
    %c0_7 = arith.constant 0 : index
    %9 = vector.load %arg4[%c0_6, %c0_7] : memref<32x162xbf16, #tpu.memory_space<vmem>>, vector<32x162xbf16>
    tpu.vector_store %arg4[%c0_6, %c0_7], %8 {strides = array<i32>} : memref<32x162xbf16, #tpu.memory_space<vmem>>, vector<32x162xbf16>,
    return
  }
  func.func @transform_0(%arg0: i32) -> (i32, i32) {
    %c0_i32 = arith.constant 0 : i32
    %c0_i32_0 = arith.constant 0 : i32
    return %c0_i32, %arg0 : i32, i32
  }
  func.func @transform_1(%arg0: i32) -> (i32, i32) {
    %c0_i32 = arith.constant 0 : i32
    %c0_i32_0 = arith.constant 0 : i32
    %c0_i32_1 = arith.constant 0 : i32
    return %c0_i32, %c0_i32_0 : i32, i32
  }
  func.func @transform_2(%arg0: i32) -> (i32, i32) {
    %c0_i32 = arith.constant 0 : i32
    %c0_i32_0 = arith.constant 0 : i32
    %c0_i32_1 = arith.constant 0 : i32
    return %c0_i32, %c0_i32_0 : i32, i32
  }
  func.func @transform_3(%arg0: i32) -> (i32, i32) {
    %c0_i32 = arith.constant 0 : i32
    %c0_i32_0 = arith.constant 0 : i32
    return %c0_i32, %arg0 : i32, i32
  }
}

module attributes {stable_mosaic.version = 11 : i64} {
  func.func @_pw_kernel(%arg0: i32, %arg1: memref<32x50xbf16, #tpu.memory_space<vmem>>, %arg2: memref<64x32xbf16, #tpu.memory_space<vmem>>, %arg3: memref<64x1xf32, #tpu.memory_space<vmem>>, %arg4: memref<64x50xbf16, #tpu.memory_space<vmem>>) attributes {dimension_semantics = [#tpu.dimension_semantics<parallel>], iteration_bounds = array<i64: 1>, scalar_prefetch = 0 : i64, scratch_operands = 0 : i64, tpu.core_type = #tpu.core_type<tc>, window_params = [{transform_indices = @transform_0, window_bounds = array<i64: 32, 50>}, {pipeline_mode = #tpu.pipeline_mode<synchronous>, transform_indices = @transform_1, window_bounds = array<i64: 64, 32>}, {pipeline_mode = #tpu.pipeline_mode<synchronous>, transform_indices = @transform_2, window_bounds = array<i64: 64, 1>}, {transform_indices = @transform_3, window_bounds = array<i64: 64, 50>}]} {
    %c0 = arith.constant 0 : index
    %c0_0 = arith.constant 0 : index
    %0 = vector.load %arg2[%c0, %c0_0] : memref<64x32xbf16, #tpu.memory_space<vmem>>, vector<64x32xbf16>
    %c0_1 = arith.constant 0 : index
    %c0_2 = arith.constant 0 : index
    %1 = vector.load %arg1[%c0_1, %c0_2] : memref<32x50xbf16, #tpu.memory_space<vmem>>, vector<32x50xbf16>
    %cst = arith.constant dense<0.000000e+00> : vector<64x50xf32>
    %2 = tpu.matmul %0, %1, %cst {dimension_numbers = #tpu.dot_dimension_numbers<[1], [0], [0], [1], [0, 0, 1, 1], [], []>} : vector<64x32xbf16>, vector<32x50xbf16>, vector<64x50xf32> -> vector<64x50xf32>
    %c0_3 = arith.constant 0 : index
    %c0_4 = arith.constant 0 : index
    %3 = vector.load %arg3[%c0_3, %c0_4] : memref<64x1xf32, #tpu.memory_space<vmem>>, vector<64x1xf32>
    %4 = vector.broadcast %3 : vector<64x1xf32> to vector<64x50xf32>
    %5 = arith.addf %2, %4 : vector<64x50xf32>
    %cst_5 = arith.constant 0.000000e+00 : f32
    %6 = vector.broadcast %cst_5 : f32 to vector<64x50xf32>
    %7 = arith.maximumf %5, %6 : vector<64x50xf32>
    %8 = arith.truncf %7 : vector<64x50xf32> to vector<64x50xbf16>
    %c0_6 = arith.constant 0 : index
    %c0_7 = arith.constant 0 : index
    %9 = vector.load %arg4[%c0_6, %c0_7] : memref<64x50xbf16, #tpu.memory_space<vmem>>, vector<64x50xbf16>
    tpu.vector_store %arg4[%c0_6, %c0_7], %8 {strides = array<i32>} : memref<64x50xbf16, #tpu.memory_space<vmem>>, vector<64x50xbf16>,
    return
  }
  func.func @transform_0(%arg0: i32) -> (i32, i32) {
    %c0_i32 = arith.constant 0 : i32
    %c0_i32_0 = arith.constant 0 : i32
    return %c0_i32, %arg0 : i32, i32
  }
  func.func @transform_1(%arg0: i32) -> (i32, i32) {
    %c0_i32 = arith.constant 0 : i32
    %c0_i32_0 = arith.constant 0 : i32
    %c0_i32_1 = arith.constant 0 : i32
    return %c0_i32, %c0_i32_0 : i32, i32
  }
  func.func @transform_2(%arg0: i32) -> (i32, i32) {
    %c0_i32 = arith.constant 0 : i32
    %c0_i32_0 = arith.constant 0 : i32
    %c0_i32_1 = arith.constant 0 : i32
    return %c0_i32, %c0_i32_0 : i32, i32
  }
  func.func @transform_3(%arg0: i32) -> (i32, i32) {
    %c0_i32 = arith.constant 0 : i32
    %c0_i32_0 = arith.constant 0 : i32
    return %c0_i32, %arg0 : i32, i32
  }
}

module attributes {stable_mosaic.version = 11 : i64} {
  func.func @_pw_kernel(%arg0: i32, %arg1: memref<64x2xbf16, #tpu.memory_space<vmem>>, %arg2: memref<64x64xbf16, #tpu.memory_space<vmem>>, %arg3: memref<64x1xf32, #tpu.memory_space<vmem>>, %arg4: memref<64x2xbf16, #tpu.memory_space<vmem>>) attributes {dimension_semantics = [#tpu.dimension_semantics<parallel>], iteration_bounds = array<i64: 1>, scalar_prefetch = 0 : i64, scratch_operands = 0 : i64, tpu.core_type = #tpu.core_type<tc>, window_params = [{transform_indices = @transform_0, window_bounds = array<i64: 64, 2>}, {pipeline_mode = #tpu.pipeline_mode<synchronous>, transform_indices = @transform_1, window_bounds = array<i64: 64, 64>}, {pipeline_mode = #tpu.pipeline_mode<synchronous>, transform_indices = @transform_2, window_bounds = array<i64: 64, 1>}, {transform_indices = @transform_3, window_bounds = array<i64: 64, 2>}]} {
    %c0 = arith.constant 0 : index
    %c0_0 = arith.constant 0 : index
    %0 = vector.load %arg2[%c0, %c0_0] : memref<64x64xbf16, #tpu.memory_space<vmem>>, vector<64x64xbf16>
    %c0_1 = arith.constant 0 : index
    %c0_2 = arith.constant 0 : index
    %1 = vector.load %arg1[%c0_1, %c0_2] : memref<64x2xbf16, #tpu.memory_space<vmem>>, vector<64x2xbf16>
    %cst = arith.constant dense<0.000000e+00> : vector<64x2xf32>
    %2 = tpu.matmul %0, %1, %cst {dimension_numbers = #tpu.dot_dimension_numbers<[1], [0], [0], [1], [0, 0, 1, 1], [], []>} : vector<64x64xbf16>, vector<64x2xbf16>, vector<64x2xf32> -> vector<64x2xf32>
    %c0_3 = arith.constant 0 : index
    %c0_4 = arith.constant 0 : index
    %3 = vector.load %arg3[%c0_3, %c0_4] : memref<64x1xf32, #tpu.memory_space<vmem>>, vector<64x1xf32>
    %4 = vector.broadcast %3 : vector<64x1xf32> to vector<64x2xf32>
    %5 = arith.addf %2, %4 : vector<64x2xf32>
    %cst_5 = arith.constant 0.000000e+00 : f32
    %6 = vector.broadcast %cst_5 : f32 to vector<64x2xf32>
    %7 = arith.maximumf %5, %6 : vector<64x2xf32>
    %8 = arith.truncf %7 : vector<64x2xf32> to vector<64x2xbf16>
    %c0_6 = arith.constant 0 : index
    %c0_7 = arith.constant 0 : index
    %9 = vector.load %arg4[%c0_6, %c0_7] : memref<64x2xbf16, #tpu.memory_space<vmem>>, vector<64x2xbf16>
    tpu.vector_store %arg4[%c0_6, %c0_7], %8 {strides = array<i32>} : memref<64x2xbf16, #tpu.memory_space<vmem>>, vector<64x2xbf16>,
    return
  }
  func.func @transform_0(%arg0: i32) -> (i32, i32) {
    %c0_i32 = arith.constant 0 : i32
    %c0_i32_0 = arith.constant 0 : i32
    return %c0_i32, %arg0 : i32, i32
  }
  func.func @transform_1(%arg0: i32) -> (i32, i32) {
    %c0_i32 = arith.constant 0 : i32
    %c0_i32_0 = arith.constant 0 : i32
    %c0_i32_1 = arith.constant 0 : i32
    return %c0_i32, %c0_i32_0 : i32, i32
  }
  func.func @transform_2(%arg0: i32) -> (i32, i32) {
    %c0_i32 = arith.constant 0 : i32
    %c0_i32_0 = arith.constant 0 : i32
    %c0_i32_1 = arith.constant 0 : i32
    return %c0_i32, %c0_i32_0 : i32, i32
  }
  func.func @transform_3(%arg0: i32) -> (i32, i32) {
    %c0_i32 = arith.constant 0 : i32
    %c0_i32_0 = arith.constant 0 : i32
    return %c0_i32, %arg0 : i32, i32
  }
}

module attributes {stable_mosaic.version = 11 : i64} {
  func.func @_dectrack_kernel(%arg0: i32, %arg1: memref<128x2xbf16, #tpu.memory_space<vmem>>, %arg2: memref<128x128xbf16, #tpu.memory_space<vmem>>, %arg3: memref<128x1xf32, #tpu.memory_space<vmem>>, %arg4: memref<64x128xbf16, #tpu.memory_space<vmem>>, %arg5: memref<64x1xf32, #tpu.memory_space<vmem>>, %arg6: memref<32x64xbf16, #tpu.memory_space<vmem>>, %arg7: memref<32x1xf32, #tpu.memory_space<vmem>>, %arg8: memref<32x2xbf16, #tpu.memory_space<vmem>>) attributes {dimension_semantics = [#tpu.dimension_semantics<parallel>], iteration_bounds = array<i64: 1>, scalar_prefetch = 0 : i64, scratch_operands = 0 : i64, tpu.core_type = #tpu.core_type<tc>, window_params = [{transform_indices = @transform_0, window_bounds = array<i64: 128, 2>}, {pipeline_mode = #tpu.pipeline_mode<synchronous>, transform_indices = @transform_1, window_bounds = array<i64: 128, 128>}, {pipeline_mode = #tpu.pipeline_mode<synchronous>, transform_indices = @transform_2, window_bounds = array<i64: 128, 1>}, {pipeline_mode = #tpu.pipeline_mode<synchronous>, transform_indices = @transform_3, window_bounds = array<i64: 64, 128>}, {pipeline_mode = #tpu.pipeline_mode<synchronous>, transform_indices = @transform_4, window_bounds = array<i64: 64, 1>}, {pipeline_mode = #tpu.pipeline_mode<synchronous>, transform_indices = @transform_5, window_bounds = array<i64: 32, 64>}, {pipeline_mode = #tpu.pipeline_mode<synchronous>, transform_indices = @transform_6, window_bounds = array<i64: 32, 1>}, {transform_indices = @transform_7, window_bounds = array<i64: 32, 2>}]} {
    %c0 = arith.constant 0 : index
    %c0_0 = arith.constant 0 : index
    %0 = vector.load %arg2[%c0, %c0_0] : memref<128x128xbf16, #tpu.memory_space<vmem>>, vector<128x128xbf16>
    %c0_1 = arith.constant 0 : index
    %c0_2 = arith.constant 0 : index
    %1 = vector.load %arg1[%c0_1, %c0_2] : memref<128x2xbf16, #tpu.memory_space<vmem>>, vector<128x2xbf16>
    %cst = arith.constant dense<0.000000e+00> : vector<128x2xf32>
    %2 = tpu.matmul %0, %1, %cst {dimension_numbers = #tpu.dot_dimension_numbers<[1], [0], [0], [1], [0, 0, 1, 1], [], []>} : vector<128x128xbf16>, vector<128x2xbf16>, vector<128x2xf32> -> vector<128x2xf32>
    %c0_3 = arith.constant 0 : index
    %c0_4 = arith.constant 0 : index
    %3 = vector.load %arg3[%c0_3, %c0_4] : memref<128x1xf32, #tpu.memory_space<vmem>>, vector<128x1xf32>
    %4 = vector.broadcast %3 : vector<128x1xf32> to vector<128x2xf32>
    %5 = arith.addf %2, %4 : vector<128x2xf32>
    %cst_5 = arith.constant 0.000000e+00 : f32
    %6 = vector.broadcast %cst_5 : f32 to vector<128x2xf32>
    %7 = arith.maximumf %5, %6 : vector<128x2xf32>
    %8 = arith.truncf %7 : vector<128x2xf32> to vector<128x2xbf16>
    %c0_6 = arith.constant 0 : index
    %c0_7 = arith.constant 0 : index
    %9 = vector.load %arg4[%c0_6, %c0_7] : memref<64x128xbf16, #tpu.memory_space<vmem>>, vector<64x128xbf16>
    %cst_8 = arith.constant dense<0.000000e+00> : vector<64x2xf32>
    %10 = tpu.matmul %9, %8, %cst_8 {dimension_numbers = #tpu.dot_dimension_numbers<[1], [0], [0], [1], [0, 0, 1, 1], [], []>} : vector<64x128xbf16>, vector<128x2xbf16>, vector<64x2xf32> -> vector<64x2xf32>
    %c0_9 = arith.constant 0 : index
    %c0_10 = arith.constant 0 : index
    %11 = vector.load %arg5[%c0_9, %c0_10] : memref<64x1xf32, #tpu.memory_space<vmem>>, vector<64x1xf32>
    %12 = vector.broadcast %11 : vector<64x1xf32> to vector<64x2xf32>
    %13 = arith.addf %10, %12 : vector<64x2xf32>
    %cst_11 = arith.constant 0.000000e+00 : f32
    %14 = vector.broadcast %cst_11 : f32 to vector<64x2xf32>
    %15 = arith.maximumf %13, %14 : vector<64x2xf32>
    %16 = arith.truncf %15 : vector<64x2xf32> to vector<64x2xbf16>
    %c0_12 = arith.constant 0 : index
    %c0_13 = arith.constant 0 : index
    %17 = vector.load %arg6[%c0_12, %c0_13] : memref<32x64xbf16, #tpu.memory_space<vmem>>, vector<32x64xbf16>
    %cst_14 = arith.constant dense<0.000000e+00> : vector<32x2xf32>
    %18 = tpu.matmul %17, %16, %cst_14 {dimension_numbers = #tpu.dot_dimension_numbers<[1], [0], [0], [1], [0, 0, 1, 1], [], []>} : vector<32x64xbf16>, vector<64x2xbf16>, vector<32x2xf32> -> vector<32x2xf32>
    %c0_15 = arith.constant 0 : index
    %c0_16 = arith.constant 0 : index
    %19 = vector.load %arg7[%c0_15, %c0_16] : memref<32x1xf32, #tpu.memory_space<vmem>>, vector<32x1xf32>
    %20 = vector.broadcast %19 : vector<32x1xf32> to vector<32x2xf32>
    %21 = arith.addf %18, %20 : vector<32x2xf32>
    %cst_17 = arith.constant 0.000000e+00 : f32
    %22 = vector.broadcast %cst_17 : f32 to vector<32x2xf32>
    %23 = arith.minimumf %21, %22 : vector<32x2xf32>
    %24 = math.absf %21 : vector<32x2xf32>
    %cst_18 = arith.constant 0.000000e+00 : f32
    %25 = vector.broadcast %cst_18 : f32 to vector<32x2xf32>
    %26 = arith.subf %25, %24 : vector<32x2xf32>
    %27 = math.exp %26 : vector<32x2xf32>
    %28 = math.log1p %27 : vector<32x2xf32>
    %29 = arith.subf %23, %28 : vector<32x2xf32>
    %30 = arith.truncf %29 : vector<32x2xf32> to vector<32x2xbf16>
    %c0_19 = arith.constant 0 : index
    %c0_20 = arith.constant 0 : index
    %31 = vector.load %arg8[%c0_19, %c0_20] : memref<32x2xbf16, #tpu.memory_space<vmem>>, vector<32x2xbf16>
    tpu.vector_store %arg8[%c0_19, %c0_20], %30 {strides = array<i32>} : memref<32x2xbf16, #tpu.memory_space<vmem>>, vector<32x2xbf16>,
    return
  }
  func.func @transform_0(%arg0: i32) -> (i32, i32) {
    %c0_i32 = arith.constant 0 : i32
    %c0_i32_0 = arith.constant 0 : i32
    return %c0_i32, %arg0 : i32, i32
  }
  func.func @transform_1(%arg0: i32) -> (i32, i32) {
    %c0_i32 = arith.constant 0 : i32
    %c0_i32_0 = arith.constant 0 : i32
    %c0_i32_1 = arith.constant 0 : i32
    return %c0_i32, %c0_i32_0 : i32, i32
  }
  func.func @transform_2(%arg0: i32) -> (i32, i32) {
    %c0_i32 = arith.constant 0 : i32
    %c0_i32_0 = arith.constant 0 : i32
    %c0_i32_1 = arith.constant 0 : i32
    return %c0_i32, %c0_i32_0 : i32, i32
  }
  func.func @transform_3(%arg0: i32) -> (i32, i32) {
    %c0_i32 = arith.constant 0 : i32
    %c0_i32_0 = arith.constant 0 : i32
    %c0_i32_1 = arith.constant 0 : i32
    return %c0_i32, %c0_i32_0 : i32, i32
  }
  func.func @transform_4(%arg0: i32) -> (i32, i32) {
    %c0_i32 = arith.constant 0 : i32
    %c0_i32_0 = arith.constant 0 : i32
    %c0_i32_1 = arith.constant 0 : i32
    return %c0_i32, %c0_i32_0 : i32, i32
  }
  func.func @transform_5(%arg0: i32) -> (i32, i32) {
    %c0_i32 = arith.constant 0 : i32
    %c0_i32_0 = arith.constant 0 : i32
    %c0_i32_1 = arith.constant 0 : i32
    return %c0_i32, %c0_i32_0 : i32, i32
  }
  func.func @transform_6(%arg0: i32) -> (i32, i32) {
    %c0_i32 = arith.constant 0 : i32
    %c0_i32_0 = arith.constant 0 : i32
    %c0_i32_1 = arith.constant 0 : i32
    return %c0_i32, %c0_i32_0 : i32, i32
  }
  func.func @transform_7(%arg0: i32) -> (i32, i32) {
    %c0_i32 = arith.constant 0 : i32
    %c0_i32_0 = arith.constant 0 : i32
    return %c0_i32, %arg0 : i32, i32
  }
}

module attributes {stable_mosaic.version = 11 : i64} {
  func.func @_pw_kernel(%arg0: i32, %arg1: memref<64x2xbf16, #tpu.memory_space<vmem>>, %arg2: memref<128x64xbf16, #tpu.memory_space<vmem>>, %arg3: memref<128x1xf32, #tpu.memory_space<vmem>>, %arg4: memref<128x2xbf16, #tpu.memory_space<vmem>>) attributes {dimension_semantics = [#tpu.dimension_semantics<parallel>], iteration_bounds = array<i64: 1>, scalar_prefetch = 0 : i64, scratch_operands = 0 : i64, tpu.core_type = #tpu.core_type<tc>, window_params = [{transform_indices = @transform_0, window_bounds = array<i64: 64, 2>}, {pipeline_mode = #tpu.pipeline_mode<synchronous>, transform_indices = @transform_1, window_bounds = array<i64: 128, 64>}, {pipeline_mode = #tpu.pipeline_mode<synchronous>, transform_indices = @transform_2, window_bounds = array<i64: 128, 1>}, {transform_indices = @transform_3, window_bounds = array<i64: 128, 2>}]} {
    %c0 = arith.constant 0 : index
    %c0_0 = arith.constant 0 : index
    %0 = vector.load %arg2[%c0, %c0_0] : memref<128x64xbf16, #tpu.memory_space<vmem>>, vector<128x64xbf16>
    %c0_1 = arith.constant 0 : index
    %c0_2 = arith.constant 0 : index
    %1 = vector.load %arg1[%c0_1, %c0_2] : memref<64x2xbf16, #tpu.memory_space<vmem>>, vector<64x2xbf16>
    %cst = arith.constant dense<0.000000e+00> : vector<128x2xf32>
    %2 = tpu.matmul %0, %1, %cst {dimension_numbers = #tpu.dot_dimension_numbers<[1], [0], [0], [1], [0, 0, 1, 1], [], []>} : vector<128x64xbf16>, vector<64x2xbf16>, vector<128x2xf32> -> vector<128x2xf32>
    %c0_3 = arith.constant 0 : index
    %c0_4 = arith.constant 0 : index
    %3 = vector.load %arg3[%c0_3, %c0_4] : memref<128x1xf32, #tpu.memory_space<vmem>>, vector<128x1xf32>
    %4 = vector.broadcast %3 : vector<128x1xf32> to vector<128x2xf32>
    %5 = arith.addf %2, %4 : vector<128x2xf32>
    %cst_5 = arith.constant 0.000000e+00 : f32
    %6 = vector.broadcast %cst_5 : f32 to vector<128x2xf32>
    %7 = arith.maximumf %5, %6 : vector<128x2xf32>
    %8 = arith.truncf %7 : vector<128x2xf32> to vector<128x2xbf16>
    %c0_6 = arith.constant 0 : index
    %c0_7 = arith.constant 0 : index
    %9 = vector.load %arg4[%c0_6, %c0_7] : memref<128x2xbf16, #tpu.memory_space<vmem>>, vector<128x2xbf16>
    tpu.vector_store %arg4[%c0_6, %c0_7], %8 {strides = array<i32>} : memref<128x2xbf16, #tpu.memory_space<vmem>>, vector<128x2xbf16>,
    return
  }
  func.func @transform_0(%arg0: i32) -> (i32, i32) {
    %c0_i32 = arith.constant 0 : i32
    %c0_i32_0 = arith.constant 0 : i32
    return %c0_i32, %arg0 : i32, i32
  }
  func.func @transform_1(%arg0: i32) -> (i32, i32) {
    %c0_i32 = arith.constant 0 : i32
    %c0_i32_0 = arith.constant 0 : i32
    %c0_i32_1 = arith.constant 0 : i32
    return %c0_i32, %c0_i32_0 : i32, i32
  }
  func.func @transform_2(%arg0: i32) -> (i32, i32) {
    %c0_i32 = arith.constant 0 : i32
    %c0_i32_0 = arith.constant 0 : i32
    %c0_i32_1 = arith.constant 0 : i32
    return %c0_i32, %c0_i32_0 : i32, i32
  }
  func.func @transform_3(%arg0: i32) -> (i32, i32) {
    %c0_i32 = arith.constant 0 : i32
    %c0_i32_0 = arith.constant 0 : i32
    return %c0_i32, %arg0 : i32, i32
  }
}

module attributes {stable_mosaic.version = 11 : i64} {
  func.func @_dectrack_kernel(%arg0: i32, %arg1: memref<32x54xbf16, #tpu.memory_space<vmem>>, %arg2: memref<64x32xbf16, #tpu.memory_space<vmem>>, %arg3: memref<64x1xf32, #tpu.memory_space<vmem>>, %arg4: memref<32x64xbf16, #tpu.memory_space<vmem>>, %arg5: memref<32x1xf32, #tpu.memory_space<vmem>>, %arg6: memref<16x32xbf16, #tpu.memory_space<vmem>>, %arg7: memref<16x1xf32, #tpu.memory_space<vmem>>, %arg8: memref<16x54xbf16, #tpu.memory_space<vmem>>) attributes {dimension_semantics = [#tpu.dimension_semantics<parallel>], iteration_bounds = array<i64: 1>, scalar_prefetch = 0 : i64, scratch_operands = 0 : i64, tpu.core_type = #tpu.core_type<tc>, window_params = [{transform_indices = @transform_0, window_bounds = array<i64: 32, 54>}, {pipeline_mode = #tpu.pipeline_mode<synchronous>, transform_indices = @transform_1, window_bounds = array<i64: 64, 32>}, {pipeline_mode = #tpu.pipeline_mode<synchronous>, transform_indices = @transform_2, window_bounds = array<i64: 64, 1>}, {pipeline_mode = #tpu.pipeline_mode<synchronous>, transform_indices = @transform_3, window_bounds = array<i64: 32, 64>}, {pipeline_mode = #tpu.pipeline_mode<synchronous>, transform_indices = @transform_4, window_bounds = array<i64: 32, 1>}, {pipeline_mode = #tpu.pipeline_mode<synchronous>, transform_indices = @transform_5, window_bounds = array<i64: 16, 32>}, {pipeline_mode = #tpu.pipeline_mode<synchronous>, transform_indices = @transform_6, window_bounds = array<i64: 16, 1>}, {transform_indices = @transform_7, window_bounds = array<i64: 16, 54>}]} {
    %c0 = arith.constant 0 : index
    %c0_0 = arith.constant 0 : index
    %0 = vector.load %arg2[%c0, %c0_0] : memref<64x32xbf16, #tpu.memory_space<vmem>>, vector<64x32xbf16>
    %c0_1 = arith.constant 0 : index
    %c0_2 = arith.constant 0 : index
    %1 = vector.load %arg1[%c0_1, %c0_2] : memref<32x54xbf16, #tpu.memory_space<vmem>>, vector<32x54xbf16>
    %cst = arith.constant dense<0.000000e+00> : vector<64x54xf32>
    %2 = tpu.matmul %0, %1, %cst {dimension_numbers = #tpu.dot_dimension_numbers<[1], [0], [0], [1], [0, 0, 1, 1], [], []>} : vector<64x32xbf16>, vector<32x54xbf16>, vector<64x54xf32> -> vector<64x54xf32>
    %c0_3 = arith.constant 0 : index
    %c0_4 = arith.constant 0 : index
    %3 = vector.load %arg3[%c0_3, %c0_4] : memref<64x1xf32, #tpu.memory_space<vmem>>, vector<64x1xf32>
    %4 = vector.broadcast %3 : vector<64x1xf32> to vector<64x54xf32>
    %5 = arith.addf %2, %4 : vector<64x54xf32>
    %cst_5 = arith.constant 0.000000e+00 : f32
    %6 = vector.broadcast %cst_5 : f32 to vector<64x54xf32>
    %7 = arith.maximumf %5, %6 : vector<64x54xf32>
    %8 = arith.truncf %7 : vector<64x54xf32> to vector<64x54xbf16>
    %c0_6 = arith.constant 0 : index
    %c0_7 = arith.constant 0 : index
    %9 = vector.load %arg4[%c0_6, %c0_7] : memref<32x64xbf16, #tpu.memory_space<vmem>>, vector<32x64xbf16>
    %cst_8 = arith.constant dense<0.000000e+00> : vector<32x54xf32>
    %10 = tpu.matmul %9, %8, %cst_8 {dimension_numbers = #tpu.dot_dimension_numbers<[1], [0], [0], [1], [0, 0, 1, 1], [], []>} : vector<32x64xbf16>, vector<64x54xbf16>, vector<32x54xf32> -> vector<32x54xf32>
    %c0_9 = arith.constant 0 : index
    %c0_10 = arith.constant 0 : index
    %11 = vector.load %arg5[%c0_9, %c0_10] : memref<32x1xf32, #tpu.memory_space<vmem>>, vector<32x1xf32>
    %12 = vector.broadcast %11 : vector<32x1xf32> to vector<32x54xf32>
    %13 = arith.addf %10, %12 : vector<32x54xf32>
    %cst_11 = arith.constant 0.000000e+00 : f32
    %14 = vector.broadcast %cst_11 : f32 to vector<32x54xf32>
    %15 = arith.maximumf %13, %14 : vector<32x54xf32>
    %16 = arith.truncf %15 : vector<32x54xf32> to vector<32x54xbf16>
    %c0_12 = arith.constant 0 : index
    %c0_13 = arith.constant 0 : index
    %17 = vector.load %arg6[%c0_12, %c0_13] : memref<16x32xbf16, #tpu.memory_space<vmem>>, vector<16x32xbf16>
    %cst_14 = arith.constant dense<0.000000e+00> : vector<16x54xf32>
    %18 = tpu.matmul %17, %16, %cst_14 {dimension_numbers = #tpu.dot_dimension_numbers<[1], [0], [0], [1], [0, 0, 1, 1], [], []>} : vector<16x32xbf16>, vector<32x54xbf16>, vector<16x54xf32> -> vector<16x54xf32>
    %c0_15 = arith.constant 0 : index
    %c0_16 = arith.constant 0 : index
    %19 = vector.load %arg7[%c0_15, %c0_16] : memref<16x1xf32, #tpu.memory_space<vmem>>, vector<16x1xf32>
    %20 = vector.broadcast %19 : vector<16x1xf32> to vector<16x54xf32>
    %21 = arith.addf %18, %20 : vector<16x54xf32>
    %cst_17 = arith.constant 0.000000e+00 : f32
    %22 = vector.broadcast %cst_17 : f32 to vector<16x54xf32>
    %23 = arith.minimumf %21, %22 : vector<16x54xf32>
    %24 = math.absf %21 : vector<16x54xf32>
    %cst_18 = arith.constant 0.000000e+00 : f32
    %25 = vector.broadcast %cst_18 : f32 to vector<16x54xf32>
    %26 = arith.subf %25, %24 : vector<16x54xf32>
    %27 = math.exp %26 : vector<16x54xf32>
    %28 = math.log1p %27 : vector<16x54xf32>
    %29 = arith.subf %23, %28 : vector<16x54xf32>
    %30 = arith.truncf %29 : vector<16x54xf32> to vector<16x54xbf16>
    %c0_19 = arith.constant 0 : index
    %c0_20 = arith.constant 0 : index
    %31 = vector.load %arg8[%c0_19, %c0_20] : memref<16x54xbf16, #tpu.memory_space<vmem>>, vector<16x54xbf16>
    tpu.vector_store %arg8[%c0_19, %c0_20], %30 {strides = array<i32>} : memref<16x54xbf16, #tpu.memory_space<vmem>>, vector<16x54xbf16>,
    return
  }
  func.func @transform_0(%arg0: i32) -> (i32, i32) {
    %c0_i32 = arith.constant 0 : i32
    %c0_i32_0 = arith.constant 0 : i32
    return %c0_i32, %arg0 : i32, i32
  }
  func.func @transform_1(%arg0: i32) -> (i32, i32) {
    %c0_i32 = arith.constant 0 : i32
    %c0_i32_0 = arith.constant 0 : i32
    %c0_i32_1 = arith.constant 0 : i32
    return %c0_i32, %c0_i32_0 : i32, i32
  }
  func.func @transform_2(%arg0: i32) -> (i32, i32) {
    %c0_i32 = arith.constant 0 : i32
    %c0_i32_0 = arith.constant 0 : i32
    %c0_i32_1 = arith.constant 0 : i32
    return %c0_i32, %c0_i32_0 : i32, i32
  }
  func.func @transform_3(%arg0: i32) -> (i32, i32) {
    %c0_i32 = arith.constant 0 : i32
    %c0_i32_0 = arith.constant 0 : i32
    %c0_i32_1 = arith.constant 0 : i32
    return %c0_i32, %c0_i32_0 : i32, i32
  }
  func.func @transform_4(%arg0: i32) -> (i32, i32) {
    %c0_i32 = arith.constant 0 : i32
    %c0_i32_0 = arith.constant 0 : i32
    %c0_i32_1 = arith.constant 0 : i32
    return %c0_i32, %c0_i32_0 : i32, i32
  }
  func.func @transform_5(%arg0: i32) -> (i32, i32) {
    %c0_i32 = arith.constant 0 : i32
    %c0_i32_0 = arith.constant 0 : i32
    %c0_i32_1 = arith.constant 0 : i32
    return %c0_i32, %c0_i32_0 : i32, i32
  }
  func.func @transform_6(%arg0: i32) -> (i32, i32) {
    %c0_i32 = arith.constant 0 : i32
    %c0_i32_0 = arith.constant 0 : i32
    %c0_i32_1 = arith.constant 0 : i32
    return %c0_i32, %c0_i32_0 : i32, i32
  }
  func.func @transform_7(%arg0: i32) -> (i32, i32) {
    %c0_i32 = arith.constant 0 : i32
    %c0_i32_0 = arith.constant 0 : i32
    return %c0_i32, %arg0 : i32, i32
  }
}

module attributes {stable_mosaic.version = 11 : i64} {
  func.func @_dectrack_kernel(%arg0: i32, %arg1: memref<16x250xbf16, #tpu.memory_space<vmem>>, %arg2: memref<32x16xbf16, #tpu.memory_space<vmem>>, %arg3: memref<32x1xf32, #tpu.memory_space<vmem>>, %arg4: memref<16x32xbf16, #tpu.memory_space<vmem>>, %arg5: memref<16x1xf32, #tpu.memory_space<vmem>>, %arg6: memref<8x16xbf16, #tpu.memory_space<vmem>>, %arg7: memref<8x1xf32, #tpu.memory_space<vmem>>, %arg8: memref<8x250xbf16, #tpu.memory_space<vmem>>) attributes {dimension_semantics = [#tpu.dimension_semantics<parallel>], iteration_bounds = array<i64: 1>, scalar_prefetch = 0 : i64, scratch_operands = 0 : i64, tpu.core_type = #tpu.core_type<tc>, window_params = [{transform_indices = @transform_0, window_bounds = array<i64: 16, 250>}, {pipeline_mode = #tpu.pipeline_mode<synchronous>, transform_indices = @transform_1, window_bounds = array<i64: 32, 16>}, {pipeline_mode = #tpu.pipeline_mode<synchronous>, transform_indices = @transform_2, window_bounds = array<i64: 32, 1>}, {pipeline_mode = #tpu.pipeline_mode<synchronous>, transform_indices = @transform_3, window_bounds = array<i64: 16, 32>}, {pipeline_mode = #tpu.pipeline_mode<synchronous>, transform_indices = @transform_4, window_bounds = array<i64: 16, 1>}, {pipeline_mode = #tpu.pipeline_mode<synchronous>, transform_indices = @transform_5, window_bounds = array<i64: 8, 16>}, {pipeline_mode = #tpu.pipeline_mode<synchronous>, transform_indices = @transform_6, window_bounds = array<i64: 8, 1>}, {transform_indices = @transform_7, window_bounds = array<i64: 8, 250>}]} {
    %c0 = arith.constant 0 : index
    %c0_0 = arith.constant 0 : index
    %0 = vector.load %arg2[%c0, %c0_0] : memref<32x16xbf16, #tpu.memory_space<vmem>>, vector<32x16xbf16>
    %c0_1 = arith.constant 0 : index
    %c0_2 = arith.constant 0 : index
    %1 = vector.load %arg1[%c0_1, %c0_2] : memref<16x250xbf16, #tpu.memory_space<vmem>>, vector<16x250xbf16>
    %cst = arith.constant dense<0.000000e+00> : vector<32x250xf32>
    %2 = tpu.matmul %0, %1, %cst {dimension_numbers = #tpu.dot_dimension_numbers<[1], [0], [0], [1], [0, 0, 1, 1], [], []>} : vector<32x16xbf16>, vector<16x250xbf16>, vector<32x250xf32> -> vector<32x250xf32>
    %c0_3 = arith.constant 0 : index
    %c0_4 = arith.constant 0 : index
    %3 = vector.load %arg3[%c0_3, %c0_4] : memref<32x1xf32, #tpu.memory_space<vmem>>, vector<32x1xf32>
    %4 = vector.broadcast %3 : vector<32x1xf32> to vector<32x250xf32>
    %5 = arith.addf %2, %4 : vector<32x250xf32>
    %cst_5 = arith.constant 0.000000e+00 : f32
    %6 = vector.broadcast %cst_5 : f32 to vector<32x250xf32>
    %7 = arith.maximumf %5, %6 : vector<32x250xf32>
    %8 = arith.truncf %7 : vector<32x250xf32> to vector<32x250xbf16>
    %c0_6 = arith.constant 0 : index
    %c0_7 = arith.constant 0 : index
    %9 = vector.load %arg4[%c0_6, %c0_7] : memref<16x32xbf16, #tpu.memory_space<vmem>>, vector<16x32xbf16>
    %cst_8 = arith.constant dense<0.000000e+00> : vector<16x250xf32>
    %10 = tpu.matmul %9, %8, %cst_8 {dimension_numbers = #tpu.dot_dimension_numbers<[1], [0], [0], [1], [0, 0, 1, 1], [], []>} : vector<16x32xbf16>, vector<32x250xbf16>, vector<16x250xf32> -> vector<16x250xf32>
    %c0_9 = arith.constant 0 : index
    %c0_10 = arith.constant 0 : index
    %11 = vector.load %arg5[%c0_9, %c0_10] : memref<16x1xf32, #tpu.memory_space<vmem>>, vector<16x1xf32>
    %12 = vector.broadcast %11 : vector<16x1xf32> to vector<16x250xf32>
    %13 = arith.addf %10, %12 : vector<16x250xf32>
    %cst_11 = arith.constant 0.000000e+00 : f32
    %14 = vector.broadcast %cst_11 : f32 to vector<16x250xf32>
    %15 = arith.maximumf %13, %14 : vector<16x250xf32>
    %16 = arith.truncf %15 : vector<16x250xf32> to vector<16x250xbf16>
    %c0_12 = arith.constant 0 : index
    %c0_13 = arith.constant 0 : index
    %17 = vector.load %arg6[%c0_12, %c0_13] : memref<8x16xbf16, #tpu.memory_space<vmem>>, vector<8x16xbf16>
    %cst_14 = arith.constant dense<0.000000e+00> : vector<8x250xf32>
    %18 = tpu.matmul %17, %16, %cst_14 {dimension_numbers = #tpu.dot_dimension_numbers<[1], [0], [0], [1], [0, 0, 1, 1], [], []>} : vector<8x16xbf16>, vector<16x250xbf16>, vector<8x250xf32> -> vector<8x250xf32>
    %c0_15 = arith.constant 0 : index
    %c0_16 = arith.constant 0 : index
    %19 = vector.load %arg7[%c0_15, %c0_16] : memref<8x1xf32, #tpu.memory_space<vmem>>, vector<8x1xf32>
    %20 = vector.broadcast %19 : vector<8x1xf32> to vector<8x250xf32>
    %21 = arith.addf %18, %20 : vector<8x250xf32>
    %cst_17 = arith.constant 0.000000e+00 : f32
    %22 = vector.broadcast %cst_17 : f32 to vector<8x250xf32>
    %23 = arith.minimumf %21, %22 : vector<8x250xf32>
    %24 = math.absf %21 : vector<8x250xf32>
    %cst_18 = arith.constant 0.000000e+00 : f32
    %25 = vector.broadcast %cst_18 : f32 to vector<8x250xf32>
    %26 = arith.subf %25, %24 : vector<8x250xf32>
    %27 = math.exp %26 : vector<8x250xf32>
    %28 = math.log1p %27 : vector<8x250xf32>
    %29 = arith.subf %23, %28 : vector<8x250xf32>
    %30 = arith.truncf %29 : vector<8x250xf32> to vector<8x250xbf16>
    %c0_19 = arith.constant 0 : index
    %c0_20 = arith.constant 0 : index
    %31 = vector.load %arg8[%c0_19, %c0_20] : memref<8x250xbf16, #tpu.memory_space<vmem>>, vector<8x250xbf16>
    tpu.vector_store %arg8[%c0_19, %c0_20], %30 {strides = array<i32>} : memref<8x250xbf16, #tpu.memory_space<vmem>>, vector<8x250xbf16>,
    return
  }
  func.func @transform_0(%arg0: i32) -> (i32, i32) {
    %c0_i32 = arith.constant 0 : i32
    %c0_i32_0 = arith.constant 0 : i32
    return %c0_i32, %arg0 : i32, i32
  }
  func.func @transform_1(%arg0: i32) -> (i32, i32) {
    %c0_i32 = arith.constant 0 : i32
    %c0_i32_0 = arith.constant 0 : i32
    %c0_i32_1 = arith.constant 0 : i32
    return %c0_i32, %c0_i32_0 : i32, i32
  }
  func.func @transform_2(%arg0: i32) -> (i32, i32) {
    %c0_i32 = arith.constant 0 : i32
    %c0_i32_0 = arith.constant 0 : i32
    %c0_i32_1 = arith.constant 0 : i32
    return %c0_i32, %c0_i32_0 : i32, i32
  }
  func.func @transform_3(%arg0: i32) -> (i32, i32) {
    %c0_i32 = arith.constant 0 : i32
    %c0_i32_0 = arith.constant 0 : i32
    %c0_i32_1 = arith.constant 0 : i32
    return %c0_i32, %c0_i32_0 : i32, i32
  }
  func.func @transform_4(%arg0: i32) -> (i32, i32) {
    %c0_i32 = arith.constant 0 : i32
    %c0_i32_0 = arith.constant 0 : i32
    %c0_i32_1 = arith.constant 0 : i32
    return %c0_i32, %c0_i32_0 : i32, i32
  }
  func.func @transform_5(%arg0: i32) -> (i32, i32) {
    %c0_i32 = arith.constant 0 : i32
    %c0_i32_0 = arith.constant 0 : i32
    %c0_i32_1 = arith.constant 0 : i32
    return %c0_i32, %c0_i32_0 : i32, i32
  }
  func.func @transform_6(%arg0: i32) -> (i32, i32) {
    %c0_i32 = arith.constant 0 : i32
    %c0_i32_0 = arith.constant 0 : i32
    %c0_i32_1 = arith.constant 0 : i32
    return %c0_i32, %c0_i32_0 : i32, i32
  }
  func.func @transform_7(%arg0: i32) -> (i32, i32) {
    %c0_i32 = arith.constant 0 : i32
    %c0_i32_0 = arith.constant 0 : i32
    return %c0_i32, %arg0 : i32, i32
  }
}

module attributes {stable_mosaic.version = 11 : i64} {
  func.func @_dectrack_kernel(%arg0: i32, %arg1: memref<8x686xbf16, #tpu.memory_space<vmem>>, %arg2: memref<16x8xbf16, #tpu.memory_space<vmem>>, %arg3: memref<16x1xf32, #tpu.memory_space<vmem>>, %arg4: memref<8x16xbf16, #tpu.memory_space<vmem>>, %arg5: memref<8x1xf32, #tpu.memory_space<vmem>>, %arg6: memref<4x8xbf16, #tpu.memory_space<vmem>>, %arg7: memref<4x1xf32, #tpu.memory_space<vmem>>, %arg8: memref<4x686xbf16, #tpu.memory_space<vmem>>) attributes {dimension_semantics = [#tpu.dimension_semantics<parallel>], iteration_bounds = array<i64: 1>, scalar_prefetch = 0 : i64, scratch_operands = 0 : i64, tpu.core_type = #tpu.core_type<tc>, window_params = [{transform_indices = @transform_0, window_bounds = array<i64: 8, 686>}, {pipeline_mode = #tpu.pipeline_mode<synchronous>, transform_indices = @transform_1, window_bounds = array<i64: 16, 8>}, {pipeline_mode = #tpu.pipeline_mode<synchronous>, transform_indices = @transform_2, window_bounds = array<i64: 16, 1>}, {pipeline_mode = #tpu.pipeline_mode<synchronous>, transform_indices = @transform_3, window_bounds = array<i64: 8, 16>}, {pipeline_mode = #tpu.pipeline_mode<synchronous>, transform_indices = @transform_4, window_bounds = array<i64: 8, 1>}, {pipeline_mode = #tpu.pipeline_mode<synchronous>, transform_indices = @transform_5, window_bounds = array<i64: 4, 8>}, {pipeline_mode = #tpu.pipeline_mode<synchronous>, transform_indices = @transform_6, window_bounds = array<i64: 4, 1>}, {transform_indices = @transform_7, window_bounds = array<i64: 4, 686>}]} {
    %c0 = arith.constant 0 : index
    %c0_0 = arith.constant 0 : index
    %0 = vector.load %arg2[%c0, %c0_0] : memref<16x8xbf16, #tpu.memory_space<vmem>>, vector<16x8xbf16>
    %c0_1 = arith.constant 0 : index
    %c0_2 = arith.constant 0 : index
    %1 = vector.load %arg1[%c0_1, %c0_2] : memref<8x686xbf16, #tpu.memory_space<vmem>>, vector<8x686xbf16>
    %cst = arith.constant dense<0.000000e+00> : vector<16x686xf32>
    %2 = tpu.matmul %0, %1, %cst {dimension_numbers = #tpu.dot_dimension_numbers<[1], [0], [0], [1], [0, 0, 1, 1], [], []>} : vector<16x8xbf16>, vector<8x686xbf16>, vector<16x686xf32> -> vector<16x686xf32>
    %c0_3 = arith.constant 0 : index
    %c0_4 = arith.constant 0 : index
    %3 = vector.load %arg3[%c0_3, %c0_4] : memref<16x1xf32, #tpu.memory_space<vmem>>, vector<16x1xf32>
    %4 = vector.broadcast %3 : vector<16x1xf32> to vector<16x686xf32>
    %5 = arith.addf %2, %4 : vector<16x686xf32>
    %cst_5 = arith.constant 0.000000e+00 : f32
    %6 = vector.broadcast %cst_5 : f32 to vector<16x686xf32>
    %7 = arith.maximumf %5, %6 : vector<16x686xf32>
    %8 = arith.truncf %7 : vector<16x686xf32> to vector<16x686xbf16>
    %c0_6 = arith.constant 0 : index
    %c0_7 = arith.constant 0 : index
    %9 = vector.load %arg4[%c0_6, %c0_7] : memref<8x16xbf16, #tpu.memory_space<vmem>>, vector<8x16xbf16>
    %cst_8 = arith.constant dense<0.000000e+00> : vector<8x686xf32>
    %10 = tpu.matmul %9, %8, %cst_8 {dimension_numbers = #tpu.dot_dimension_numbers<[1], [0], [0], [1], [0, 0, 1, 1], [], []>} : vector<8x16xbf16>, vector<16x686xbf16>, vector<8x686xf32> -> vector<8x686xf32>
    %c0_9 = arith.constant 0 : index
    %c0_10 = arith.constant 0 : index
    %11 = vector.load %arg5[%c0_9, %c0_10] : memref<8x1xf32, #tpu.memory_space<vmem>>, vector<8x1xf32>
    %12 = vector.broadcast %11 : vector<8x1xf32> to vector<8x686xf32>
    %13 = arith.addf %10, %12 : vector<8x686xf32>
    %cst_11 = arith.constant 0.000000e+00 : f32
    %14 = vector.broadcast %cst_11 : f32 to vector<8x686xf32>
    %15 = arith.maximumf %13, %14 : vector<8x686xf32>
    %16 = arith.truncf %15 : vector<8x686xf32> to vector<8x686xbf16>
    %c0_12 = arith.constant 0 : index
    %c0_13 = arith.constant 0 : index
    %17 = vector.load %arg6[%c0_12, %c0_13] : memref<4x8xbf16, #tpu.memory_space<vmem>>, vector<4x8xbf16>
    %cst_14 = arith.constant dense<0.000000e+00> : vector<4x686xf32>
    %18 = tpu.matmul %17, %16, %cst_14 {dimension_numbers = #tpu.dot_dimension_numbers<[1], [0], [0], [1], [0, 0, 1, 1], [], []>} : vector<4x8xbf16>, vector<8x686xbf16>, vector<4x686xf32> -> vector<4x686xf32>
    %c0_15 = arith.constant 0 : index
    %c0_16 = arith.constant 0 : index
    %19 = vector.load %arg7[%c0_15, %c0_16] : memref<4x1xf32, #tpu.memory_space<vmem>>, vector<4x1xf32>
    %20 = vector.broadcast %19 : vector<4x1xf32> to vector<4x686xf32>
    %21 = arith.addf %18, %20 : vector<4x686xf32>
    %cst_17 = arith.constant 0.000000e+00 : f32
    %22 = vector.broadcast %cst_17 : f32 to vector<4x686xf32>
    %23 = arith.minimumf %21, %22 : vector<4x686xf32>
    %24 = math.absf %21 : vector<4x686xf32>
    %cst_18 = arith.constant 0.000000e+00 : f32
    %25 = vector.broadcast %cst_18 : f32 to vector<4x686xf32>
    %26 = arith.subf %25, %24 : vector<4x686xf32>
    %27 = math.exp %26 : vector<4x686xf32>
    %28 = math.log1p %27 : vector<4x686xf32>
    %29 = arith.subf %23, %28 : vector<4x686xf32>
    %30 = arith.truncf %29 : vector<4x686xf32> to vector<4x686xbf16>
    %c0_19 = arith.constant 0 : index
    %c0_20 = arith.constant 0 : index
    %31 = vector.load %arg8[%c0_19, %c0_20] : memref<4x686xbf16, #tpu.memory_space<vmem>>, vector<4x686xbf16>
    tpu.vector_store %arg8[%c0_19, %c0_20], %30 {strides = array<i32>} : memref<4x686xbf16, #tpu.memory_space<vmem>>, vector<4x686xbf16>,
    return
  }
  func.func @transform_0(%arg0: i32) -> (i32, i32) {
    %c0_i32 = arith.constant 0 : i32
    %c0_i32_0 = arith.constant 0 : i32
    return %c0_i32, %arg0 : i32, i32
  }
  func.func @transform_1(%arg0: i32) -> (i32, i32) {
    %c0_i32 = arith.constant 0 : i32
    %c0_i32_0 = arith.constant 0 : i32
    %c0_i32_1 = arith.constant 0 : i32
    return %c0_i32, %c0_i32_0 : i32, i32
  }
  func.func @transform_2(%arg0: i32) -> (i32, i32) {
    %c0_i32 = arith.constant 0 : i32
    %c0_i32_0 = arith.constant 0 : i32
    %c0_i32_1 = arith.constant 0 : i32
    return %c0_i32, %c0_i32_0 : i32, i32
  }
  func.func @transform_3(%arg0: i32) -> (i32, i32) {
    %c0_i32 = arith.constant 0 : i32
    %c0_i32_0 = arith.constant 0 : i32
    %c0_i32_1 = arith.constant 0 : i32
    return %c0_i32, %c0_i32_0 : i32, i32
  }
  func.func @transform_4(%arg0: i32) -> (i32, i32) {
    %c0_i32 = arith.constant 0 : i32
    %c0_i32_0 = arith.constant 0 : i32
    %c0_i32_1 = arith.constant 0 : i32
    return %c0_i32, %c0_i32_0 : i32, i32
  }
  func.func @transform_5(%arg0: i32) -> (i32, i32) {
    %c0_i32 = arith.constant 0 : i32
    %c0_i32_0 = arith.constant 0 : i32
    %c0_i32_1 = arith.constant 0 : i32
    return %c0_i32, %c0_i32_0 : i32, i32
  }
  func.func @transform_6(%arg0: i32) -> (i32, i32) {
    %c0_i32 = arith.constant 0 : i32
    %c0_i32_0 = arith.constant 0 : i32
    %c0_i32_1 = arith.constant 0 : i32
    return %c0_i32, %c0_i32_0 : i32, i32
  }
  func.func @transform_7(%arg0: i32) -> (i32, i32) {
    %c0_i32 = arith.constant 0 : i32
    %c0_i32_0 = arith.constant 0 : i32
    return %c0_i32, %arg0 : i32, i32
  }
}

module attributes {stable_mosaic.version = 11 : i64} {
  func.func @_dectrack_kernel(%arg0: i32, %arg1: memref<4x1458xbf16, #tpu.memory_space<vmem>>, %arg2: memref<8x4xbf16, #tpu.memory_space<vmem>>, %arg3: memref<8x1xf32, #tpu.memory_space<vmem>>, %arg4: memref<4x8xbf16, #tpu.memory_space<vmem>>, %arg5: memref<4x1xf32, #tpu.memory_space<vmem>>, %arg6: memref<2x4xbf16, #tpu.memory_space<vmem>>, %arg7: memref<2x1xf32, #tpu.memory_space<vmem>>, %arg8: memref<2x1458xbf16, #tpu.memory_space<vmem>>) attributes {dimension_semantics = [#tpu.dimension_semantics<parallel>], iteration_bounds = array<i64: 1>, scalar_prefetch = 0 : i64, scratch_operands = 0 : i64, tpu.core_type = #tpu.core_type<tc>, window_params = [{transform_indices = @transform_0, window_bounds = array<i64: 4, 1458>}, {pipeline_mode = #tpu.pipeline_mode<synchronous>, transform_indices = @transform_1, window_bounds = array<i64: 8, 4>}, {pipeline_mode = #tpu.pipeline_mode<synchronous>, transform_indices = @transform_2, window_bounds = array<i64: 8, 1>}, {pipeline_mode = #tpu.pipeline_mode<synchronous>, transform_indices = @transform_3, window_bounds = array<i64: 4, 8>}, {pipeline_mode = #tpu.pipeline_mode<synchronous>, transform_indices = @transform_4, window_bounds = array<i64: 4, 1>}, {pipeline_mode = #tpu.pipeline_mode<synchronous>, transform_indices = @transform_5, window_bounds = array<i64: 2, 4>}, {pipeline_mode = #tpu.pipeline_mode<synchronous>, transform_indices = @transform_6, window_bounds = array<i64: 2, 1>}, {transform_indices = @transform_7, window_bounds = array<i64: 2, 1458>}]} {
    %c0 = arith.constant 0 : index
    %c0_0 = arith.constant 0 : index
    %0 = vector.load %arg2[%c0, %c0_0] : memref<8x4xbf16, #tpu.memory_space<vmem>>, vector<8x4xbf16>
    %c0_1 = arith.constant 0 : index
    %c0_2 = arith.constant 0 : index
    %1 = vector.load %arg1[%c0_1, %c0_2] : memref<4x1458xbf16, #tpu.memory_space<vmem>>, vector<4x1458xbf16>
    %cst = arith.constant dense<0.000000e+00> : vector<8x1458xf32>
    %2 = tpu.matmul %0, %1, %cst {dimension_numbers = #tpu.dot_dimension_numbers<[1], [0], [0], [1], [0, 0, 1, 1], [], []>} : vector<8x4xbf16>, vector<4x1458xbf16>, vector<8x1458xf32> -> vector<8x1458xf32>
    %c0_3 = arith.constant 0 : index
    %c0_4 = arith.constant 0 : index
    %3 = vector.load %arg3[%c0_3, %c0_4] : memref<8x1xf32, #tpu.memory_space<vmem>>, vector<8x1xf32>
    %4 = vector.broadcast %3 : vector<8x1xf32> to vector<8x1458xf32>
    %5 = arith.addf %2, %4 : vector<8x1458xf32>
    %cst_5 = arith.constant 0.000000e+00 : f32
    %6 = vector.broadcast %cst_5 : f32 to vector<8x1458xf32>
    %7 = arith.maximumf %5, %6 : vector<8x1458xf32>
    %8 = arith.truncf %7 : vector<8x1458xf32> to vector<8x1458xbf16>
    %c0_6 = arith.constant 0 : index
    %c0_7 = arith.constant 0 : index
    %9 = vector.load %arg4[%c0_6, %c0_7] : memref<4x8xbf16, #tpu.memory_space<vmem>>, vector<4x8xbf16>
    %cst_8 = arith.constant dense<0.000000e+00> : vector<4x1458xf32>
    %10 = tpu.matmul %9, %8, %cst_8 {dimension_numbers = #tpu.dot_dimension_numbers<[1], [0], [0], [1], [0, 0, 1, 1], [], []>} : vector<4x8xbf16>, vector<8x1458xbf16>, vector<4x1458xf32> -> vector<4x1458xf32>
    %c0_9 = arith.constant 0 : index
    %c0_10 = arith.constant 0 : index
    %11 = vector.load %arg5[%c0_9, %c0_10] : memref<4x1xf32, #tpu.memory_space<vmem>>, vector<4x1xf32>
    %12 = vector.broadcast %11 : vector<4x1xf32> to vector<4x1458xf32>
    %13 = arith.addf %10, %12 : vector<4x1458xf32>
    %cst_11 = arith.constant 0.000000e+00 : f32
    %14 = vector.broadcast %cst_11 : f32 to vector<4x1458xf32>
    %15 = arith.maximumf %13, %14 : vector<4x1458xf32>
    %16 = arith.truncf %15 : vector<4x1458xf32> to vector<4x1458xbf16>
    %c0_12 = arith.constant 0 : index
    %c0_13 = arith.constant 0 : index
    %17 = vector.load %arg6[%c0_12, %c0_13] : memref<2x4xbf16, #tpu.memory_space<vmem>>, vector<2x4xbf16>
    %cst_14 = arith.constant dense<0.000000e+00> : vector<2x1458xf32>
    %18 = tpu.matmul %17, %16, %cst_14 {dimension_numbers = #tpu.dot_dimension_numbers<[1], [0], [0], [1], [0, 0, 1, 1], [], []>} : vector<2x4xbf16>, vector<4x1458xbf16>, vector<2x1458xf32> -> vector<2x1458xf32>
    %c0_15 = arith.constant 0 : index
    %c0_16 = arith.constant 0 : index
    %19 = vector.load %arg7[%c0_15, %c0_16] : memref<2x1xf32, #tpu.memory_space<vmem>>, vector<2x1xf32>
    %20 = vector.broadcast %19 : vector<2x1xf32> to vector<2x1458xf32>
    %21 = arith.addf %18, %20 : vector<2x1458xf32>
    %cst_17 = arith.constant 0.000000e+00 : f32
    %22 = vector.broadcast %cst_17 : f32 to vector<2x1458xf32>
    %23 = arith.minimumf %21, %22 : vector<2x1458xf32>
    %24 = math.absf %21 : vector<2x1458xf32>
    %cst_18 = arith.constant 0.000000e+00 : f32
    %25 = vector.broadcast %cst_18 : f32 to vector<2x1458xf32>
    %26 = arith.subf %25, %24 : vector<2x1458xf32>
    %27 = math.exp %26 : vector<2x1458xf32>
    %28 = math.log1p %27 : vector<2x1458xf32>
    %29 = arith.subf %23, %28 : vector<2x1458xf32>
    %30 = arith.truncf %29 : vector<2x1458xf32> to vector<2x1458xbf16>
    %c0_19 = arith.constant 0 : index
    %c0_20 = arith.constant 0 : index
    %31 = vector.load %arg8[%c0_19, %c0_20] : memref<2x1458xbf16, #tpu.memory_space<vmem>>, vector<2x1458xbf16>
    tpu.vector_store %arg8[%c0_19, %c0_20], %30 {strides = array<i32>} : memref<2x1458xbf16, #tpu.memory_space<vmem>>, vector<2x1458xbf16>,
    return
  }
  func.func @transform_0(%arg0: i32) -> (i32, i32) {
    %c0_i32 = arith.constant 0 : i32
    %c0_i32_0 = arith.constant 0 : i32
    return %c0_i32, %arg0 : i32, i32
  }
  func.func @transform_1(%arg0: i32) -> (i32, i32) {
    %c0_i32 = arith.constant 0 : i32
    %c0_i32_0 = arith.constant 0 : i32
    %c0_i32_1 = arith.constant 0 : i32
    return %c0_i32, %c0_i32_0 : i32, i32
  }
  func.func @transform_2(%arg0: i32) -> (i32, i32) {
    %c0_i32 = arith.constant 0 : i32
    %c0_i32_0 = arith.constant 0 : i32
    %c0_i32_1 = arith.constant 0 : i32
    return %c0_i32, %c0_i32_0 : i32, i32
  }
  func.func @transform_3(%arg0: i32) -> (i32, i32) {
    %c0_i32 = arith.constant 0 : i32
    %c0_i32_0 = arith.constant 0 : i32
    %c0_i32_1 = arith.constant 0 : i32
    return %c0_i32, %c0_i32_0 : i32, i32
  }
  func.func @transform_4(%arg0: i32) -> (i32, i32) {
    %c0_i32 = arith.constant 0 : i32
    %c0_i32_0 = arith.constant 0 : i32
    %c0_i32_1 = arith.constant 0 : i32
    return %c0_i32, %c0_i32_0 : i32, i32
  }
  func.func @transform_5(%arg0: i32) -> (i32, i32) {
    %c0_i32 = arith.constant 0 : i32
    %c0_i32_0 = arith.constant 0 : i32
    %c0_i32_1 = arith.constant 0 : i32
    return %c0_i32, %c0_i32_0 : i32, i32
  }
  func.func @transform_6(%arg0: i32) -> (i32, i32) {
    %c0_i32 = arith.constant 0 : i32
    %c0_i32_0 = arith.constant 0 : i32
    %c0_i32_1 = arith.constant 0 : i32
    return %c0_i32, %c0_i32_0 : i32, i32
  }
  func.func @transform_7(%arg0: i32) -> (i32, i32) {
    %c0_i32 = arith.constant 0 : i32
    %c0_i32_0 = arith.constant 0 : i32
    return %c0_i32, %arg0 : i32, i32
  }
}

</mosaic_0001>

<bundles_post_ra>
// kernel: cond1_forward.19
= control target key start
LH: loop header
LB: loop body
LE: loop exit
PB: predicated region body
PF: predicated region fallthrough
CT: control target
= control target key end

     0   :  { %s1525_s12 = smov 0   ;;  %s1527_s13 = smov 0   ;;  %s2432_s0 = inlined_call_operand.vmem [shape: bf16[1,8192], index: 0, kind: input, shape index: {}]   ;;  %s2433_s1 = inlined_call_operand.vmem [shape: bf16[20,1], index: 1, kind: input, shape index: {}]   ;;  %s2434_s2 = inlined_call_operand.vmem [shape: f32[20,1], index: 2, kind: input, shape index: {}]   ;;  %s2435_s3 = inlined_call_operand.vmem [shape: bf16[20,8192], index: 3, kind: output, shape index: {}]  }
   0x1   :  { %s1529_s14 = smov 0  }
   0x2 LB: > { %s1538_s15 = sadd.s32 4294967295, %s1502_s14   ;;  %s1540_s16 = sadd.s32 1, %s1502_s14   ;;  %s1502_s14 = sphi %s1529_s14, %s2607_s14   ;;  %s1498_s13 = sphi %s1527_s13, %s2606_s13   ;;  %s1494_s12 = sphi %s1525_s12, %s2605_s12  }
   0x3   : > { %s85_s17 = ssub.s32 %s1502_s14, %s1540_s16  ;;  %s88_s18 = sadd.s32 1, %s1498_s13 }
   0x4   : > { %p86_p0 = scmp.eq.s32.totalorder %s85_s17, 0  ;;  %p98_p1 = scmp.ne.s32.totalorder %s1498_s13, %s1494_s12 }
   0x5   : > { %p99_p2 = scmp.eq.s32.totalorder %s1538_s15, 1  ;;  %p1340_p3 = scmp.ge.s32.totalorder %s1502_s14, 1 }
   0x6   : > { %s1548_s19 = scalar_select %p86_p0, %s1498_s13, %s88_s18  }
   0x7   : > { %p1550_p4 = por %p99_p2, %p98_p1  ;;  %p137_p5 = scmp.lt.s32.totalorder %s1502_s14, 3 }
   0x9   : > { %p138_p6 = pnand %p1340_p3, %p137_p5 }
   0xb   : > { %141 = sbr.rel (%p138_p6) target bundleno = 273 (0x111), region = 32 }
  0x12   : > { %v590_v0 = vld [vmem:[%s2434_s2] sm:$0xff]  ;;  %v1504_v2 = vmov 0   ;;  %v167_v5 = vld [vmem:[%s2433_s1 + $0x8] sm:$0x3]  ;;  %v592_v9 = vld [vmem:[%s2434_s2 + $0x10] sm:$0xf]  ;;  %v206_v10 = vlaneseq }
  0x13   : > { %v1444_v1 = vld [vmem:[%s2433_s1] sm:$0xff]   ;;  %1479 = vset.pattern.permute.xlu1 %v1504_v2  ;;  %1473 = vset.pattern.permute.xlu0 %v1504_v2  ;;  %v591_v7 = vld [vmem:[%s2434_s2 + $0x8] sm:$0xff]  ;;  %v174_v8 = vunpack.c.l.bf16 %v167_v5  ;;  %s1341_s4 = sshll.u32 %s1538_s15, 5  ;;  %s156_s8 = sand.u32 1, %s1494_s12  }
  0x14   : > { %v1445_v3 = vunpack.c.l.bf16 %v1444_v1  ;;  %v1446_v4 = vunpack.c.h.bf16 %v1444_v1  ;;  %595 = vperm.xlu1 %1479, %v590_v0   ;;  %p160_p7 = scmp.lt.s32.totalorder %s1341_s4, 63  ;;  %v207_v11 = vshrl.u32 %v206_v10, 7  ;;  %s2184_s9 = smul.u32 384, %s156_s8 }
  0x15   : > { %s1442_s11 = sshll.u32 (%p1550_p4), %s1538_s15, 7 }
  0x16   : > { %v1474_v6 = vpack.i.bf16 %v1446_v4, %v1445_v3  ;;  %s2609_s4 = smov (!%p160_p7, %s1341_s4), 63  ;;  %v1573_v14 = vsub.s32 0, %v207_v11  ;;  %v1575_v15 = vsub.s32 2, %v207_v11  ;;  %v1577_v18 = vsub.s32 4, %v207_v11  ;;  %s2221_s10 = scalar_lea.vmem [#allocation2], %s2184_s9 }
  0x17   : > { %s162_s7 = scalar_lea.vmem %s2432_s0, %s2609_s4  ;;  %v1579_v19 = vsub.s32 6, %v207_v11  ;;  %s2327_s17 = scalar_lea.vmem (%p1550_p4), %s2435_s3, %s1442_s11 }
  0x18   : > { %1475 = vperm.xlu0 %1473, %v1474_v6   ;;  %600 = vperm.xlu1 %1479, %v591_v7   ;;  %v168_v12 = vld [vmem:[%s162_s7] sm:$0xff]  ;;  %v169_v13 = vld [vmem:[%s162_s7 + $0x8] sm:$0xff]  ;;  %v170_v16 = vld [vmem:[%s162_s7 + $0x10] sm:$0xff] }
  0x19   : > { %v175_v17 = vunpack.c.l.bf16 %v168_v12  ;;  %v171_v20 = vld [vmem:[%s162_s7 + $0x18] sm:$0xff]  ;;  %v176_v21 = vunpack.c.h.bf16 %v168_v12  ;;  %v177_v22 = vunpack.c.l.bf16 %v169_v13  ;;  %v178_v23 = vunpack.c.h.bf16 %v169_v13 }
  0x1a   : > { %v179_v24 = vunpack.c.l.bf16 %v170_v16  ;;  %v180_v25 = vunpack.c.h.bf16 %v170_v16  ;;  %v1581_v26 = vunpack.c.l.bf16 %v171_v20  ;;  %v1583_v27 = vunpack.c.h.bf16 %v171_v20 }
  0x1b   : > { %v209_v28 = vrot.slane %v175_v17, %v1573_v14  ;;  %v213_v29 = vrot.slane %v175_v17, %v1575_v15  ;;  %v217_v30 = vrot.slane %v175_v17, %v1577_v18  ;;  %v221_v31 = vrot.slane %v175_v17, %v1579_v19 }
  0x1c   : > { %195 = vperm.xlu0 %1473, %v174_v8   ;;  %v225_v32 = vrot.slane %v176_v21, %v1573_v14  ;;  %v229_v33 = vrot.slane %v176_v21, %v1575_v15  ;;  %v233_v34 = vrot.slane %v176_v21, %v1577_v18  ;;  %v237_v35 = vrot.slane %v176_v21, %v1579_v19 }
  0x1d   : > { %v241_v36 = vrot.slane %v177_v22, %v1573_v14  ;;  %v245_v37 = vrot.slane %v177_v22, %v1575_v15  ;;  %v249_v38 = vrot.slane %v177_v22, %v1577_v18  ;;  %v253_v39 = vrot.slane %v177_v22, %v1579_v19 }
  0x1e   : > { %v257_v40 = vrot.slane %v178_v23, %v1573_v14  ;;  %v261_v41 = vrot.slane %v178_v23, %v1575_v15  ;;  %v265_v42 = vrot.slane %v178_v23, %v1577_v18  ;;  %v269_v43 = vrot.slane %v178_v23, %v1579_v19 }
  0x1f   : > { %v273_v44 = vrot.slane %v179_v24, %v1573_v14  ;;  %v277_v45 = vrot.slane %v179_v24, %v1575_v15  ;;  %v281_v46 = vrot.slane %v179_v24, %v1577_v18  ;;  %v285_v47 = vrot.slane %v179_v24, %v1579_v19 }
  0x20   : > { %605 = vperm.xlu0 %1473, %v592_v9   ;;  %v289_v48 = vrot.slane %v180_v25, %v1573_v14  ;;  %v293_v49 = vrot.slane %v180_v25, %v1575_v15  ;;  %v297_v50 = vrot.slane %v180_v25, %v1577_v18  ;;  %v301_v51 = vrot.slane %v180_v25, %v1579_v19 }
  0x21   : > { %v305_v52 = vrot.slane %v1581_v26, %v1573_v14  ;;  %v309_v53 = vrot.slane %v1581_v26, %v1575_v15  ;;  %v313_v54 = vrot.slane %v1581_v26, %v1577_v18  ;;  %v317_v55 = vrot.slane %v1581_v26, %v1579_v19 }
  0x22   : > { %v321_v56 = vrot.slane %v1583_v27, %v1573_v14  ;;  %v325_v57 = vrot.slane %v1583_v27, %v1575_v15  ;;  %v329_v58 = vrot.slane %v1583_v27, %v1577_v18  ;;  %v333_v59 = vrot.slane %v1583_v27, %v1579_v19 }
  0x23   : > { %v1626_v60 = vrot.slane %v209_v28, %v1573_v14  ;;  %v1629_v61 = vrot.slane %v213_v29, %v1573_v14  ;;  %v1632_v62 = vrot.slane %v217_v30, %v1573_v14  ;;  %v1635_v63 = vrot.slane %v221_v31, %v1573_v14 }
  0x24   : > { %v1638_v0 = vrot.slane %v225_v32, %v1573_v14  ;;  %v1641_v1 = vrot.slane %v229_v33, %v1573_v14  ;;  %v1644_v2 = vrot.slane %v233_v34, %v1573_v14  ;;  %v1647_v3 = vrot.slane %v237_v35, %v1573_v14 }
  0x25   : > { %2476 = vst [vmem:[#allocation3_spill] sm:$0xff] %v1626_v60  ;;  %2477 = vst [vmem:[#allocation4_spill] sm:$0xff] %v1629_v61  ;;  %v1650_v4 = vrot.slane %v241_v36, %v1573_v14  ;;  %v1653_v5 = vrot.slane %v245_v37, %v1573_v14  ;;  %v1656_v6 = vrot.slane %v249_v38, %v1573_v14 }
  0x26   : > { %2478 = vst [vmem:[#allocation5_spill] sm:$0xff] %v1632_v62  ;;  %2479 = vst [vmem:[#allocation6_spill] sm:$0xff] %v1635_v63  ;;  %v1659_v7 = vrot.slane %v253_v39, %v1573_v14  ;;  %v1662_v8 = vrot.slane %v257_v40, %v1573_v14  ;;  %v1665_v9 = vrot.slane %v261_v41, %v1573_v14 }
  0x27   : > { %2480 = vst [vmem:[#allocation7_spill] sm:$0xff] %v1638_v0  ;;  %2481 = vst [vmem:[#allocation8_spill] sm:$0xff] %v1641_v1  ;;  %v1668_v10 = vrot.slane %v265_v42, %v1573_v14  ;;  %v1671_v11 = vrot.slane %v269_v43, %v1573_v14  ;;  %v1674_v12 = vrot.slane %v273_v44, %v1573_v14 }
  0x28   : > { %2482 = vst [vmem:[#allocation9_spill] sm:$0xff] %v1644_v2  ;;  %2483 = vst [vmem:[#allocation10_spill] sm:$0xff] %v1647_v3  ;;  %v1677_v13 = vrot.slane %v277_v45, %v1573_v14  ;;  %v1680_v15 = vrot.slane %v281_v46, %v1573_v14  ;;  %v1683_v16 = vrot.slane %v285_v47, %v1573_v14 }
  0x29   : > { %2484 = vst [vmem:[#allocation11_spill] sm:$0xff] %v1650_v4  ;;  %2485 = vst [vmem:[#allocation12_spill] sm:$0xff] %v1653_v5  ;;  %v1686_v17 = vrot.slane %v289_v48, %v1573_v14  ;;  %v1689_v18 = vrot.slane %v293_v49, %v1573_v14  ;;  %v1692_v20 = vrot.slane %v297_v50, %v1573_v14 }
  0x2a   : > { %2486 = vst [vmem:[#allocation13_spill] sm:$0xff] %v1656_v6  ;;  %2487 = vst [vmem:[#allocation14_spill] sm:$0xff] %v1659_v7  ;;  %v1695_v21 = vrot.slane %v301_v51, %v1573_v14  ;;  %v1698_v22 = vrot.slane %v305_v52, %v1573_v14  ;;  %v1701_v23 = vrot.slane %v309_v53, %v1573_v14 }
  0x2b   : > { %2488 = vst [vmem:[#allocation15_spill] sm:$0xff] %v1662_v8  ;;  %2489 = vst [vmem:[#allocation16_spill] sm:$0xff] %v1665_v9  ;;  %v1704_v25 = vrot.slane %v313_v54, %v1573_v14  ;;  %v1707_v26 = vrot.slane %v317_v55, %v1573_v14  ;;  %v1710_v27 = vrot.slane %v321_v56, %v1573_v14 }
  0x2c   : > { %2490 = vst [vmem:[#allocation17_spill] sm:$0xff] %v1668_v10  ;;  %2491 = vst [vmem:[#allocation18_spill] sm:$0xff] %v1671_v11  ;;  %v1715_v29 = vrot.slane %v325_v57, %v1573_v14  ;;  %v1718_v30 = vrot.slane %v329_v58, %v1573_v14  ;;  %v1721_v31 = vrot.slane %v333_v59, %v1573_v14 }
  0x2d   : > { %2492 = vst [vmem:[#allocation19_spill] sm:$0xff] %v1674_v12  ;;  %2493 = vst [vmem:[#allocation20_spill] sm:$0xff] %v1677_v13 }
  0x2e   : > { %2494 = vst [vmem:[#allocation21_spill] sm:$0xff] %v1680_v15  ;;  %2495 = vst [vmem:[#allocation22_spill] sm:$0xff] %v1683_v16 }
  0x2f   : > { %2496 = vst [vmem:[#allocation23_spill] sm:$0xff] %v1686_v17  ;;  %2497 = vst [vmem:[#allocation24_spill] sm:$0xff] %v1689_v18 }
  0x30   : > { %2498 = vst [vmem:[#allocation25_spill] sm:$0xff] %v1692_v20  ;;  %2499 = vst [vmem:[#allocation26_spill] sm:$0xff] %v1695_v21 }
  0x31   : > { %2500 = vst [vmem:[#allocation27_spill] sm:$0xff] %v1698_v22  ;;  %2501 = vst [vmem:[#allocation28_spill] sm:$0xff] %v1701_v23 }
  0x32   : > { %2502 = vst [vmem:[#allocation29_spill] sm:$0xff] %v1704_v25  ;;  %2503 = vst [vmem:[#allocation30_spill] sm:$0xff] %v1707_v26 }
  0x33   : > { %2504 = vst [vmem:[#allocation31_spill] sm:$0xff] %v1710_v27  ;;  %2505 = vst [vmem:[#allocation32_spill] sm:$0xff] %v1715_v29 }
  0x34   : > { %2506 = vst [vmem:[#allocation33_spill] sm:$0xff] %v1718_v30  ;;  %2507 = vst [vmem:[#allocation34_spill] sm:$0xff] %v1721_v31 }
  0x97   : > { %v1476_v19 = vpop.permute.xlu0 %1475 }
  0x98   : > { %v1477_v24 = vunpack.i.l.bf16 %v1476_v19  ;;  %v1712_v28 = vunpack.i.h.bf16 %v1476_v19 }
  0x9a   : > { %v1724_v32 = vmul.f32 %v1477_v24, %v1626_v60  ;;  %v1727_v33 = vmul.f32 %v1477_v24, %v1629_v61  ;;  %v1730_v34 = vmul.f32 %v1477_v24, %v1632_v62  ;;  %v1733_v35 = vmul.f32 %v1477_v24, %v1635_v63 }
  0x9b   : > { %v1736_v36 = vmul.f32 %v1477_v24, %v1638_v0  ;;  %v1739_v37 = vmul.f32 %v1477_v24, %v1641_v1  ;;  %v1742_v14 = vmul.f32 %v1477_v24, %v1644_v2  ;;  %v1745_v38 = vmul.f32 %v1477_v24, %v1647_v3 }
  0x9c   : > { %v1748_v39 = vmul.f32 %v1477_v24, %v1650_v4  ;;  %v1751_v40 = vmul.f32 %v1477_v24, %v1653_v5  ;;  %v1754_v41 = vmul.f32 %v1477_v24, %v1656_v6  ;;  %v1757_v42 = vmul.f32 %v1477_v24, %v1659_v7 }
  0x9d   : > { %v1760_v43 = vmul.f32 %v1477_v24, %v1662_v8  ;;  %v1763_v44 = vmul.f32 %v1477_v24, %v1665_v9  ;;  %v1766_v45 = vmul.f32 %v1477_v24, %v1668_v10  ;;  %v1769_v46 = vmul.f32 %v1477_v24, %v1671_v11 }
  0x9e   : > { %v1772_v47 = vmul.f32 %v1477_v24, %v1674_v12  ;;  %v1775_v48 = vmul.f32 %v1477_v24, %v1677_v13  ;;  %v1778_v49 = vmul.f32 %v1477_v24, %v1680_v15  ;;  %v1781_v50 = vmul.f32 %v1477_v24, %v1683_v16 }
  0x9f   : > { %v1784_v51 = vmul.f32 %v1477_v24, %v1686_v17  ;;  %v1787_v52 = vmul.f32 %v1477_v24, %v1689_v18  ;;  %v1790_v53 = vmul.f32 %v1477_v24, %v1692_v20  ;;  %v1793_v54 = vmul.f32 %v1477_v24, %v1695_v21 }
  0xa0   : > { %v1796_v55 = vmul.f32 %v1477_v24, %v1698_v22  ;;  %v1799_v56 = vmul.f32 %v1477_v24, %v1701_v23  ;;  %v1802_v57 = vmul.f32 %v1477_v24, %v1704_v25  ;;  %v1805_v58 = vmul.f32 %v1477_v24, %v1707_v26 }
  0xa1   : > { %2508 = vst [vmem:[#allocation35_spill] sm:$0xff] %v1793_v54  ;;  %v1808_v59 = vmul.f32 %v1477_v24, %v1710_v27  ;;  %v1811_v19 = vmul.f32 %v1477_v24, %v1715_v29  ;;  %v1814_v54 = vmul.f32 %v1477_v24, %v1718_v30 }
  0xa2   : > { %2509 = vst [vmem:[#allocation36_spill] sm:$0xff] %v1796_v55  ;;  %2510 = vst [vmem:[#allocation37_spill] sm:$0xff] %v1799_v56  ;;  %v1817_v55 = vmul.f32 %v1477_v24, %v1721_v31  ;;  %v1821_v56 = vmul.f32 %v1712_v28, %v1626_v60  ;;  %v1837_v24 = vmul.f32 %v1712_v28, %v1638_v0 }
  0xa3   : > { %2511 = vst [vmem:[#allocation38_spill] sm:$0xff] %v1802_v57  ;;  %2512 = vst [vmem:[#allocation39_spill] sm:$0xff] %v1808_v59  ;;  %v1825_v57 = vmul.f32 %v1712_v28, %v1629_v61  ;;  %v1829_v59 = vmul.f32 %v1712_v28, %v1632_v62  ;;  %v1841_v60 = vmul.f32 %v1712_v28, %v1641_v1 }
  0xa4   : > { %2513 = vst [vmem:[#allocation40_spill] sm:$0xff] %v1811_v19  ;;  %v1833_v19 = vmul.f32 %v1712_v28, %v1635_v63  ;;  %v1845_v61 = vmul.f32 %v1712_v28, %v1644_v2  ;;  %v1849_v62 = vmul.f32 %v1712_v28, %v1647_v3  ;;  %v1853_v63 = vmul.f32 %v1712_v28, %v1650_v4 }
  0xa5   : > { %v1857_v0 = vmul.f32 %v1712_v28, %v1653_v5  ;;  %v1861_v1 = vmul.f32 %v1712_v28, %v1656_v6  ;;  %v1865_v2 = vmul.f32 %v1712_v28, %v1659_v7  ;;  %v1869_v3 = vmul.f32 %v1712_v28, %v1662_v8 }
  0xa6   : > { %v1873_v4 = vmul.f32 %v1712_v28, %v1665_v9  ;;  %v1877_v5 = vmul.f32 %v1712_v28, %v1668_v10  ;;  %v1881_v6 = vmul.f32 %v1712_v28, %v1671_v11  ;;  %v1885_v7 = vmul.f32 %v1712_v28, %v1674_v12 }
  0xa7   : > { %v1889_v8 = vmul.f32 %v1712_v28, %v1677_v13  ;;  %v1893_v9 = vmul.f32 %v1712_v28, %v1680_v15  ;;  %v1897_v10 = vmul.f32 %v1712_v28, %v1683_v16  ;;  %v1901_v11 = vmul.f32 %v1712_v28, %v1686_v17 }
  0xa8   : > { %v1905_v12 = vmul.f32 %v1712_v28, %v1689_v18  ;;  %v1909_v13 = vmul.f32 %v1712_v28, %v1692_v20  ;;  %v1913_v15 = vmul.f32 %v1712_v28, %v1695_v21  ;;  %v1917_v16 = vmul.f32 %v1712_v28, %v1698_v22 }
  0xa9   : > { %v1921_v17 = vmul.f32 %v1712_v28, %v1701_v23  ;;  %v1925_v18 = vmul.f32 %v1712_v28, %v1704_v25  ;;  %v1929_v20 = vmul.f32 %v1712_v28, %v1707_v26  ;;  %v1933_v21 = vmul.f32 %v1712_v28, %v1710_v27 }
  0xaa   : > { %2514 = vst [vmem:[#allocation41_spill] sm:$0xff] %v1909_v13  ;;  %v596_v13 = vpop.permute.xlu1 %595  ;;  %v1937_v22 = vmul.f32 %v1712_v28, %v1715_v29  ;;  %v1941_v23 = vmul.f32 %v1712_v28, %v1718_v30  ;;  %v1945_v25 = vmul.f32 %v1712_v28, %v1721_v31 }
  0xab   : > { %2515 = vst [vmem:[#allocation42_spill] sm:$0xff] %v1929_v20  ;;  %v1948_v26 = vadd.f32 %v596_v13, %v1724_v32  ;;  %v1951_v20 = vadd.f32 %v596_v13, %v1727_v33  ;;  %v1954_v27 = vadd.f32 %v596_v13, %v1730_v34  ;;  %v1957_v29 = vadd.f32 %v596_v13, %v1733_v35 }
  0xac   : > { %2516 = vst [vmem:[#allocation43_spill] sm:$0xff] %v1937_v22  ;;  %v1960_v22 = vadd.f32 %v596_v13, %v1736_v36  ;;  %v1963_v30 = vadd.f32 %v596_v13, %v1739_v37  ;;  %v1966_v28 = vadd.f32 %v596_v13, %v1742_v14  ;;  %v1969_v32 = vadd.f32 %v596_v13, %v1745_v38 }
  0xad   : > { %2517 = vst [vmem:[#allocation44_spill] sm:$0xff] %v1948_v26  ;;  %2518 = vst [vmem:[#allocation45_spill] sm:$0xff] %v1951_v20  ;;  %v1972_v33 = vadd.f32 %v596_v13, %v1748_v39  ;;  %v1975_v34 = vadd.f32 %v596_v13, %v1751_v40  ;;  %v1978_v35 = vadd.f32 %v596_v13, %v1754_v41 }
  0xae   : > { %2519 = vst [vmem:[#allocation46_spill] sm:$0xff] %v1954_v27  ;;  %2520 = vst [vmem:[#allocation47_spill] sm:$0xff] %v1957_v29  ;;  %v1981_v36 = vadd.f32 %v596_v13, %v1757_v42  ;;  %v1984_v37 = vadd.f32 %v596_v13, %v1760_v43  ;;  %v1987_v14 = vadd.f32 %v596_v13, %v1763_v44  ;;  %v601_v44 = vpop.permute.xlu1 %600 }
  0xaf   : > { %2521 = vst [vmem:[#allocation48_spill] sm:$0xff] %v1960_v22  ;;  %2522 = vst [vmem:[#allocation49_spill] sm:$0xff] %v1963_v30  ;;  %v1990_v38 = vadd.f32 %v596_v13, %v1766_v45  ;;  %v1993_v39 = vadd.f32 %v596_v13, %v1769_v46  ;;  %v1996_v40 = vadd.f32 %v596_v13, %v1772_v47  ;;  %v2530_v47 = vld [vmem:[#allocation35_spill] sm:$0xff] }
  0xb0   : > { %2523 = vst [vmem:[#allocation50_spill] sm:$0xff] %v1966_v28  ;;  %v1999_v41 = vadd.f32 %v596_v13, %v1775_v48  ;;  %v2002_v42 = vadd.f32 %v596_v13, %v1778_v49  ;;  %v2005_v43 = vadd.f32 %v596_v13, %v1781_v50  ;;  %v2008_v31 = vadd.f32 %v596_v13, %v1784_v51  ;;  %v2531_v48 = vld [vmem:[#allocation36_spill] sm:$0xff]  ;;  %v2532_v49 = vld [vmem:[#allocation37_spill] sm:$0xff]  ;;  %v2533_v50 = vld [vmem:[#allocation38_spill] sm:$0xff] }
  0xb1   : > { %2524 = vst [vmem:[#allocation51_spill] sm:$0xff] %v1996_v40  ;;  %v2011_v45 = vadd.f32 %v596_v13, %v1787_v52  ;;  %v2014_v46 = vadd.f32 %v596_v13, %v1790_v53  ;;  %v2017_v40 = vadd.f32 %v596_v13, %v2530_v47  ;;  %v2029_v51 = vadd.f32 %v596_v13, %v1805_v58  ;;  %v2534_v52 = vld [vmem:[#allocation39_spill] sm:$0xff]  ;;  %v2535_v53 = vld [vmem:[#allocation40_spill] sm:$0xff] }
  0xb2   : > { %2525 = vst [vmem:[#allocation52_spill] sm:$0xff] %v1999_v41  ;;  %2526 = vst [vmem:[#allocation53_spill] sm:$0xff] %v2002_v42  ;;  %v2020_v41 = vadd.f32 %v596_v13, %v2531_v48  ;;  %v2023_v42 = vadd.f32 %v596_v13, %v2532_v49  ;;  %v2038_v47 = vadd.f32 %v596_v13, %v1814_v54 }
  0xb3   : > { %2527 = vst [vmem:[#allocation54_spill] sm:$0xff] %v2005_v43  ;;  %2528 = vst [vmem:[#allocation55_spill] sm:$0xff] %v2011_v45  ;;  %v2026_v43 = vadd.f32 %v596_v13, %v2533_v50  ;;  %v2032_v45 = vadd.f32 %v596_v13, %v2534_v52  ;;  %v2041_v48 = vadd.f32 %v596_v13, %v1817_v55 }
  0xb4   : > { %2529 = vst [vmem:[#allocation56_spill] sm:$0xff] %v2014_v46  ;;  %v2035_v46 = vadd.f32 %v596_v13, %v2535_v53  ;;  %v2044_v49 = vadd.f32 %v601_v44, %v1821_v56  ;;  %v2047_v50 = vadd.f32 %v601_v44, %v1825_v57  ;;  %v2050_v58 = vadd.f32 %v601_v44, %v1829_v59 }
  0xb5   : > { %v2053_v52 = vadd.f32 %v601_v44, %v1833_v19  ;;  %v2056_v53 = vadd.f32 %v601_v44, %v1837_v24  ;;  %v2059_v54 = vadd.f32 %v601_v44, %v1841_v60  ;;  %v2062_v13 = vadd.f32 %v601_v44, %v1845_v61 }
  0xb6   : > { %v2065_v55 = vadd.f32 %v601_v44, %v1849_v62  ;;  %v2068_v56 = vadd.f32 %v601_v44, %v1853_v63  ;;  %v2071_v57 = vadd.f32 %v601_v44, %v1857_v0  ;;  %v2074_v59 = vadd.f32 %v601_v44, %v1861_v1 }
  0xb7   : > { %v2077_v19 = vadd.f32 %v601_v44, %v1865_v2  ;;  %v2080_v60 = vadd.f32 %v601_v44, %v1869_v3  ;;  %v2083_v61 = vadd.f32 %v601_v44, %v1873_v4  ;;  %v2086_v62 = vadd.f32 %v601_v44, %v1877_v5 }
  0xb8   : > { %v2089_v63 = vadd.f32 %v601_v44, %v1881_v6  ;;  %v2092_v0 = vadd.f32 %v601_v44, %v1885_v7  ;;  %v2095_v1 = vadd.f32 %v601_v44, %v1889_v8  ;;  %v2098_v2 = vadd.f32 %v601_v44, %v1893_v9  ;;  %v2537_v6 = vld [vmem:[#allocation41_spill] sm:$0xff] }
  0xb9   : > { %v2101_v3 = vadd.f32 %v601_v44, %v1897_v10  ;;  %v2104_v4 = vadd.f32 %v601_v44, %v1901_v11  ;;  %v2107_v5 = vadd.f32 %v601_v44, %v1905_v12  ;;  %v2110_v24 = vadd.f32 %v601_v44, %v2537_v6  ;;  %v2540_v11 = vld [vmem:[#allocation42_spill] sm:$0xff]  ;;  %v2542_v6 = vld [vmem:[#allocation43_spill] sm:$0xff]  ;;  %v2547_v28 = vld [vmem:[#allocation52_spill] sm:$0xff] }
  0xba   : > { %v2113_v7 = vadd.f32 %v601_v44, %v1913_v15  ;;  %v2116_v8 = vadd.f32 %v601_v44, %v1917_v16  ;;  %v2119_v9 = vadd.f32 %v601_v44, %v1921_v17  ;;  %v2122_v10 = vadd.f32 %v601_v44, %v1925_v18  ;;  %v2546_v17 = vld [vmem:[#allocation51_spill] sm:$0xff] }
  0xbb   : > { %2536 = vst [vmem:[#allocation35_spill] sm:$0xff] %v2104_v4  ;;  %2538 = vst [vmem:[#allocation36_spill] sm:$0xff] %v2110_v24  ;;  %v2125_v4 = vadd.f32 %v601_v44, %v2540_v11  ;;  %v2128_v12 = vadd.f32 %v601_v44, %v1933_v21  ;;  %v2131_v24 = vadd.f32 %v601_v44, %v2542_v6  ;;  %v715_v18 = vmax.f32 %v1981_v36, 0.0  ;;  %v2550_v36 = vld [vmem:[#allocation55_spill] sm:$0xff] }
  0xbc   : > { %2539 = vst [vmem:[#allocation37_spill] sm:$0xff] %v2122_v10  ;;  %v2134_v15 = vadd.f32 %v601_v44, %v1941_v23  ;;  %v2137_v16 = vadd.f32 %v601_v44, %v1945_v25  ;;  %v711_v23 = vmax.f32 %v1969_v32, 0.0  ;;  %v713_v25 = vmax.f32 %v1975_v34, 0.0  ;;  %v2549_v34 = vld [vmem:[#allocation54_spill] sm:$0xff] }
  0xbd   : > { %2541 = vst [vmem:[#allocation38_spill] sm:$0xff] %v2128_v12  ;;  %2543 = vst [vmem:[#allocation39_spill] sm:$0xff] %v2131_v24  ;;  %v714_v44 = vmax.f32 %v1978_v35, 0.0  ;;  %v716_v10 = vmax.f32 %v1984_v37, 0.0  ;;  %v717_v11 = vmax.f32 %v1987_v14, 0.0  ;;  %v718_v21 = vmax.f32 %v1990_v38, 0.0 }
  0xbe   : > { %2544 = vst [vmem:[#allocation40_spill] sm:$0xff] %v2134_v15  ;;  %2545 = vst [vmem:[#allocation41_spill] sm:$0xff] %v2137_v16  ;;  %v712_v15 = vmax.f32 %v1972_v33, 0.0  ;;  %v719_v12 = vmax.f32 %v1993_v39, 0.0  ;;  %v720_v6 = vmax.f32 %v2546_v17, 0.0  ;;  %v721_v32 = vmax.f32 %v2547_v28, 0.0 }
  0xbf   : > { %v2548_v33 = vld [vmem:[#allocation53_spill] sm:$0xff]  ;;  %v723_v22 = vmax.f32 %v2549_v34, 0.0  ;;  %v724_v35 = vmax.f32 %v2008_v31, 0.0  ;;  %v725_v29 = vmax.f32 %v2550_v36, 0.0  ;;  %v2551_v37 = vld [vmem:[#allocation56_spill] sm:$0xff]  ;;  %v727_v14 = vmax.f32 %v2017_v40, 0.0 }
  0xc0   : > { %v722_v30 = vmax.f32 %v2548_v33, 0.0  ;;  %v726_v27 = vmax.f32 %v2551_v37, 0.0  ;;  %v728_v38 = vmax.f32 %v2020_v41, 0.0  ;;  %v729_v39 = vmax.f32 %v2023_v42, 0.0 }
  0xc1   : > { %v730_v17 = vmax.f32 %v2026_v43, 0.0  ;;  %v731_v28 = vmax.f32 %v2029_v51, 0.0  ;;  %v732_v33 = vmax.f32 %v2032_v45, 0.0  ;;  %v733_v34 = vmax.f32 %v2035_v46, 0.0 }
  0xc2   : > { %v734_v31 = vmax.f32 %v2038_v47, 0.0  ;;  %v735_v36 = vmax.f32 %v2041_v48, 0.0  ;;  %v736_v37 = vmax.f32 %v2044_v49, 0.0  ;;  %v737_v40 = vmax.f32 %v2047_v50, 0.0  ;;  %v2553_v26 = vld [vmem:[#allocation36_spill] sm:$0xff] }
  0xc3   : > { %v738_v41 = vmax.f32 %v2050_v58, 0.0  ;;  %v739_v42 = vmax.f32 %v2053_v52, 0.0  ;;  %v740_v43 = vmax.f32 %v2056_v53, 0.0  ;;  %v741_v51 = vmax.f32 %v2059_v54, 0.0  ;;  %v2554_v16 = vld [vmem:[#allocation37_spill] sm:$0xff] }
  0xc4   : > { %v742_v45 = vmax.f32 %v2062_v13, 0.0  ;;  %v743_v46 = vmax.f32 %v2065_v55, 0.0  ;;  %v744_v47 = vmax.f32 %v2068_v56, 0.0  ;;  %v745_v48 = vmax.f32 %v2071_v57, 0.0  ;;  %v2555_v24 = vld [vmem:[#allocation38_spill] sm:$0xff] }
  0xc5   : > { %v746_v49 = vmax.f32 %v2074_v59, 0.0  ;;  %v747_v50 = vmax.f32 %v2077_v19, 0.0  ;;  %v748_v58 = vmax.f32 %v2080_v60, 0.0  ;;  %v749_v52 = vmax.f32 %v2083_v61, 0.0  ;;  %v2552_v59 = vld [vmem:[#allocation35_spill] sm:$0xff] }
  0xc6   : > { %v750_v53 = vmax.f32 %v2086_v62, 0.0  ;;  %v751_v54 = vmax.f32 %v2089_v63, 0.0  ;;  %v752_v13 = vmax.f32 %v2092_v0, 0.0  ;;  %v753_v55 = vmax.f32 %v2095_v1, 0.0 }
  0xc7   : > { %v754_v56 = vmax.f32 %v2098_v2, 0.0  ;;  %v755_v57 = vmax.f32 %v2101_v3, 0.0  ;;  %v756_v19 = vmax.f32 %v2552_v59, 0.0  ;;  %v757_v20 = vmax.f32 %v2107_v5, 0.0  ;;  %v2556_v3 = vld [vmem:[#allocation39_spill] sm:$0xff]  ;;  %v2557_v5 = vld [vmem:[#allocation40_spill] sm:$0xff] }
  0xc8   : > { %v758_v60 = vmax.f32 %v2553_v26, 0.0  ;;  %v759_v61 = vmax.f32 %v2113_v7, 0.0  ;;  %v760_v62 = vmax.f32 %v2116_v8, 0.0  ;;  %v761_v63 = vmax.f32 %v2119_v9, 0.0  ;;  %v2558_v7 = vld [vmem:[#allocation41_spill] sm:$0xff]  ;;  %v2559_v9 = vld [vmem:[#allocation44_spill] sm:$0xff] }
  0xc9   : > { %v762_v0 = vmax.f32 %v2554_v16, 0.0  ;;  %v763_v1 = vmax.f32 %v2125_v4, 0.0  ;;  %v764_v2 = vmax.f32 %v2555_v24, 0.0  ;;  %v765_v59 = vmax.f32 %v2556_v3, 0.0  ;;  %v2561_v4 = vld [vmem:[#allocation45_spill] sm:$0xff] }
  0xca   : > { %v766_v26 = vmax.f32 %v2557_v5, 0.0  ;;  %v767_v8 = vmax.f32 %v2558_v7, 0.0  ;;  %v2560_v16 = vmax.f32 %v2559_v9, 0.0  ;;  %v2562_v24 = vmax.f32 %v2561_v4, 0.0  ;;  %v2563_v5 = vld [vmem:[#allocation46_spill] sm:$0xff]  ;;  %v2565_v9 = vld [vmem:[#allocation47_spill] sm:$0xff] }
  0xcb   : > { %v2564_v7 = vmax.f32 %v2563_v5, 0.0  ;;  %v2566_v4 = vmax.f32 %v2565_v9, 0.0  ;;  %v2569_v9 = vld [vmem:[#allocation49_spill] sm:$0xff] }
  0xcc   : > { %v1394_v3 = vpack.c.bf16 %v2562_v24, %v2560_v16  ;;  %v2567_v24 = vld [vmem:[#allocation48_spill] sm:$0xff] }
  0xcd   : > { %v1395_v16 = vpack.c.bf16 %v2566_v4, %v2564_v7  ;;  %v2568_v5 = vmax.f32 %v2567_v24, 0.0  ;;  %v2570_v4 = vmax.f32 %v2569_v9, 0.0  ;;  %v2571_v24 = vld [vmem:[#allocation50_spill] sm:$0xff] }
  0xce   : > { %v2572_v9 = vmax.f32 %v2571_v24, 0.0  ;;  %v1399_v24 = vpack.c.bf16 %v715_v18, %v714_v44  ;;  %v1404_v18 = vpack.c.bf16 %v725_v29, %v724_v35  ;;  %v1405_v44 = vpack.c.bf16 %v727_v14, %v726_v27  ;;  %1120 = vst [vmem:[%s2221_s10] sm:$0xff] %v1394_v3 }
  0xcf   : > { %v1396_v7 = vpack.c.bf16 %v2570_v4, %v2568_v5  ;;  %v1398_v5 = vpack.c.bf16 %v713_v25, %v712_v15  ;;  %v1402_v15 = vpack.c.bf16 %v721_v32, %v720_v6  ;;  %v1403_v25 = vpack.c.bf16 %v723_v22, %v722_v30  ;;  %1121 = vst [vmem:[%s2221_s10 + $0x8] sm:$0xff] %v1395_v16  ;;  %v2589_v16 = vld [vmem:[#allocation19_spill] sm:$0xff] }
  0xd0   : > { %v1397_v4 = vpack.c.bf16 %v711_v23, %v2572_v9  ;;  %v1400_v9 = vpack.c.bf16 %v717_v11, %v716_v10  ;;  %v1401_v23 = vpack.c.bf16 %v719_v12, %v718_v21  ;;  %v1406_v22 = vpack.c.bf16 %v729_v39, %v728_v38  ;;  %1125 = vst [vmem:[%s2221_s10 + $0x28] sm:$0xff] %v1399_v24  ;;  %v196_v38 = vpop.permute.xlu0 %195  ;;  %v2591_v24 = vld [vmem:[#allocation21_spill] sm:$0xff] }
  0xd1   : > { %1122 = vst [vmem:[%s2221_s10 + $0x10] sm:$0xff] %v1396_v7  ;;  %v1407_v27 = vpack.c.bf16 %v731_v28, %v730_v17  ;;  %v1408_v29 = vpack.c.bf16 %v733_v34, %v732_v33  ;;  %v1409_v30 = vpack.c.bf16 %v735_v36, %v734_v31  ;;  %1124 = vst [vmem:[%s2221_s10 + $0x20] sm:$0xff] %v1398_v5 }
  0xd2   : > { %1123 = vst [vmem:[%s2221_s10 + $0x18] sm:$0xff] %v1397_v4  ;;  %1126 = vst [vmem:[%s2221_s10 + $0x30] sm:$0xff] %v1400_v9  ;;  %v1410_v10 = vpack.c.bf16 %v737_v40, %v736_v37  ;;  %v1411_v12 = vpack.c.bf16 %v739_v42, %v738_v41  ;;  %v1412_v11 = vpack.c.bf16 %v741_v51, %v740_v43  ;;  %v2574_v41 = vld [vmem:[#allocation4_spill] sm:$0xff]  ;;  %v2575_v43 = vld [vmem:[#allocation5_spill] sm:$0xff] }
  0xd3   : > { %1127 = vst [vmem:[%s2221_s10 + $0x38] sm:$0xff] %v1401_v23  ;;  %v1413_v21 = vpack.c.bf16 %v743_v46, %v742_v45  ;;  %1128 = vst [vmem:[%s2221_s10 + $0x40] sm:$0xff] %v1402_v15  ;;  %v1414_v6 = vpack.c.bf16 %v745_v48, %v744_v47  ;;  %v1415_v32 = vpack.c.bf16 %v747_v50, %v746_v49  ;;  %v2576_v45 = vld [vmem:[#allocation6_spill] sm:$0xff]  ;;  %v2577_v47 = vld [vmem:[#allocation7_spill] sm:$0xff] }
  0xd4   : > { %1129 = vst [vmem:[%s2221_s10 + $0x48] sm:$0xff] %v1403_v25  ;;  %1130 = vst [vmem:[%s2221_s10 + $0x50] sm:$0xff] %v1404_v18  ;;  %v1416_v35 = vpack.c.bf16 %v749_v52, %v748_v58  ;;  %v1417_v14 = vpack.c.bf16 %v751_v54, %v750_v53  ;;  %v1418_v39 = vpack.c.bf16 %v753_v55, %v752_v13  ;;  %v2578_v49 = vld [vmem:[#allocation8_spill] sm:$0xff]  ;;  %v2579_v58 = vld [vmem:[#allocation9_spill] sm:$0xff]  ;;  %v606_v25 = vpop.permute.xlu0 %605 }
  0xd5   : > { %1131 = vst [vmem:[%s2221_s10 + $0x58] sm:$0xff] %v1405_v44  ;;  %1132 = vst [vmem:[%s2221_s10 + $0x60] sm:$0xff] %v1406_v22  ;;  %v1419_v17 = vpack.c.bf16 %v755_v57, %v754_v56  ;;  %v1420_v28 = vpack.c.bf16 %v757_v20, %v756_v19  ;;  %v1421_v33 = vpack.c.bf16 %v759_v61, %v758_v60  ;;  %v2573_v20 = vld [vmem:[#allocation3_spill] sm:$0xff]  ;;  %v2580_v53 = vld [vmem:[#allocation10_spill] sm:$0xff] }
  0xd6   : > { %1133 = vst [vmem:[%s2221_s10 + $0x68] sm:$0xff] %v1407_v27  ;;  %1134 = vst [vmem:[%s2221_s10 + $0x70] sm:$0xff] %v1408_v29  ;;  %v1422_v34 = vpack.c.bf16 %v761_v63, %v760_v62  ;;  %v1423_v31 = vpack.c.bf16 %v763_v1, %v762_v0  ;;  %v1424_v36 = vpack.c.bf16 %v765_v59, %v764_v2  ;;  %v2581_v13 = vld [vmem:[#allocation11_spill] sm:$0xff]  ;;  %v2582_v56 = vld [vmem:[#allocation12_spill] sm:$0xff] }
  0xd7   : > { %1135 = vst [vmem:[%s2221_s10 + $0x78] sm:$0xff] %v1409_v30  ;;  %1136 = vst [vmem:[%s2221_s10 + $0x80] sm:$0xff] %v1410_v10  ;;  %v1425_v37 = vpack.c.bf16 %v767_v8, %v766_v26  ;;  %v558_v40 = vmul.f32 %v2573_v20, %v196_v38  ;;  %v559_v42 = vmul.f32 %v2574_v41, %v196_v38  ;;  %v2583_v19 = vld [vmem:[#allocation13_spill] sm:$0xff]  ;;  %v2584_v61 = vld [vmem:[#allocation14_spill] sm:$0xff] }
  0xd8   : > { %1137 = vst [vmem:[%s2221_s10 + $0x88] sm:$0xff] %v1411_v12  ;;  %1138 = vst [vmem:[%s2221_s10 + $0x90] sm:$0xff] %v1412_v11  ;;  %v560_v51 = vmul.f32 %v2575_v43, %v196_v38  ;;  %v561_v46 = vmul.f32 %v2576_v45, %v196_v38  ;;  %v562_v48 = vmul.f32 %v2577_v47, %v196_v38  ;;  %v2585_v63 = vld [vmem:[#allocation15_spill] sm:$0xff]  ;;  %v2586_v1 = vld [vmem:[#allocation16_spill] sm:$0xff] }
  0xd9   : > { %1139 = vst [vmem:[%s2221_s10 + $0x98] sm:$0xff] %v1413_v21  ;;  %1140 = vst [vmem:[%s2221_s10 + $0xa0] sm:$0xff] %v1414_v6  ;;  %v563_v50 = vmul.f32 %v2578_v49, %v196_v38  ;;  %v564_v52 = vmul.f32 %v2579_v58, %v196_v38  ;;  %v565_v54 = vmul.f32 %v2580_v53, %v196_v38  ;;  %v2587_v59 = vld [vmem:[#allocation17_spill] sm:$0xff]  ;;  %v2588_v8 = vld [vmem:[#allocation18_spill] sm:$0xff] }
  0xda   : > { %1141 = vst [vmem:[%s2221_s10 + $0xa8] sm:$0xff] %v1415_v32  ;;  %1142 = vst [vmem:[%s2221_s10 + $0xb0] sm:$0xff] %v1416_v35  ;;  %v566_v55 = vmul.f32 %v2581_v13, %v196_v38  ;;  %v567_v57 = vmul.f32 %v2582_v56, %v196_v38  ;;  %v568_v60 = vmul.f32 %v2583_v19, %v196_v38  ;;  %v2590_v4 = vld [vmem:[#allocation20_spill] sm:$0xff]  ;;  %v2592_v23 = vld [vmem:[#allocation22_spill] sm:$0xff] }
  0xdb   : > { %1143 = vst [vmem:[%s2221_s10 + $0xb8] sm:$0xff] %v1417_v14  ;;  %1144 = vst [vmem:[%s2221_s10 + $0xc0] sm:$0xff] %v1418_v39  ;;  %v569_v62 = vmul.f32 %v2584_v61, %v196_v38  ;;  %v570_v0 = vmul.f32 %v2585_v63, %v196_v38  ;;  %v571_v2 = vmul.f32 %v2586_v1, %v196_v38  ;;  %v2593_v18 = vld [vmem:[#allocation23_spill] sm:$0xff]  ;;  %v2594_v22 = vld [vmem:[#allocation24_spill] sm:$0xff] }
  0xdc   : > { %1145 = vst [vmem:[%s2221_s10 + $0xc8] sm:$0xff] %v1419_v17  ;;  %1146 = vst [vmem:[%s2221_s10 + $0xd0] sm:$0xff] %v1420_v28  ;;  %v572_v26 = vmul.f32 %v2587_v59, %v196_v38  ;;  %v573_v3 = vmul.f32 %v2588_v8, %v196_v38  ;;  %v574_v7 = vmul.f32 %v2589_v16, %v196_v38  ;;  %v2595_v29 = vld [vmem:[#allocation25_spill] sm:$0xff]  ;;  %v2596_v10 = vld [vmem:[#allocation26_spill] sm:$0xff] }
  0xdd   : > { %1147 = vst [vmem:[%s2221_s10 + $0xd8] sm:$0xff] %v1421_v33  ;;  %1148 = vst [vmem:[%s2221_s10 + $0xe0] sm:$0xff] %v1422_v34  ;;  %v575_v5 = vmul.f32 %v2590_v4, %v196_v38  ;;  %v576_v9 = vmul.f32 %v2591_v24, %v196_v38  ;;  %v577_v15 = vmul.f32 %v2592_v23, %v196_v38  ;;  %v2597_v11 = vld [vmem:[#allocation27_spill] sm:$0xff]  ;;  %v2598_v6 = vld [vmem:[#allocation28_spill] sm:$0xff] }
  0xde   : > { %1149 = vst [vmem:[%s2221_s10 + $0xe8] sm:$0xff] %v1423_v31  ;;  %1150 = vst [vmem:[%s2221_s10 + $0xf0] sm:$0xff] %v1424_v36  ;;  %v578_v44 = vmul.f32 %v2593_v18, %v196_v38  ;;  %v579_v27 = vmul.f32 %v2594_v22, %v196_v38  ;;  %v580_v30 = vmul.f32 %v2595_v29, %v196_v38  ;;  %v2599_v35 = vld [vmem:[#allocation29_spill] sm:$0xff]  ;;  %v2600_v39 = vld [vmem:[#allocation30_spill] sm:$0xff] }
  0xdf   : > { %1151 = vst [vmem:[%s2221_s10 + $0xf8] sm:$0xff] %v1425_v37  ;;  %v581_v12 = vmul.f32 %v2596_v10, %v196_v38  ;;  %v582_v21 = vmul.f32 %v2597_v11, %v196_v38  ;;  %v583_v32 = vmul.f32 %v2598_v6, %v196_v38  ;;  %v584_v14 = vmul.f32 %v2599_v35, %v196_v38  ;;  %v2601_v28 = vld [vmem:[#allocation31_spill] sm:$0xff]  ;;  %v2602_v34 = vld [vmem:[#allocation32_spill] sm:$0xff]  ;;  %v2603_v36 = vld [vmem:[#allocation33_spill] sm:$0xff] }
  0xe0   : > { %v585_v17 = vmul.f32 %v2600_v39, %v196_v38  ;;  %v586_v33 = vmul.f32 %v2601_v28, %v196_v38  ;;  %v587_v31 = vmul.f32 %v2602_v34, %v196_v38  ;;  %v588_v37 = vmul.f32 %v2603_v36, %v196_v38  ;;  %v2604_v20 = vld [vmem:[#allocation34_spill] sm:$0xff] }
  0xe1   : > { %v589_v41 = vmul.f32 %v2604_v20, %v196_v38  ;;  %v2287_v43 = vadd.f32 %v606_v25, %v558_v40  ;;  %v2289_v45 = vadd.f32 %v606_v25, %v559_v42  ;;  %v2291_v47 = vadd.f32 %v606_v25, %v560_v51 }
  0xe2   : > { %v2293_v49 = vadd.f32 %v606_v25, %v561_v46  ;;  %v2295_v58 = vadd.f32 %v606_v25, %v562_v48  ;;  %v677_v53 = vadd.f32 %v606_v25, %v563_v50  ;;  %v678_v13 = vadd.f32 %v606_v25, %v564_v52 }
  0xe3   : > { %v679_v56 = vadd.f32 %v606_v25, %v565_v54  ;;  %v680_v19 = vadd.f32 %v606_v25, %v566_v55  ;;  %v681_v61 = vadd.f32 %v606_v25, %v567_v57  ;;  %v682_v63 = vadd.f32 %v606_v25, %v568_v60 }
  0xe4   : > { %v683_v1 = vadd.f32 %v606_v25, %v569_v62  ;;  %v684_v59 = vadd.f32 %v606_v25, %v570_v0  ;;  %v685_v8 = vadd.f32 %v606_v25, %v571_v2  ;;  %v686_v38 = vadd.f32 %v606_v25, %v572_v26 }
  0xe5   : > { %v687_v40 = vadd.f32 %v606_v25, %v573_v3  ;;  %v688_v16 = vadd.f32 %v606_v25, %v574_v7  ;;  %v689_v42 = vadd.f32 %v606_v25, %v575_v5  ;;  %v690_v4 = vadd.f32 %v606_v25, %v576_v9 }
  0xe6   : > { %v691_v51 = vadd.f32 %v606_v25, %v577_v15  ;;  %v692_v24 = vadd.f32 %v606_v25, %v578_v44  ;;  %v693_v46 = vadd.f32 %v606_v25, %v579_v27  ;;  %v694_v23 = vadd.f32 %v606_v25, %v580_v30 }
  0xe7   : > { %v695_v48 = vadd.f32 %v606_v25, %v581_v12  ;;  %v696_v18 = vadd.f32 %v606_v25, %v582_v21  ;;  %v697_v50 = vadd.f32 %v606_v25, %v583_v32  ;;  %v698_v52 = vadd.f32 %v606_v25, %v584_v14 }
  0xe8   : > { %v699_v54 = vadd.f32 %v606_v25, %v585_v17  ;;  %v700_v55 = vadd.f32 %v606_v25, %v586_v33  ;;  %v701_v57 = vadd.f32 %v606_v25, %v587_v31  ;;  %v702_v60 = vadd.f32 %v606_v25, %v588_v37 }
  0xe9   : > { %v703_v62 = vadd.f32 %v606_v25, %v589_v41  ;;  %v768_v0 = vmax.f32 %v2287_v43, 0.0  ;;  %v769_v2 = vmax.f32 %v2289_v45, 0.0  ;;  %v770_v26 = vmax.f32 %v2291_v47, 0.0 }
  0xea   : > { %v771_v3 = vmax.f32 %v2293_v49, 0.0  ;;  %v772_v7 = vmax.f32 %v2295_v58, 0.0  ;;  %v773_v5 = vmax.f32 %v677_v53, 0.0  ;;  %v774_v9 = vmax.f32 %v678_v13, 0.0 }
  0xeb   : > { %v775_v15 = vmax.f32 %v679_v56, 0.0  ;;  %v776_v44 = vmax.f32 %v680_v19, 0.0  ;;  %v777_v22 = vmax.f32 %v681_v61, 0.0  ;;  %v778_v27 = vmax.f32 %v682_v63, 0.0 }
  0xec   : > { %v779_v29 = vmax.f32 %v683_v1, 0.0  ;;  %v780_v30 = vmax.f32 %v684_v59, 0.0  ;;  %v781_v10 = vmax.f32 %v685_v8, 0.0  ;;  %v782_v25 = vmax.f32 %v686_v38, 0.0 }
  0xed   : > { %v783_v12 = vmax.f32 %v687_v40, 0.0  ;;  %v784_v11 = vmax.f32 %v688_v16, 0.0  ;;  %v785_v21 = vmax.f32 %v689_v42, 0.0  ;;  %v786_v6 = vmax.f32 %v690_v4, 0.0  ;;  %v1190_v16 = vld [vmem:[%s2221_s10] sm:$0xff] (%p1550_p4)  ;;  %v1192_v42 = vld [vmem:[%s2221_s10 + $0x8] sm:$0xff] (%p1550_p4) }
  0xee   : > { %v787_v32 = vmax.f32 %v691_v51, 0.0  ;;  %v788_v35 = vmax.f32 %v692_v24, 0.0  ;;  %v789_v14 = vmax.f32 %v693_v46, 0.0  ;;  %v790_v39 = vmax.f32 %v694_v23, 0.0  ;;  %v1194_v4 = vld [vmem:[%s2221_s10 + $0x10] sm:$0xff] (%p1550_p4)  ;;  %v1196_v51 = vld [vmem:[%s2221_s10 + $0x18] sm:$0xff] (%p1550_p4)  ;;  %1191 = vst [vmem:[%s2327_s17] sm:$0xff] (%p1550_p4), %v1190_v16 }
  0xef   : > { %v791_v17 = vmax.f32 %v695_v48, 0.0  ;;  %v792_v28 = vmax.f32 %v696_v18, 0.0  ;;  %v793_v33 = vmax.f32 %v697_v50, 0.0  ;;  %v794_v34 = vmax.f32 %v698_v52, 0.0  ;;  %v1198_v24 = vld [vmem:[%s2221_s10 + $0x20] sm:$0xff] (%p1550_p4)  ;;  %v1200_v46 = vld [vmem:[%s2221_s10 + $0x28] sm:$0xff] (%p1550_p4) }
  0xf0   : > { %v795_v31 = vmax.f32 %v699_v54, 0.0  ;;  %v796_v36 = vmax.f32 %v700_v55, 0.0  ;;  %v797_v37 = vmax.f32 %v701_v57, 0.0  ;;  %v798_v20 = vmax.f32 %v702_v60, 0.0  ;;  %1193 = vst [vmem:[%s2327_s17 + $0x8] sm:$0xff] (%p1550_p4), %v1192_v42  ;;  %1195 = vst [vmem:[%s2327_s17 + $0x10] sm:$0xff] (%p1550_p4), %v1194_v4 }
  0xf1   : > { %v799_v41 = vmax.f32 %v703_v62, 0.0  ;;  %v1426_v43 = vpack.c.bf16 %v769_v2, %v768_v0  ;;  %v1427_v45 = vpack.c.bf16 %v771_v3, %v770_v26  ;;  %v1428_v47 = vpack.c.bf16 %v773_v5, %v772_v7  ;;  %1197 = vst [vmem:[%s2327_s17 + $0x18] sm:$0xff] (%p1550_p4), %v1196_v51  ;;  %1199 = vst [vmem:[%s2327_s17 + $0x20] sm:$0xff] (%p1550_p4), %v1198_v24  ;;  %v1202_v23 = vld [vmem:[%s2221_s10 + $0x30] sm:$0xff] (%p1550_p4)  ;;  %v1204_v48 = vld [vmem:[%s2221_s10 + $0x38] sm:$0xff] (%p1550_p4) }
  0xf2   : > { %v1429_v49 = vpack.c.bf16 %v775_v15, %v774_v9  ;;  %v1430_v58 = vpack.c.bf16 %v777_v22, %v776_v44  ;;  %v1431_v53 = vpack.c.bf16 %v779_v29, %v778_v27  ;;  %v1432_v13 = vpack.c.bf16 %v781_v10, %v780_v30  ;;  %1201 = vst [vmem:[%s2327_s17 + $0x28] sm:$0xff] (%p1550_p4), %v1200_v46  ;;  %v1206_v18 = vld [vmem:[%s2221_s10 + $0x40] sm:$0xff] (%p1550_p4)  ;;  %v1208_v50 = vld [vmem:[%s2221_s10 + $0x48] sm:$0xff] (%p1550_p4)  ;;  %v1210_v52 = vld [vmem:[%s2221_s10 + $0x50] sm:$0xff] (%p1550_p4) }
  0xf3   : > { %v1433_v56 = vpack.c.bf16 %v783_v12, %v782_v25  ;;  %v1434_v19 = vpack.c.bf16 %v785_v21, %v784_v11  ;;  %v1435_v61 = vpack.c.bf16 %v787_v32, %v786_v6  ;;  %v1436_v63 = vpack.c.bf16 %v789_v14, %v788_v35  ;;  %1152 = vst [vmem:[%s2221_s10 + $0x100] sm:$0x33] %v1426_v43  ;;  %v1212_v54 = vld [vmem:[%s2221_s10 + $0x58] sm:$0xff] (%p1550_p4)  ;;  %v1214_v55 = vld [vmem:[%s2221_s10 + $0x60] sm:$0xff] (%p1550_p4)  ;;  %v1216_v57 = vld [vmem:[%s2221_s10 + $0x68] sm:$0xff] (%p1550_p4) }
  0xf4   : > { %v1437_v1 = vpack.c.bf16 %v791_v17, %v790_v39  ;;  %1153 = vst [vmem:[%s2221_s10 + $0x108] sm:$0x33] %v1427_v45  ;;  %1154 = vst [vmem:[%s2221_s10 + $0x110] sm:$0x33] %v1428_v47  ;;  %v1438_v59 = vpack.c.bf16 %v793_v33, %v792_v28  ;;  %v1439_v8 = vpack.c.bf16 %v795_v31, %v794_v34  ;;  %v1218_v60 = vld [vmem:[%s2221_s10 + $0x70] sm:$0xff] (%p1550_p4)  ;;  %v1220_v62 = vld [vmem:[%s2221_s10 + $0x78] sm:$0xff] (%p1550_p4) }
  0xf5   : > { %1155 = vst [vmem:[%s2221_s10 + $0x118] sm:$0x33] %v1429_v49  ;;  %v1440_v38 = vpack.c.bf16 %v797_v37, %v796_v36  ;;  %v1441_v40 = vpack.c.bf16 %v799_v41, %v798_v20  ;;  %1156 = vst [vmem:[%s2221_s10 + $0x120] sm:$0x33] %v1430_v58  ;;  %1174 = sbr.rel (!%p1550_p4) target bundleno = 273 (0x111), region = 36  ;;  %v1222_v0 = vld [vmem:[%s2221_s10 + $0x80] sm:$0xff] (%p1550_p4) }
  0xf6   : > { %1157 = vst [vmem:[%s2221_s10 + $0x128] sm:$0x33] %v1431_v53  ;;  %1158 = vst [vmem:[%s2221_s10 + $0x130] sm:$0x33] %v1432_v13  ;;  %v1224_v2 = vld [vmem:[%s2221_s10 + $0x88] sm:$0xff] (%p1550_p4)  ;;  %v1226_v26 = vld [vmem:[%s2221_s10 + $0x90] sm:$0xff] (%p1550_p4) }
  0xf7   : > { %1159 = vst [vmem:[%s2221_s10 + $0x138] sm:$0x33] %v1433_v56  ;;  %1160 = vst [vmem:[%s2221_s10 + $0x140] sm:$0x33] %v1434_v19  ;;  %v1228_v3 = vld [vmem:[%s2221_s10 + $0x98] sm:$0xff] (%p1550_p4)  ;;  %v1230_v7 = vld [vmem:[%s2221_s10 + $0xa0] sm:$0xff] (%p1550_p4) }
  0xf8   : > { %1161 = vst [vmem:[%s2221_s10 + $0x148] sm:$0x33] %v1435_v61  ;;  %1162 = vst [vmem:[%s2221_s10 + $0x150] sm:$0x33] %v1436_v63  ;;  %v1232_v5 = vld [vmem:[%s2221_s10 + $0xa8] sm:$0xff] (%p1550_p4)  ;;  %v1234_v9 = vld [vmem:[%s2221_s10 + $0xb0] sm:$0xff] (%p1550_p4) }
  0xf9   : > { %1163 = vst [vmem:[%s2221_s10 + $0x158] sm:$0x33] %v1437_v1  ;;  %1164 = vst [vmem:[%s2221_s10 + $0x160] sm:$0x33] %v1438_v59  ;;  %v1236_v15 = vld [vmem:[%s2221_s10 + $0xb8] sm:$0xff] (%p1550_p4)  ;;  %v1238_v44 = vld [vmem:[%s2221_s10 + $0xc0] sm:$0xff] (%p1550_p4) }
  0xfa   : > { %1165 = vst [vmem:[%s2221_s10 + $0x168] sm:$0x33] %v1439_v8  ;;  %1166 = vst [vmem:[%s2221_s10 + $0x170] sm:$0x33] %v1440_v38  ;;  %v1240_v22 = vld [vmem:[%s2221_s10 + $0xc8] sm:$0xff] (%p1550_p4)  ;;  %v1242_v27 = vld [vmem:[%s2221_s10 + $0xd0] sm:$0xff] (%p1550_p4) }
  0xfb   : > { %1167 = vst [vmem:[%s2221_s10 + $0x178] sm:$0x33] %v1441_v40  ;;  %1203 = vst [vmem:[%s2327_s17 + $0x30] sm:$0xff] (%p1550_p4), %v1202_v23  ;;  %v1244_v29 = vld [vmem:[%s2221_s10 + $0xd8] sm:$0xff] (%p1550_p4)  ;;  %v1246_v30 = vld [vmem:[%s2221_s10 + $0xe0] sm:$0xff] (%p1550_p4) }
  0xfc   : > { %1205 = vst [vmem:[%s2327_s17 + $0x38] sm:$0xff] %v1204_v48  ;;  %1207 = vst [vmem:[%s2327_s17 + $0x40] sm:$0xff] %v1206_v18  ;;  %v1248_v10 = vld [vmem:[%s2221_s10 + $0xe8] sm:$0xff]  ;;  %v1250_v25 = vld [vmem:[%s2221_s10 + $0xf0] sm:$0xff] }
  0xfd   : > { %1209 = vst [vmem:[%s2327_s17 + $0x48] sm:$0xff] %v1208_v50  ;;  %1211 = vst [vmem:[%s2327_s17 + $0x50] sm:$0xff] %v1210_v52  ;;  %v1252_v12 = vld [vmem:[%s2221_s10 + $0xf8] sm:$0xff]  ;;  %v1254_v11 = vld [vmem:[%s2221_s10 + $0x100] sm:$0xff] }
  0xfe   : > { %1213 = vst [vmem:[%s2327_s17 + $0x58] sm:$0xff] %v1212_v54  ;;  %1215 = vst [vmem:[%s2327_s17 + $0x60] sm:$0xff] %v1214_v55  ;;  %v1256_v21 = vld [vmem:[%s2221_s10 + $0x108] sm:$0xff]  ;;  %v1258_v6 = vld [vmem:[%s2221_s10 + $0x110] sm:$0xff] }
  0xff   : > { %1217 = vst [vmem:[%s2327_s17 + $0x68] sm:$0xff] %v1216_v57  ;;  %1219 = vst [vmem:[%s2327_s17 + $0x70] sm:$0xff] %v1218_v60  ;;  %v1260_v32 = vld [vmem:[%s2221_s10 + $0x118] sm:$0xff]  ;;  %v1262_v35 = vld [vmem:[%s2221_s10 + $0x120] sm:$0xff] }
 0x100   : > { %1221 = vst [vmem:[%s2327_s17 + $0x78] sm:$0xff] %v1220_v62  ;;  %1223 = vst [vmem:[%s2327_s17 + $0x100] sm:$0xff] %v1222_v0  ;;  %v1264_v14 = vld [vmem:[%s2221_s10 + $0x128] sm:$0xff]  ;;  %v1266_v39 = vld [vmem:[%s2221_s10 + $0x130] sm:$0xff] }
 0x101   : > { %1225 = vst [vmem:[%s2327_s17 + $0x108] sm:$0xff] %v1224_v2  ;;  %1227 = vst [vmem:[%s2327_s17 + $0x110] sm:$0xff] %v1226_v26  ;;  %v1268_v17 = vld [vmem:[%s2221_s10 + $0x138] sm:$0xff]  ;;  %v1270_v28 = vld [vmem:[%s2221_s10 + $0x140] sm:$0xff] }
 0x102   : > { %1229 = vst [vmem:[%s2327_s17 + $0x118] sm:$0xff] %v1228_v3  ;;  %1231 = vst [vmem:[%s2327_s17 + $0x120] sm:$0xff] %v1230_v7  ;;  %v1272_v33 = vld [vmem:[%s2221_s10 + $0x148] sm:$0xff]  ;;  %v1274_v34 = vld [vmem:[%s2221_s10 + $0x150] sm:$0xff] }
 0x103   : > { %1233 = vst [vmem:[%s2327_s17 + $0x128] sm:$0xff] %v1232_v5  ;;  %1235 = vst [vmem:[%s2327_s17 + $0x130] sm:$0xff] %v1234_v9  ;;  %v1276_v31 = vld [vmem:[%s2221_s10 + $0x158] sm:$0xff]  ;;  %v1278_v36 = vld [vmem:[%s2221_s10 + $0x160] sm:$0xff] }
 0x104   : > { %1237 = vst [vmem:[%s2327_s17 + $0x138] sm:$0xff] %v1236_v15  ;;  %1239 = vst [vmem:[%s2327_s17 + $0x140] sm:$0xff] %v1238_v44  ;;  %v1280_v37 = vld [vmem:[%s2221_s10 + $0x168] sm:$0xff]  ;;  %v1282_v20 = vld [vmem:[%s2221_s10 + $0x170] sm:$0xff] }
 0x105   : > { %1241 = vst [vmem:[%s2327_s17 + $0x148] sm:$0xff] %v1240_v22  ;;  %1243 = vst [vmem:[%s2327_s17 + $0x150] sm:$0xff] %v1242_v27  ;;  %v1284_v41 = vld [vmem:[%s2221_s10 + $0x178] sm:$0xff] }
 0x106   : > { %1245 = vst [vmem:[%s2327_s17 + $0x158] sm:$0xff] %v1244_v29  ;;  %1247 = vst [vmem:[%s2327_s17 + $0x160] sm:$0xff] %v1246_v30 }
 0x107   : > { %1249 = vst [vmem:[%s2327_s17 + $0x168] sm:$0xff] %v1248_v10  ;;  %1251 = vst [vmem:[%s2327_s17 + $0x170] sm:$0xff] %v1250_v25 }
 0x108   : > { %1253 = vst [vmem:[%s2327_s17 + $0x178] sm:$0xff] %v1252_v12  ;;  %1255 = vst [vmem:[%s2327_s17 + $0x200] sm:$0xff] %v1254_v11 }
 0x109   : > { %1257 = vst [vmem:[%s2327_s17 + $0x208] sm:$0xff] %v1256_v21  ;;  %1259 = vst [vmem:[%s2327_s17 + $0x210] sm:$0xff] %v1258_v6 }
 0x10a   : > { %1261 = vst [vmem:[%s2327_s17 + $0x218] sm:$0xff] %v1260_v32  ;;  %1263 = vst [vmem:[%s2327_s17 + $0x220] sm:$0xff] %v1262_v35 }
 0x10b   : > { %1265 = vst [vmem:[%s2327_s17 + $0x228] sm:$0xff] %v1264_v14  ;;  %1267 = vst [vmem:[%s2327_s17 + $0x230] sm:$0xff] %v1266_v39 }
 0x10c   : > { %1269 = vst [vmem:[%s2327_s17 + $0x238] sm:$0xff] %v1268_v17  ;;  %1271 = vst [vmem:[%s2327_s17 + $0x240] sm:$0xff] %v1270_v28 }
 0x10d   : > { %1273 = vst [vmem:[%s2327_s17 + $0x248] sm:$0xff] %v1272_v33  ;;  %1275 = vst [vmem:[%s2327_s17 + $0x250] sm:$0xff] %v1274_v34 }
 0x10e   : > { %1277 = vst [vmem:[%s2327_s17 + $0x258] sm:$0xff] %v1276_v31  ;;  %1279 = vst [vmem:[%s2327_s17 + $0x260] sm:$0xff] %v1278_v36 }
 0x10f   : > { %1281 = vst [vmem:[%s2327_s17 + $0x268] sm:$0xff] %v1280_v37  ;;  %1283 = vst [vmem:[%s2327_s17 + $0x270] sm:$0xff] %v1282_v20 }
 0x110   : > { %1285 = vst [vmem:[%s2327_s17 + $0x278] sm:$0xff] %v1284_v41 }
 0x111 PF: > { %p10_p8 = scmp.ge.s32.totalorder %s1540_s16, 4   ;;  %s2605_s12 = smov %s1498_s13 }
 0x112   : > { %s2606_s13 = smov %s1548_s19  ;;  %s2607_s14 = smov %s1540_s16 }
 0x113   :  { %12 = sbr.rel (!%p10_p8) target bundleno = 2 (0x2), region = 85 }

// kernel: cond1_forward.20
= control target key start
LH: loop header
LB: loop body
LE: loop exit
PB: predicated region body
PF: predicated region fallthrough
CT: control target
= control target key end

     0   :  { %v36_v0 = vlaneseq  ;;  %v686_v1 = vmov 1983009808   ;;  %v687_v3 = vmov 0   ;;  %vm112_vm0 = vcmask 1041408   ;;  %s813_s0 = inlined_call_operand.vmem [shape: bf16[4,2178], index: 0, kind: input, shape index: {}]   ;;  %s814_s2 = inlined_call_operand.vmem [shape: f32[8,1], index: 2, kind: input, shape index: {}]   ;;  %s815_s1 = inlined_call_operand.vmem [shape: bf16[8,4], index: 1, kind: input, shape index: {}]   ;;  %s816_s3 = inlined_call_operand.vmem [shape: bf16[8,2178], index: 3, kind: output, shape index: {}]  }
   0x1   :  { %v34_v2 = vunpack.c.l.s4 %v686_v1  ;;  %199 = vmatprep.mubr.bf16.mxu0 %v687_v3  ;;  %240 = vmatprep.mubr.bf16.mxu1 %v687_v3  ;;  %v16_v4 = vld [vmem:[%s813_s0] sm:$0xff]  ;;  %v17_v6 = vld [vmem:[%s813_s0 + $0x8] sm:$0xff]  ;;  %v18_v12 = vld [vmem:[%s813_s0 + $0x10] sm:$0xff]  ;;  %vm108_vm1 = vcmask 31744   ;;  %vm634_vm2 = vcmask 1043456   ;;  %vm635_vm3 = vcmask 15364  }
   0x2   :  { %v37_v5 = vshrl.u32 %v36_v0, 7  ;;  %681 = vset.pattern.permute.xlu0 %v687_v3  ;;  %v21_v7 = vld [vmem:[%s814_s2] sm:$0xff]  ;;  %v32_v9 = vcombine.high %v16_v4, %v16_v4  ;;  %v49_v10 = vcombine.high %v17_v6, %v17_v6  ;;  %v66_v13 = vcombine.high %v18_v12, %v18_v12  ;;  %v19_v29 = vld [vmem:[%s813_s0 + $0x18] sm:$0xff]  ;;  %vm636_vm4 = vmor %vm635_vm3, %vm634_vm2 }
   0x3   :  { %v35_v8 = vunpack.c.0.s8 %v34_v2  ;;  %24 = vperm.xlu0 %681, %v21_v7   ;;  %v15_v26 = vld [vmem:[%s815_s1] sm:$0xf]  ;;  %v83_v32 = vcombine.high %v19_v29, %v19_v29 }
   0x4   :  { %v642_v39 = vld.sshfl [vmem:[%s813_s0 + $0x20] sm:$0x33 pattern:$0x76325410] }
   0x5   :  { %v38_v11 = vsub.s32 %v35_v8, %v37_v5  ;;  %v107_v41 = vcombine.high %v642_v39, %v642_v39  ;;  %v162_v43 = vsel %vm112_vm0, %v642_v39, 0 }
   0x7   :  { %v39_v14 = vrot.slane %v16_v4, %v38_v11  ;;  %v56_v15 = vrot.slane %v17_v6, %v38_v11  ;;  %v46_v16 = vrot.slane %v32_v9, %v38_v11  ;;  %v63_v17 = vrot.slane %v49_v10, %v38_v11 }
   0x8   :  { %v73_v21 = vrot.slane %v18_v12, %v38_v11  ;;  %v80_v25 = vrot.slane %v66_v13, %v38_v11  ;;  %v90_v33 = vrot.slane %v19_v29, %v38_v11  ;;  %v97_v34 = vrot.slane %v83_v32, %v38_v11 }
   0x9   :  { %v47_v18 = vcombine.high %v39_v14, %v39_v14  ;;  %v114_v19 = vsel %vm112_vm0, %v39_v14, 0  ;;  %v64_v20 = vcombine.high %v56_v15, %v56_v15  ;;  %v48_v22 = vcombine.high %v46_v16, %v46_v16 }
   0xa   :  { %v120_v23 = vsel %vm112_vm0, %v46_v16, 0  ;;  %v65_v24 = vcombine.high %v63_v17, %v63_v17  ;;  %v126_v27 = vsel %vm112_vm0, %v56_v15, 0  ;;  %v81_v28 = vcombine.high %v73_v21, %v73_v21 }
   0xb   :  { %643 = vmatprep.subr.msk.bf16.mxu0 %vm112_vm0, %v47_v18  ;;  %645 = vmatprep.subr.msk.bf16.mxu1 %vm112_vm0, %v48_v22  ;;  %v132_v30 = vsel %vm112_vm0, %v63_v17, 0  ;;  %v82_v31 = vcombine.high %v80_v25, %v80_v25  ;;  %v138_v35 = vsel %vm112_vm0, %v73_v21, 0  ;;  %v98_v36 = vcombine.high %v90_v33, %v90_v33 }
   0xc   :  { %168 = vmatpush1.bf16.msra.mxu0 %v114_v19  ;;  %209 = vmatpush1.bf16.msra.mxu1 %v120_v23  ;;  %v144_v37 = vsel %vm112_vm0, %v80_v25, 0  ;;  %v99_v38 = vcombine.high %v97_v34, %v97_v34  ;;  %v150_v40 = vsel %vm112_vm0, %v90_v33, 0  ;;  %v156_v42 = vsel %vm112_vm0, %v97_v34, 0 }
   0xd   :  { %647 = vmatprep.subr.msk.bf16.mxu0 %vm112_vm0, %v64_v20  ;;  %649 = vmatprep.subr.msk.bf16.mxu1 %vm112_vm0, %v65_v24 }
   0xf   :  { %644 = vmatmul.mubr.msk.bf16.vlgmr.msra.gmra.mrb[0].mxu0 %vm108_vm1, %v15_v26  ;;  %646 = vmatmul.mubr.msk.bf16.vlgmr.msra.gmra.mrb[0].mxu1 %vm108_vm1, %v15_v26 }
  0x10   :  { %250 = vmatpush1.bf16.msra.mxu0 %v126_v27  ;;  %281 = vmatprep.mubr.bf16.mxu0 %v687_v3 }
  0x11   :  { %651 = vmatprep.subr.msk.bf16.mxu0 %vm112_vm0, %v81_v28  ;;  %291 = vmatpush1.bf16.msra.mxu1 %v132_v30 }
  0x12   :  { %322 = vmatprep.mubr.bf16.mxu1 %v687_v3  ;;  %653 = vmatprep.subr.msk.bf16.mxu1 %vm112_vm0, %v82_v31 }
  0x17   :  { %648 = vmatmul.mubr.msk.bf16.vlgmr.msra.gmra.mrb[4].mxu0 %vm108_vm1, %v15_v26  ;;  %650 = vmatmul.mubr.msk.bf16.vlgmr.msra.gmra.mrb[4].mxu1 %vm108_vm1, %v15_v26 }
  0x18   :  { %332 = vmatpush1.bf16.msra.mxu0 %v138_v35  ;;  %363 = vmatprep.mubr.bf16.mxu0 %v687_v3 }
  0x19   :  { %655 = vmatprep.subr.msk.bf16.mxu0 %vm112_vm0, %v98_v36  ;;  %373 = vmatpush1.bf16.msra.mxu1 %v144_v37 }
  0x1a   :  { %404 = vmatprep.mubr.bf16.mxu1 %v687_v3  ;;  %657 = vmatprep.subr.msk.bf16.mxu1 %vm112_vm0, %v99_v38 }
  0x1f   :  { %652 = vmatmul.mubr.msk.bf16.vlgmr.msra.gmra.mrb[8].mxu0 %vm108_vm1, %v15_v26  ;;  %654 = vmatmul.mubr.msk.bf16.vlgmr.msra.gmra.mrb[8].mxu1 %vm108_vm1, %v15_v26 }
  0x20   :  { %414 = vmatpush1.bf16.msra.mxu0 %v150_v40  ;;  %445 = vmatprep.mubr.bf16.mxu0 %v687_v3 }
  0x21   :  { %659 = vmatprep.subr.msk.bf16.mxu0 %vm112_vm0, %v107_v41  ;;  %455 = vmatpush1.bf16.msra.mxu1 %v156_v42 }
  0x22   :  { %486 = vmatprep.mubr.bf16.mxu1 %v687_v3 }
  0x27   :  { %656 = vmatmul.mubr.msk.bf16.vlgmr.msra.gmra.mrb[12].mxu0 %vm108_vm1, %v15_v26  ;;  %658 = vmatmul.mubr.msk.bf16.vlgmr.msra.gmra.mrb[12].mxu1 %vm108_vm1, %v15_v26 }
  0x28   :  { %496 = vmatpush1.bf16.msra.mxu0 %v162_v43  ;;  %527 = vmatprep.mubr.bf16.mxu0 %v687_v3 }
  0x2f   :  { %660 = vmatmul.mubr.msk.bf16.vlgmr.msra.gmra.mrb[16].mxu0 %vm108_vm1, %v15_v26 }
  0x82   :  { %v766_v44 = vpop.permute.xlu0 %24 }
  0xe2   :  { %v201_v45 = vpop.f32.mrb[0].mxu0  ;;  %v242_v48 = vpop.f32.mrb[0].mxu1 }
  0xe3   :  { %v202_v46 = vadd.f32 %v201_v45, %v766_v44  ;;  %v203_v47 = vpop.f32.mrb[1].mxu0  ;;  %v243_v51 = vadd.f32 %v242_v48, %v766_v44  ;;  %v244_v52 = vpop.f32.mrb[1].mxu1 }
  0xe4   :  { %v204_v49 = vadd.f32 %v203_v47, %v766_v44  ;;  %v205_v50 = vpop.f32.mrb[2].mxu0  ;;  %v245_v55 = vadd.f32 %v244_v52, %v766_v44  ;;  %v246_v56 = vpop.f32.mrb[2].mxu1 }
  0xe5   :  { %v536_v53 = vmax.f32 %v202_v46, 0.0  ;;  %v206_v54 = vpop.f32.mrb[3].mxu0  ;;  %v538_v58 = vmax.f32 %v243_v51, 0.0  ;;  %v247_v59 = vpop.f32.mrb[3].mxu1 }
  0xe6   :  { %v537_v57 = vmax.f32 %v204_v49, 0.0  ;;  %v539_v60 = vmax.f32 %v245_v55, 0.0 }
  0xe8   :  { %v670_v61 = vpack.c.bf16 %v537_v57, %v536_v53  ;;  %v671_v62 = vpack.c.bf16 %v539_v60, %v538_v58 }
  0xea   :  { %626 = vst [vmem:[%s816_s3] sm:$0xff] %v670_v61  ;;  %v283_v63 = vpop.f32.mrb[4].mxu0  ;;  %627 = vst [vmem:[%s816_s3 + $0x8] sm:$0xff] %v671_v62  ;;  %v324_v2 = vpop.f32.mrb[4].mxu1 }
  0xeb   :  { %v284_v0 = vadd.f32 %v283_v63, %v766_v44  ;;  %v285_v1 = vpop.f32.mrb[5].mxu0  ;;  %v325_v5 = vadd.f32 %v324_v2, %v766_v44  ;;  %v326_v6 = vpop.f32.mrb[5].mxu1 }
  0xec   :  { %v286_v3 = vadd.f32 %v285_v1, %v766_v44  ;;  %v287_v4 = vpop.f32.mrb[6].mxu0  ;;  %v327_v9 = vadd.f32 %v326_v6, %v766_v44  ;;  %v328_v10 = vpop.f32.mrb[6].mxu1 }
  0xed   :  { %v540_v7 = vmax.f32 %v284_v0, 0.0  ;;  %v288_v8 = vpop.f32.mrb[7].mxu0  ;;  %v542_v12 = vmax.f32 %v325_v5, 0.0  ;;  %v329_v13 = vpop.f32.mrb[7].mxu1 }
  0xee   :  { %v541_v11 = vmax.f32 %v286_v3, 0.0  ;;  %v543_v14 = vmax.f32 %v327_v9, 0.0 }
  0xf0   :  { %v672_v15 = vpack.c.bf16 %v541_v11, %v540_v7  ;;  %v673_v16 = vpack.c.bf16 %v543_v14, %v542_v12 }
  0xf2   :  { %628 = vst [vmem:[%s816_s3 + $0x10] sm:$0xff] %v672_v15  ;;  %v365_v17 = vpop.f32.mrb[8].mxu0  ;;  %629 = vst [vmem:[%s816_s3 + $0x18] sm:$0xff] %v673_v16  ;;  %v406_v20 = vpop.f32.mrb[8].mxu1 }
  0xf3   :  { %v366_v18 = vadd.f32 %v365_v17, %v766_v44  ;;  %v367_v19 = vpop.f32.mrb[9].mxu0  ;;  %v407_v23 = vadd.f32 %v406_v20, %v766_v44  ;;  %v408_v24 = vpop.f32.mrb[9].mxu1 }
  0xf4   :  { %v368_v21 = vadd.f32 %v367_v19, %v766_v44  ;;  %v369_v22 = vpop.f32.mrb[10].mxu0  ;;  %v409_v27 = vadd.f32 %v408_v24, %v766_v44  ;;  %v410_v28 = vpop.f32.mrb[10].mxu1 }
  0xf5   :  { %v544_v25 = vmax.f32 %v366_v18, 0.0  ;;  %v370_v26 = vpop.f32.mrb[11].mxu0  ;;  %v546_v30 = vmax.f32 %v407_v23, 0.0  ;;  %v411_v31 = vpop.f32.mrb[11].mxu1 }
  0xf6   :  { %v545_v29 = vmax.f32 %v368_v21, 0.0  ;;  %v547_v32 = vmax.f32 %v409_v27, 0.0 }
  0xf8   :  { %v674_v33 = vpack.c.bf16 %v545_v29, %v544_v25  ;;  %v675_v34 = vpack.c.bf16 %v547_v32, %v546_v30 }
  0xfa   :  { %630 = vst [vmem:[%s816_s3 + $0x20] sm:$0xff] %v674_v33  ;;  %v447_v35 = vpop.f32.mrb[12].mxu0  ;;  %631 = vst [vmem:[%s816_s3 + $0x28] sm:$0xff] %v675_v34  ;;  %v488_v38 = vpop.f32.mrb[12].mxu1 }
  0xfb   :  { %v448_v36 = vadd.f32 %v447_v35, %v766_v44  ;;  %v449_v37 = vpop.f32.mrb[13].mxu0  ;;  %v489_v41 = vadd.f32 %v488_v38, %v766_v44  ;;  %v490_v42 = vpop.f32.mrb[13].mxu1 }
  0xfc   :  { %v450_v39 = vadd.f32 %v449_v37, %v766_v44  ;;  %v451_v40 = vpop.f32.mrb[14].mxu0  ;;  %v491_v46 = vadd.f32 %v490_v42, %v766_v44  ;;  %v492_v47 = vpop.f32.mrb[14].mxu1 }
  0xfd   :  { %v548_v43 = vmax.f32 %v448_v36, 0.0  ;;  %v452_v45 = vpop.f32.mrb[15].mxu0  ;;  %v550_v49 = vmax.f32 %v489_v41, 0.0  ;;  %v493_v50 = vpop.f32.mrb[15].mxu1 }
  0xfe   :  { %v549_v48 = vmax.f32 %v450_v39, 0.0  ;;  %v551_v51 = vmax.f32 %v491_v46, 0.0 }
 0x100   :  { %v676_v52 = vpack.c.bf16 %v549_v48, %v548_v43  ;;  %v677_v53 = vpack.c.bf16 %v551_v51, %v550_v49 }
 0x102   :  { %632 = vst [vmem:[%s816_s3 + $0x30] sm:$0xff] %v676_v52  ;;  %v529_v54 = vpop.f32.mrb[16].mxu0  ;;  %633 = vst [vmem:[%s816_s3 + $0x38] sm:$0xff] %v677_v53 }
 0x103   :  { %v530_v55 = vadd.f32 %v529_v54, %v766_v44  ;;  %v531_v56 = vpop.f32.mrb[17].mxu0 }
 0x104   :  { %v532_v57 = vadd.f32 %v531_v56, %v766_v44  ;;  %v533_v58 = vpop.f32.mrb[18].mxu0 }
 0x105   :  { %v552_v59 = vmax.f32 %v530_v55, 0.0  ;;  %v534_v60 = vpop.f32.mrb[19].mxu0 }
 0x106   :  { %v553_v61 = vmax.f32 %v532_v57, 0.0 }
 0x108   :  { %v678_v62 = vpack.c.bf16 %v553_v61, %v552_v59 }
 0x10a   :  { %637 = vst.msk [vmem:[%s816_s3 + $0x40] sm:$0xff] %vm636_vm4, %v678_v62 }

// kernel: cond1_forward.21
= control target key start
LH: loop header
LB: loop body
LE: loop exit
PB: predicated region body
PF: predicated region fallthrough
CT: control target
= control target key end

     0   :  { %vm54_vm0 = vcmask 1043456   ;;  %v291_v1 = vmov 0   ;;  %vm50_vm1 = vcmask 64512   ;;  %v292_v13 = vmov 0.0   ;;  %s355_s0 = inlined_call_operand.vmem [shape: bf16[8,578], index: 0, kind: input, shape index: {}]   ;;  %s356_s1 = inlined_call_operand.vmem [shape: bf16[16,8], index: 1, kind: input, shape index: {}]   ;;  %s357_s2 = inlined_call_operand.vmem [shape: f32[16,1], index: 2, kind: input, shape index: {}]   ;;  %s358_s3 = inlined_call_operand.vmem [shape: bf16[16,578], index: 3, kind: output, shape index: {}]  }
   0x1   :  { %v17_v0 = vld [vmem:[%s355_s0] sm:$0xff]  ;;  %102 = vmatprep.mubr.bf16.mxu0 %v291_v1  ;;  %145 = vmatprep.mubr.bf16.mxu1 %v291_v1  ;;  %v18_v4 = vld [vmem:[%s355_s0 + $0x8] sm:$0xff]  ;;  %v290_v7 = vld [vmem:[%s355_s0 + $0x10] ss:$0 sps:$4 sm:$0xff]   ;;  %vm293_vm2 = vmmov 0   ;;  %vm241_vm3 = vcmask 535552  }
   0x2   :  { %v252_v2 = vcombine.high %v17_v0, %v17_v0  ;;  %v251_v3 = vcombine.low %v17_v0, %v17_v0  ;;  %284 = vset.pattern.permute.xlu0 %v291_v1  ;;  %v254_v5 = vcombine.high %v18_v4, %v18_v4  ;;  %v253_v6 = vcombine.low %v18_v4, %v18_v4  ;;  %v20_v8 = vld [vmem:[%s357_s2] sm:$0xff]  ;;  %v21_v12 = vld [vmem:[%s357_s2 + $0x8] sm:$0xff] }
   0x3   :  { %v287_v10 = vld [vmem:[%s356_s1] sm:$0xff]   ;;  %24 = vperm.xlu0 %284, %v20_v8   ;;  %v68_v14 = vsel %vm54_vm0, %v290_v7, 0 }
   0x4   :  { %256 = vmatprep.subr.msk.bf16.mxu0 %vm54_vm0, %v252_v2  ;;  %v56_v9 = vsel %vm54_vm0, %v251_v3, 0  ;;  %258 = vmatprep.subr.msk.bf16.mxu1 %vm54_vm0, %v254_v5  ;;  %v62_v11 = vsel %vm54_vm0, %v253_v6, 0 }
   0x5   :  { %71 = vmatpush1.bf16.msra.mxu0 %v56_v9  ;;  %114 = vmatpush1.bf16.msra.mxu1 %v62_v11 }
   0x6   :  { %275 = vmatprep.subr.bf16.mxu0 %v292_v13 }
   0x7   :  { %29 = vperm.xlu0 %284, %v21_v12  }
   0x8   :  { %257 = vmatmul.mubr.msk.bf16.vlgmr.msra.gmra.mrb[0].mxu0 %vm50_vm1, %v287_v10  ;;  %259 = vmatmul.mubr.msk.bf16.vlgmr.msra.gmra.mrb[0].mxu1 %vm50_vm1, %v287_v10 }
   0x9   :  { %276 = vmatpush3.bf16.msra.mxu0 %v68_v14  ;;  %277 = vmatprep.mubr.msk.bf16.mxu0 %vm293_vm2, %v292_v13 }
  0x10   :  { %278 = vmatmul.mubr.msk.bf16.vlgmr.msra.gmra.mrb[4].mxu0 %vm50_vm1, %v287_v10 }
  0x82   :  { %v25_v15 = vpop.permute.xlu0 %24 }
  0x86   :  { %v30_v17 = vpop.permute.xlu0 %29 }
  0xdb   :  { %v104_v16 = vpop.f32.mrb[0].mxu0  ;;  %v147_v20 = vpop.f32.mrb[0].mxu1 }
  0xdc   :  { %v105_v18 = vadd.f32 %v104_v16, %v25_v15  ;;  %v106_v19 = vpop.f32.mrb[1].mxu0  ;;  %v148_v23 = vadd.f32 %v147_v20, %v25_v15  ;;  %v149_v24 = vpop.f32.mrb[1].mxu1 }
  0xdd   :  { %v107_v21 = vadd.f32 %v106_v19, %v25_v15  ;;  %v108_v22 = vpop.f32.mrb[2].mxu0  ;;  %v150_v28 = vadd.f32 %v149_v24, %v25_v15  ;;  %v151_v29 = vpop.f32.mrb[2].mxu1 }
  0xde   :  { %v197_v25 = vmax.f32 %v105_v18, 0.0  ;;  %v109_v26 = vadd.f32 %v108_v22, %v30_v17  ;;  %v110_v27 = vpop.f32.mrb[3].mxu0  ;;  %v199_v32 = vmax.f32 %v148_v23, 0.0  ;;  %v152_v33 = vadd.f32 %v151_v29, %v30_v17  ;;  %v153_v34 = vpop.f32.mrb[3].mxu1 }
  0xdf   :  { %v198_v30 = vmax.f32 %v107_v21, 0.0  ;;  %v111_v31 = vadd.f32 %v110_v27, %v30_v17  ;;  %v200_v36 = vmax.f32 %v150_v28, 0.0  ;;  %v154_v37 = vadd.f32 %v153_v34, %v30_v17 }
  0xe0   :  { %v202_v35 = vmax.f32 %v109_v26, 0.0  ;;  %v204_v40 = vmax.f32 %v152_v33, 0.0 }
  0xe1   :  { %v267_v38 = vpack.c.bf16 %v198_v30, %v197_v25  ;;  %v203_v39 = vmax.f32 %v111_v31, 0.0  ;;  %v268_v41 = vpack.c.bf16 %v200_v36, %v199_v32  ;;  %v205_v42 = vmax.f32 %v154_v37, 0.0 }
  0xe3   :  { %239 = vst [vmem:[%s358_s3] sm:$0xff] %v267_v38  ;;  %v270_v43 = vpack.c.bf16 %v203_v39, %v202_v35  ;;  %v190_v44 = vpop.f32.mrb[4].mxu0  ;;  %240 = vst [vmem:[%s358_s3 + $0x8] sm:$0xff] %v268_v41  ;;  %v271_v45 = vpack.c.bf16 %v205_v42, %v204_v40 }
  0xe4   :  { %v191_v46 = vadd.f32 %v190_v44, %v25_v15  ;;  %v279_v47 = vpop.f32.mrb[5].mxu0 }
  0xe5   :  { %243 = vst [vmem:[%s358_s3 + $0x14] sm:$0xff] %v270_v43  ;;  %v193_v48 = vpop.f32.mrb[6].mxu0  ;;  %244 = vst [vmem:[%s358_s3 + $0x1c] sm:$0xff] %v271_v45 }
  0xe6   :  { %v201_v49 = vmax.f32 %v191_v46, 0.0  ;;  %v194_v50 = vadd.f32 %v193_v48, %v30_v17  ;;  %v280_v51 = vpop.f32.mrb[7].mxu0 }
  0xe8   :  { %v269_v52 = vpack.c.bf16 %v201_v49, %v201_v49  ;;  %v206_v53 = vmax.f32 %v194_v50, 0.0 }
  0xea   :  { %242 = vst.msk [vmem:[%s358_s3 + $0x10] sm:$0xf] %vm241_vm3, %v269_v52  ;;  %v272_v54 = vpack.c.bf16 %v206_v53, %v206_v53 }
  0xec   :  { %245 = vst.msk [vmem:[%s358_s3 + $0x24] sm:$0xf] %vm241_vm3, %v272_v54 }

// kernel: cond1_forward.22
= control target key start
LH: loop header
LB: loop body
LE: loop exit
PB: predicated region body
PF: predicated region fallthrough
CT: control target
= control target key end

     0   :  { %v192_v1 = vmov 0   ;;  %vm65_vm0 = vcmask 130048   ;;  %vm157_vm1 = vcmask 1043456   ;;  %vm158_vm2 = vcmask 277508   ;;  %s251_s0 = inlined_call_operand.vmem [shape: bf16[16,162], index: 0, kind: input, shape index: {}]   ;;  %s252_s1 = inlined_call_operand.vmem [shape: bf16[32,16], index: 1, kind: input, shape index: {}]   ;;  %s253_s2 = inlined_call_operand.vmem [shape: f32[32,1], index: 2, kind: input, shape index: {}]   ;;  %s254_s3 = inlined_call_operand.vmem [shape: bf16[32,162], index: 3, kind: output, shape index: {}]  }
   0x1   :  { %v187_v0 = vld [vmem:[%s251_s0 + $0x4] ss:$8 sps:$4 sm:$0xff]   ;;  %104 = vmatprep.mubr.bf16.mxu0 %v192_v1  ;;  %114 = vmatprep.mubr.bf16.mxu1 %v192_v1  ;;  %v189_v2 = vld [vmem:[%s251_s0] ss:$8 sps:$4 sm:$0xff]   ;;  %v23_v5 = vld [vmem:[%s253_s2 + $0x10] sm:$0xff] }
   0x2   :  { %186 = vset.pattern.permute.xlu1 %v192_v1  ;;  %185 = vset.pattern.permute.xlu0 %v192_v1  ;;  %v190_v3 = vld [vmem:[%s252_s1] sm:$0xff]   ;;  %v191_v4 = vld [vmem:[%s252_s1 + $0x8] sm:$0xff]   ;;  %v24_v7 = vld [vmem:[%s253_s2 + $0x18] sm:$0xff] }
   0x3   :  { %72 = vmatprep.subr.bf16.mxu0 %v187_v0  ;;  %182 = vmatprep.subr.bf16.mxu1 %v187_v0  ;;  %v21_v6 = vld [vmem:[%s253_s2] sm:$0xff]  ;;  %v22_v8 = vld [vmem:[%s253_s2 + $0x8] sm:$0xff]  ;;  %vm159_vm3 = vmor %vm158_vm2, %vm157_vm1 }
   0x4   :  { %73 = vmatpush1.bf16.msra.mxu0 %v189_v2  ;;  %183 = vmatpush1.bf16.msra.mxu1 %v189_v2 }
   0x5   :  { %37 = vperm.xlu1 %186, %v23_v5   ;;  %27 = vperm.xlu0 %185, %v21_v6  }
   0x7   :  { %172 = vmatmul.mubr.msk.bf16.vlgmr.msra.gmra.mrb[0].mxu0 %vm65_vm0, %v190_v3  ;;  %173 = vmatmul.mubr.msk.bf16.vlgmr.msra.gmra.mrb[0].mxu1 %vm65_vm0, %v191_v4 }
   0x9   :  { %42 = vperm.xlu1 %186, %v24_v7   ;;  %32 = vperm.xlu0 %185, %v22_v8  }
  0x84   :  { %v38_v9 = vpop.permute.xlu1 %37  ;;  %v28_v10 = vpop.permute.xlu0 %27 }
  0x88   :  { %v43_v11 = vpop.permute.xlu1 %42  ;;  %v33_v12 = vpop.permute.xlu0 %32 }
  0xda   :  { %v106_v13 = vpop.f32.mrb[0].mxu0  ;;  %v116_v14 = vpop.f32.mrb[0].mxu1 }
  0xdb   :  { %v107_v15 = vadd.f32 %v106_v13, %v28_v10  ;;  %v117_v16 = vadd.f32 %v116_v14, %v38_v9  ;;  %v108_v17 = vpop.f32.mrb[1].mxu0  ;;  %v118_v18 = vpop.f32.mrb[1].mxu1 }
  0xdc   :  { %v109_v19 = vadd.f32 %v108_v17, %v28_v10  ;;  %v119_v20 = vadd.f32 %v118_v18, %v38_v9  ;;  %v110_v21 = vpop.f32.mrb[2].mxu0  ;;  %v120_v22 = vpop.f32.mrb[2].mxu1 }
  0xdd   :  { %v125_v23 = vmax.f32 %v107_v15, 0.0  ;;  %v129_v24 = vmax.f32 %v117_v16, 0.0  ;;  %v111_v25 = vadd.f32 %v110_v21, %v33_v12  ;;  %v121_v26 = vadd.f32 %v120_v22, %v43_v11  ;;  %v112_v27 = vpop.f32.mrb[3].mxu0  ;;  %v122_v28 = vpop.f32.mrb[3].mxu1 }
  0xde   :  { %v126_v29 = vmax.f32 %v109_v19, 0.0  ;;  %v130_v30 = vmax.f32 %v119_v20, 0.0  ;;  %v113_v31 = vadd.f32 %v112_v27, %v33_v12  ;;  %v123_v32 = vadd.f32 %v122_v28, %v43_v11 }
  0xdf   :  { %v127_v33 = vmax.f32 %v111_v25, 0.0  ;;  %v131_v34 = vmax.f32 %v121_v26, 0.0 }
  0xe0   :  { %v178_v35 = vpack.c.bf16 %v126_v29, %v125_v23  ;;  %v180_v36 = vpack.c.bf16 %v130_v30, %v129_v24  ;;  %v128_v37 = vmax.f32 %v113_v31, 0.0  ;;  %v132_v38 = vmax.f32 %v123_v32, 0.0 }
  0xe2   :  { %160 = vst.msk [vmem:[%s254_s3] sm:$0xff] %vm159_vm3, %v178_v35  ;;  %162 = vst.msk [vmem:[%s254_s3 + $0x10] sm:$0xff] %vm159_vm3, %v180_v36  ;;  %v179_v39 = vpack.c.bf16 %v128_v37, %v127_v33  ;;  %v181_v40 = vpack.c.bf16 %v132_v38, %v131_v34 }
  0xe4   :  { %161 = vst.msk [vmem:[%s254_s3 + $0x8] sm:$0xff] %vm159_vm3, %v179_v39  ;;  %163 = vst.msk [vmem:[%s254_s3 + $0x18] sm:$0xff] %vm159_vm3, %v181_v40 }

// kernel: cond1_forward.23
= control target key start
LH: loop header
LB: loop body
LE: loop exit
PB: predicated region body
PF: predicated region fallthrough
CT: control target
= control target key end

     0   :  { %v295_v1 = vmov 0   ;;  %vm107_vm0 = vcmask 261120   ;;  %vm225_vm1 = vcmask 404480   ;;  %s394_s0 = inlined_call_operand.vmem [shape: bf16[32,50], index: 0, kind: input, shape index: {}]   ;;  %s395_s1 = inlined_call_operand.vmem [shape: bf16[64,32], index: 1, kind: input, shape index: {}]   ;;  %s396_s2 = inlined_call_operand.vmem [shape: f32[64,1], index: 2, kind: input, shape index: {}]   ;;  %s397_s3 = inlined_call_operand.vmem [shape: bf16[64,50], index: 3, kind: output, shape index: {}]  }
   0x1   :  { %v289_v0 = vld [vmem:[%s394_s0] sm:$0xff]   ;;  %288 = vset.pattern.permute.xlu1 %v295_v1  ;;  %287 = vset.pattern.permute.xlu0 %v295_v1  ;;  %v290_v2 = vld [vmem:[%s394_s0 + $0x8] sm:$0xff]   ;;  %v292_v4 = vld [vmem:[%s395_s1 + $0x10] sm:$0xff]  }
   0x2   :  { %270 = vmatprep.subr.bf16.mxu0 %v289_v0  ;;  %282 = vmatprep.subr.bf16.mxu1 %v289_v0  ;;  %v291_v3 = vld [vmem:[%s395_s1] sm:$0xff]   ;;  %v293_v5 = vld [vmem:[%s395_s1 + $0x8] sm:$0xff]   ;;  %v294_v6 = vld [vmem:[%s395_s1 + $0x18] sm:$0xff]  }
   0x3   :  { %271 = vmatpush3.bf16.msra.mxu0 %v289_v0  ;;  %284 = vmatpush3.bf16.msra.mxu1 %v289_v0  ;;  %v29_v7 = vld [vmem:[%s396_s2 + $0x10] sm:$0xff]  ;;  %v27_v8 = vld [vmem:[%s396_s2] sm:$0xff]  ;;  %v30_v9 = vld [vmem:[%s396_s2 + $0x18] sm:$0xff] }
   0x4   :  { %272 = vmatprep.subr.bf16.mxu0 %v290_v2  ;;  %283 = vmatprep.subr.bf16.mxu1 %v290_v2  ;;  %v28_v10 = vld [vmem:[%s396_s2 + $0x8] sm:$0xff]  ;;  %v31_v12 = vld [vmem:[%s396_s2 + $0x20] sm:$0xff]  ;;  %v34_v13 = vld [vmem:[%s396_s2 + $0x38] sm:$0xff] }
   0x5   :  { %274 = vmatprep.mubr.msk.bf16.mxu0 %vm107_vm0, %v291_v3  ;;  %278 = vmatprep.mubr.msk.bf16.mxu1 %vm107_vm0, %v292_v4  ;;  %v32_v11 = vld [vmem:[%s396_s2 + $0x28] sm:$0xff]  ;;  %v33_v14 = vld [vmem:[%s396_s2 + $0x30] sm:$0xff] }
   0x6   :  { %47 = vperm.xlu1 %288, %v29_v7   ;;  %37 = vperm.xlu0 %287, %v27_v8  }
   0x7   :  { %273 = vmatpush3.bf16.msra.mxu0 %v290_v2  ;;  %285 = vmatpush3.bf16.msra.mxu1 %v290_v2 }
   0xa   :  { %275 = vmatmul.mubr.msk.bf16.vlgmr.msra.gmra.mrb[0].mxu0 %vm107_vm0, %v293_v5  ;;  %279 = vmatmul.mubr.msk.bf16.vlgmr.msra.gmra.mrb[0].mxu1 %vm107_vm0, %v294_v6 }
   0xb   :  { %52 = vperm.xlu1 %288, %v30_v9   ;;  %42 = vperm.xlu0 %287, %v28_v10  }
   0xf   :  { %62 = vperm.xlu1 %288, %v32_v11   ;;  %57 = vperm.xlu0 %287, %v31_v12  }
  0x13   :  { %72 = vperm.xlu1 %288, %v34_v13   ;;  %67 = vperm.xlu0 %287, %v33_v14  }
  0x85   :  { %v48_v15 = vpop.permute.xlu1 %47  ;;  %v38_v16 = vpop.permute.xlu0 %37 }
  0x8a   :  { %v53_v17 = vpop.permute.xlu1 %52  ;;  %v43_v18 = vpop.permute.xlu0 %42 }
  0x8e   :  { %v63_v19 = vpop.permute.xlu1 %62  ;;  %v58_v20 = vpop.permute.xlu0 %57 }
  0x92   :  { %v73_v21 = vpop.permute.xlu1 %72  ;;  %v68_v22 = vpop.permute.xlu0 %67 }
  0xdd   :  { %v276_v23 = vpop.f32.mrb[0].mxu0  ;;  %v280_v24 = vpop.f32.mrb[0].mxu1 }
  0xde   :  { %v163_v25 = vadd.f32 %v276_v23, %v48_v15  ;;  %v179_v26 = vadd.f32 %v280_v24, %v68_v22  ;;  %v154_v27 = vpop.f32.mrb[1].mxu0  ;;  %v170_v28 = vpop.f32.mrb[1].mxu1 }
  0xdf   :  { %v155_v29 = vadd.f32 %v154_v27, %v38_v16  ;;  %v171_v30 = vadd.f32 %v170_v28, %v58_v20  ;;  %v277_v31 = vpop.f32.mrb[2].mxu0  ;;  %v281_v32 = vpop.f32.mrb[2].mxu1 }
  0xe0   :  { %v187_v33 = vmax.f32 %v163_v25, 0.0  ;;  %v191_v34 = vmax.f32 %v179_v26, 0.0  ;;  %v166_v35 = vadd.f32 %v277_v31, %v53_v17  ;;  %v182_v36 = vadd.f32 %v281_v32, %v73_v21  ;;  %v157_v37 = vpop.f32.mrb[3].mxu0  ;;  %v173_v38 = vpop.f32.mrb[3].mxu1 }
  0xe1   :  { %v185_v39 = vmax.f32 %v155_v29, 0.0  ;;  %v189_v40 = vmax.f32 %v171_v30, 0.0  ;;  %v158_v41 = vadd.f32 %v157_v37, %v43_v18  ;;  %v174_v42 = vadd.f32 %v173_v38, %v63_v19 }
  0xe2   :  { %v258_v43 = vpack.c.bf16 %v187_v33, %v187_v33  ;;  %v262_v44 = vpack.c.bf16 %v191_v34, %v191_v34  ;;  %v188_v45 = vmax.f32 %v166_v35, 0.0  ;;  %v192_v46 = vmax.f32 %v182_v36, 0.0 }
  0xe3   :  { %v256_v47 = vpack.c.bf16 %v185_v39, %v185_v39  ;;  %v260_v48 = vpack.c.bf16 %v189_v40, %v189_v40  ;;  %v186_v49 = vmax.f32 %v158_v41, 0.0  ;;  %v190_v50 = vmax.f32 %v174_v42, 0.0 }
  0xe4   :  { %228 = vst.msk [vmem:[%s397_s3 + $0x8] sm:$0xf] %vm225_vm1, %v258_v43  ;;  %232 = vst.msk [vmem:[%s397_s3 + $0x18] sm:$0xf] %vm225_vm1, %v262_v44  ;;  %v259_v51 = vpack.c.bf16 %v188_v45, %v188_v45  ;;  %v263_v52 = vpack.c.bf16 %v192_v46, %v192_v46 }
  0xe5   :  { %226 = vst.msk [vmem:[%s397_s3] sm:$0xf] %vm225_vm1, %v256_v47  ;;  %230 = vst.msk [vmem:[%s397_s3 + $0x10] sm:$0xf] %vm225_vm1, %v260_v48  ;;  %v257_v53 = vpack.c.bf16 %v186_v49, %v186_v49  ;;  %v261_v54 = vpack.c.bf16 %v190_v50, %v190_v50 }
  0xe6   :  { %229 = vst.msk [vmem:[%s397_s3 + $0xc] sm:$0xf] %vm225_vm1, %v259_v51  ;;  %233 = vst.msk [vmem:[%s397_s3 + $0x1c] sm:$0xf] %vm225_vm1, %v263_v52 }
  0xe7   :  { %227 = vst.msk [vmem:[%s397_s3 + $0x4] sm:$0xf] %vm225_vm1, %v257_v53  ;;  %231 = vst.msk [vmem:[%s397_s3 + $0x14] sm:$0xf] %vm225_vm1, %v261_v54 }

// kernel: cond1_forward.24
= control target key start
LH: loop header
LB: loop body
LE: loop exit
PB: predicated region body
PF: predicated region fallthrough
CT: control target
= control target key end

     0   :  { %v325_v1 = vmov 0   ;;  %vm123_vm0 = vcmask 523264   ;;  %vm241_vm1 = vcmask 11264   ;;  %s430_s0 = inlined_call_operand.vmem [shape: bf16[64,2], index: 0, kind: input, shape index: {}]   ;;  %s431_s1 = inlined_call_operand.vmem [shape: bf16[64,64], index: 1, kind: input, shape index: {}]   ;;  %s432_s2 = inlined_call_operand.vmem [shape: f32[64,1], index: 2, kind: input, shape index: {}]   ;;  %s433_s3 = inlined_call_operand.vmem [shape: bf16[64,2], index: 3, kind: output, shape index: {}]  }
   0x1   :  { %v317_v0 = vld [vmem:[%s430_s0] sm:$0xff]   ;;  %316 = vset.pattern.permute.xlu1 %v325_v1  ;;  %315 = vset.pattern.permute.xlu0 %v325_v1  ;;  %v318_v2 = vld [vmem:[%s430_s0 + $0x8] sm:$0xff]   ;;  %v319_v3 = vld [vmem:[%s430_s0 + $0x10] sm:$0xff]  }
   0x2   :  { %290 = vmatprep.subr.bf16.mxu0 %v317_v0  ;;  %306 = vmatprep.subr.bf16.mxu1 %v317_v0  ;;  %v321_v4 = vld [vmem:[%s431_s1] sm:$0xff]   ;;  %v322_v5 = vld [vmem:[%s431_s1 + $0x10] sm:$0xff]   ;;  %v320_v6 = vld [vmem:[%s430_s0 + $0x18] sm:$0xff]  }
   0x3   :  { %291 = vmatpush3.bf16.msra.mxu0 %v317_v0  ;;  %310 = vmatpush3.bf16.msra.mxu1 %v317_v0  ;;  %v33_v7 = vld [vmem:[%s432_s2 + $0x10] sm:$0xff]  ;;  %v31_v8 = vld [vmem:[%s432_s2] sm:$0xff]  ;;  %v34_v9 = vld [vmem:[%s432_s2 + $0x18] sm:$0xff] }
   0x4   :  { %292 = vmatprep.subr.bf16.mxu0 %v318_v2  ;;  %307 = vmatprep.subr.bf16.mxu1 %v318_v2  ;;  %v32_v10 = vld [vmem:[%s432_s2 + $0x8] sm:$0xff]  ;;  %v324_v12 = vld [vmem:[%s431_s1 + $0x18] sm:$0xff]   ;;  %v35_v14 = vld [vmem:[%s432_s2 + $0x20] sm:$0xff] }
   0x5   :  { %298 = vmatprep.mubr.msk.bf16.mxu0 %vm123_vm0, %v321_v4  ;;  %302 = vmatprep.mubr.msk.bf16.mxu1 %vm123_vm0, %v322_v5  ;;  %v323_v11 = vld [vmem:[%s431_s1 + $0x8] sm:$0xff]   ;;  %v38_v15 = vld [vmem:[%s432_s2 + $0x38] sm:$0xff]  ;;  %v37_v16 = vld [vmem:[%s432_s2 + $0x30] sm:$0xff] }
   0x6   :  { %51 = vperm.xlu1 %316, %v33_v7   ;;  %41 = vperm.xlu0 %315, %v31_v8   ;;  %v36_v13 = vld [vmem:[%s432_s2 + $0x28] sm:$0xff] }
   0x7   :  { %293 = vmatpush3.bf16.msra.mxu0 %v318_v2  ;;  %311 = vmatpush3.bf16.msra.mxu1 %v318_v2 }
   0x8   :  { %294 = vmatprep.subr.bf16.mxu0 %v319_v3  ;;  %308 = vmatprep.subr.bf16.mxu1 %v319_v3 }
   0xa   :  { %56 = vperm.xlu1 %316, %v34_v9   ;;  %46 = vperm.xlu0 %315, %v32_v10  }
   0xb   :  { %295 = vmatpush3.bf16.msra.mxu0 %v319_v3  ;;  %312 = vmatpush3.bf16.msra.mxu1 %v319_v3 }
   0xc   :  { %296 = vmatprep.subr.bf16.mxu0 %v320_v6  ;;  %309 = vmatprep.subr.bf16.mxu1 %v320_v6 }
   0xe   :  { %66 = vperm.xlu1 %316, %v36_v13   ;;  %61 = vperm.xlu0 %315, %v35_v14  }
   0xf   :  { %297 = vmatpush3.bf16.msra.mxu0 %v320_v6  ;;  %313 = vmatpush3.bf16.msra.mxu1 %v320_v6 }
  0x12   :  { %299 = vmatmul.mubr.msk.bf16.vlgmr.msra.gmra.mrb[0].mxu0 %vm123_vm0, %v323_v11  ;;  %303 = vmatmul.mubr.msk.bf16.vlgmr.msra.gmra.mrb[0].mxu1 %vm123_vm0, %v324_v12 }
  0x13   :  { %76 = vperm.xlu1 %316, %v38_v15   ;;  %71 = vperm.xlu0 %315, %v37_v16  }
  0x85   :  { %v52_v17 = vpop.permute.xlu1 %51  ;;  %v42_v18 = vpop.permute.xlu0 %41 }
  0x89   :  { %v57_v19 = vpop.permute.xlu1 %56  ;;  %v47_v20 = vpop.permute.xlu0 %46 }
  0x8d   :  { %v67_v21 = vpop.permute.xlu1 %66  ;;  %v62_v22 = vpop.permute.xlu0 %61 }
  0x92   :  { %v77_v23 = vpop.permute.xlu1 %76  ;;  %v72_v24 = vpop.permute.xlu0 %71 }
  0xe5   :  { %v300_v25 = vpop.f32.mrb[0].mxu0  ;;  %v304_v26 = vpop.f32.mrb[0].mxu1 }
  0xe6   :  { %v179_v27 = vadd.f32 %v300_v25, %v52_v17  ;;  %v195_v28 = vadd.f32 %v304_v26, %v72_v24  ;;  %v170_v29 = vpop.f32.mrb[1].mxu0  ;;  %v186_v30 = vpop.f32.mrb[1].mxu1 }
  0xe7   :  { %v171_v31 = vadd.f32 %v170_v29, %v42_v18  ;;  %v187_v32 = vadd.f32 %v186_v30, %v62_v22  ;;  %v301_v33 = vpop.f32.mrb[2].mxu0  ;;  %v305_v34 = vpop.f32.mrb[2].mxu1 }
  0xe8   :  { %v203_v35 = vmax.f32 %v179_v27, 0.0  ;;  %v207_v36 = vmax.f32 %v195_v28, 0.0  ;;  %v182_v37 = vadd.f32 %v301_v33, %v57_v19  ;;  %v198_v38 = vadd.f32 %v305_v34, %v77_v23  ;;  %v173_v39 = vpop.f32.mrb[3].mxu0  ;;  %v189_v40 = vpop.f32.mrb[3].mxu1 }
  0xe9   :  { %v201_v41 = vmax.f32 %v171_v31, 0.0  ;;  %v205_v42 = vmax.f32 %v187_v32, 0.0  ;;  %v174_v43 = vadd.f32 %v173_v39, %v47_v20  ;;  %v190_v44 = vadd.f32 %v189_v40, %v67_v21 }
  0xea   :  { %v276_v45 = vpack.c.bf16 %v203_v35, %v203_v35  ;;  %v280_v46 = vpack.c.bf16 %v207_v36, %v207_v36  ;;  %v204_v47 = vmax.f32 %v182_v37, 0.0  ;;  %v208_v48 = vmax.f32 %v198_v38, 0.0 }
  0xeb   :  { %v274_v49 = vpack.c.bf16 %v201_v41, %v201_v41  ;;  %v278_v50 = vpack.c.bf16 %v205_v42, %v205_v42  ;;  %v202_v51 = vmax.f32 %v174_v43, 0.0  ;;  %v206_v52 = vmax.f32 %v190_v44, 0.0 }
  0xec   :  { %244 = vst.msk [vmem:[%s433_s3 + $0x8] sm:$0xf] %vm241_vm1, %v276_v45  ;;  %248 = vst.msk [vmem:[%s433_s3 + $0x18] sm:$0xf] %vm241_vm1, %v280_v46  ;;  %v277_v53 = vpack.c.bf16 %v204_v47, %v204_v47  ;;  %v281_v54 = vpack.c.bf16 %v208_v48, %v208_v48 }
  0xed   :  { %242 = vst.msk [vmem:[%s433_s3] sm:$0xf] %vm241_vm1, %v274_v49  ;;  %246 = vst.msk [vmem:[%s433_s3 + $0x10] sm:$0xf] %vm241_vm1, %v278_v50  ;;  %v275_v55 = vpack.c.bf16 %v202_v51, %v202_v51  ;;  %v279_v56 = vpack.c.bf16 %v206_v52, %v206_v52 }
  0xee   :  { %245 = vst.msk [vmem:[%s433_s3 + $0xc] sm:$0xf] %vm241_vm1, %v277_v53  ;;  %249 = vst.msk [vmem:[%s433_s3 + $0x1c] sm:$0xf] %vm241_vm1, %v281_v54 }
  0xef   :  { %243 = vst.msk [vmem:[%s433_s3 + $0x4] sm:$0xf] %vm241_vm1, %v275_v55  ;;  %247 = vst.msk [vmem:[%s433_s3 + $0x14] sm:$0xf] %vm241_vm1, %v279_v56 }

// kernel: cond1_forward.36
= control target key start
LH: loop header
LB: loop body
LE: loop exit
PB: predicated region body
PF: predicated region fallthrough
CT: control target
= control target key end

     0   :  { %vm201_vm0 = vcmask 523264   ;;  %v654_v5 = vmov 0   ;;  %vm403_vm1 = vcmask 11264   ;;  %s845_s0 = inlined_call_operand.vmem [shape: bf16[128,2,3,3], index: 0, kind: input, shape index: {}, may-alias: {0,4}]   ;;  %s846_s1 = inlined_call_operand.vmem [shape: bf16[64,2], index: 1, kind: input, shape index: {}]   ;;  %s847_s2 = inlined_call_operand.vmem [shape: bf16[128,64], index: 2, kind: input, shape index: {}]   ;;  %s848_s3 = inlined_call_operand.vmem [shape: f32[128,1], index: 3, kind: input, shape index: {}]   ;;  %s849_s4 = inlined_call_operand.vmem [shape: bf16[128,2,3,3], index: 4, kind: output, shape index: {}, may-alias: {0,4}]  }
   0x1   :  { %v642_v0 = vld [vmem:[%s846_s1] sm:$0xff]   ;;  %v643_v1 = vld [vmem:[%s846_s1 + $0x8] sm:$0xff]   ;;  %v644_v2 = vld [vmem:[%s846_s1 + $0x10] sm:$0xff]   ;;  %641 = vset.pattern.permute.xlu1 %v654_v5  ;;  %640 = vset.pattern.permute.xlu0 %v654_v5 }
   0x2   :  { %607 = vmatprep.subr.bf16.mxu0 %v642_v0  ;;  %631 = vmatprep.subr.bf16.mxu1 %v642_v0  ;;  %v646_v3 = vld [vmem:[%s847_s2] sm:$0xff]   ;;  %v645_v6 = vld [vmem:[%s846_s1 + $0x18] sm:$0xff]   ;;  %v43_v7 = vld [vmem:[%s848_s3 + $0x10] sm:$0xff] }
   0x3   :  { %608 = vmatpush3.bf16.msra.mxu0 %v642_v0  ;;  %635 = vmatpush3.bf16.msra.mxu1 %v642_v0  ;;  %v647_v4 = vld [vmem:[%s847_s2 + $0x20] sm:$0xff]   ;;  %v648_v9 = vld [vmem:[%s847_s2 + $0x8] sm:$0xff]   ;;  %v44_v11 = vld [vmem:[%s848_s3 + $0x18] sm:$0xff] }
   0x4   :  { %609 = vmatprep.subr.bf16.mxu0 %v643_v1  ;;  %632 = vmatprep.subr.bf16.mxu1 %v643_v1  ;;  %v41_v8 = vld [vmem:[%s848_s3] sm:$0xff]  ;;  %v649_v10 = vld [vmem:[%s847_s2 + $0x28] sm:$0xff]   ;;  %v650_v13 = vld [vmem:[%s847_s2 + $0x10] sm:$0xff]  }
   0x5   :  { %615 = vmatprep.mubr.msk.bf16.mxu0 %vm201_vm0, %v646_v3  ;;  %623 = vmatprep.mubr.msk.bf16.mxu1 %vm201_vm0, %v647_v4  ;;  %v42_v12 = vld [vmem:[%s848_s3 + $0x8] sm:$0xff]  ;;  %v651_v14 = vld [vmem:[%s847_s2 + $0x30] sm:$0xff]   ;;  %v45_v16 = vld [vmem:[%s848_s3 + $0x20] sm:$0xff] }
   0x6   :  { %69 = vperm.xlu1 %641, %v43_v7   ;;  %59 = vperm.xlu0 %640, %v41_v8   ;;  %v46_v15 = vld [vmem:[%s848_s3 + $0x28] sm:$0xff]  ;;  %v652_v17 = vld [vmem:[%s847_s2 + $0x18] sm:$0xff]   ;;  %v47_v20 = vld [vmem:[%s848_s3 + $0x30] sm:$0xff] }
   0x7   :  { %610 = vmatpush3.bf16.msra.mxu0 %v643_v1  ;;  %636 = vmatpush3.bf16.msra.mxu1 %v643_v1  ;;  %v653_v18 = vld [vmem:[%s847_s2 + $0x38] sm:$0xff]   ;;  %v50_v21 = vld [vmem:[%s848_s3 + $0x48] sm:$0xff]  ;;  %v49_v22 = vld [vmem:[%s848_s3 + $0x40] sm:$0xff] }
   0x8   :  { %611 = vmatprep.subr.bf16.mxu0 %v644_v2  ;;  %633 = vmatprep.subr.bf16.mxu1 %v644_v2  ;;  %v48_v19 = vld [vmem:[%s848_s3 + $0x38] sm:$0xff]  ;;  %v51_v24 = vld [vmem:[%s848_s3 + $0x50] sm:$0xff]  ;;  %v54_v25 = vld [vmem:[%s848_s3 + $0x68] sm:$0xff] }
   0x9   :  { %v52_v23 = vld [vmem:[%s848_s3 + $0x58] sm:$0xff]  ;;  %v53_v26 = vld [vmem:[%s848_s3 + $0x60] sm:$0xff]  ;;  %v55_v28 = vld [vmem:[%s848_s3 + $0x70] sm:$0xff] }
   0xa   :  { %74 = vperm.xlu1 %641, %v44_v11   ;;  %64 = vperm.xlu0 %640, %v42_v12   ;;  %v56_v27 = vld [vmem:[%s848_s3 + $0x78] sm:$0xff] }
   0xb   :  { %612 = vmatpush3.bf16.msra.mxu0 %v644_v2  ;;  %637 = vmatpush3.bf16.msra.mxu1 %v644_v2 }
   0xc   :  { %613 = vmatprep.subr.bf16.mxu0 %v645_v6  ;;  %634 = vmatprep.subr.bf16.mxu1 %v645_v6 }
   0xe   :  { %84 = vperm.xlu1 %641, %v46_v15   ;;  %79 = vperm.xlu0 %640, %v45_v16  }
   0xf   :  { %614 = vmatpush3.bf16.msra.mxu0 %v645_v6  ;;  %638 = vmatpush3.bf16.msra.mxu1 %v645_v6 }
  0x12   :  { %616 = vmatmul.mubr.msk.bf16.vlgmr.msra.gmra.mrb[0].mxu0 %vm201_vm0, %v648_v9  ;;  %624 = vmatmul.mubr.msk.bf16.vlgmr.msra.gmra.mrb[0].mxu1 %vm201_vm0, %v649_v10 }
  0x13   :  { %619 = vmatprep.mubr.msk.bf16.mxu0 %vm201_vm0, %v650_v13  ;;  %627 = vmatprep.mubr.msk.bf16.mxu1 %vm201_vm0, %v651_v14 }
  0x14   :  { %94 = vperm.xlu1 %641, %v48_v19   ;;  %89 = vperm.xlu0 %640, %v47_v20  }
  0x18   :  { %104 = vperm.xlu1 %641, %v50_v21   ;;  %99 = vperm.xlu0 %640, %v49_v22  }
  0x1a   :  { %620 = vmatmul.mubr.msk.bf16.gmra.mrb[4].mxu0 %vm201_vm0, %v652_v17  ;;  %628 = vmatmul.mubr.msk.bf16.gmra.mrb[4].mxu1 %vm201_vm0, %v653_v18 }
  0x1c   :  { %114 = vperm.xlu1 %641, %v52_v23   ;;  %109 = vperm.xlu0 %640, %v51_v24  }
  0x20   :  { %124 = vperm.xlu1 %641, %v54_v25   ;;  %119 = vperm.xlu0 %640, %v53_v26  }
  0x24   :  { %134 = vperm.xlu1 %641, %v56_v27   ;;  %129 = vperm.xlu0 %640, %v55_v28  }
  0x85   :  { %v70_v29 = vpop.permute.xlu1 %69  ;;  %v60_v30 = vpop.permute.xlu0 %59 }
  0x89   :  { %v75_v31 = vpop.permute.xlu1 %74  ;;  %v65_v32 = vpop.permute.xlu0 %64 }
  0x8d   :  { %v772_v33 = vpop.permute.xlu1 %84  ;;  %v80_v34 = vpop.permute.xlu0 %79 }
  0x93   :  { %v774_v35 = vpop.permute.xlu1 %94  ;;  %v90_v36 = vpop.permute.xlu0 %89 }
  0x97   :  { %v105_v37 = vpop.permute.xlu1 %104  ;;  %v100_v38 = vpop.permute.xlu0 %99 }
  0x9b   :  { %v115_v39 = vpop.permute.xlu1 %114  ;;  %v110_v40 = vpop.permute.xlu0 %109 }
  0x9f   :  { %v776_v41 = vpop.permute.xlu1 %124  ;;  %v120_v42 = vpop.permute.xlu0 %119 }
  0xa3   :  { %v135_v7 = vpop.permute.xlu1 %134  ;;  %v130_v8 = vpop.permute.xlu0 %129 }
  0xe5   :  { %v617_v43 = vpop.f32.mrb[0].mxu0  ;;  %v625_v44 = vpop.f32.mrb[0].mxu1 }
  0xe6   :  { %v269_v45 = vadd.f32 %v617_v43, %v70_v29  ;;  %v301_v46 = vadd.f32 %v625_v44, %v110_v40  ;;  %v260_v47 = vpop.f32.mrb[1].mxu0  ;;  %v292_v48 = vpop.f32.mrb[1].mxu1 }
  0xe7   :  { %v261_v49 = vadd.f32 %v260_v47, %v60_v30  ;;  %v293_v50 = vadd.f32 %v292_v48, %v100_v38  ;;  %v618_v51 = vpop.f32.mrb[2].mxu0  ;;  %v626_v52 = vpop.f32.mrb[2].mxu1 }
  0xe8   :  { %v325_v53 = vmax.f32 %v269_v45, 0.0  ;;  %v333_v54 = vmax.f32 %v301_v46, 0.0  ;;  %v272_v55 = vadd.f32 %v618_v51, %v75_v31  ;;  %v304_v56 = vadd.f32 %v626_v52, %v115_v39  ;;  %v263_v57 = vpop.f32.mrb[3].mxu0  ;;  %v295_v58 = vpop.f32.mrb[3].mxu1 }
  0xe9   :  { %v323_v59 = vmax.f32 %v261_v49, 0.0  ;;  %v331_v60 = vmax.f32 %v293_v50, 0.0  ;;  %v264_v61 = vadd.f32 %v263_v57, %v65_v32  ;;  %v296_v62 = vadd.f32 %v295_v58, %v105_v37 }
  0xea   :  { %v581_v63 = vpack.c.bf16 %v325_v53, %v325_v53  ;;  %v589_v0 = vpack.c.bf16 %v333_v54, %v333_v54  ;;  %v326_v1 = vmax.f32 %v272_v55, 0.0  ;;  %v334_v2 = vmax.f32 %v304_v56, 0.0 }
  0xeb   :  { %v579_v3 = vpack.c.bf16 %v323_v59, %v323_v59  ;;  %v587_v4 = vpack.c.bf16 %v331_v60, %v331_v60  ;;  %v324_v5 = vmax.f32 %v264_v61, 0.0  ;;  %v332_v6 = vmax.f32 %v296_v62, 0.0 }
  0xec   :  { %406 = vst.msk [vmem:[#allocation2 + $0x8] sm:$0xf] %vm403_vm1, %v581_v63  ;;  %414 = vst.msk [vmem:[#allocation2 + $0x28] sm:$0xf] %vm403_vm1, %v589_v0  ;;  %v582_v9 = vpack.c.bf16 %v326_v1, %v326_v1  ;;  %v590_v10 = vpack.c.bf16 %v334_v2, %v334_v2 }
  0xed   :  { %404 = vst.msk [vmem:[#allocation2] sm:$0xf] %vm403_vm1, %v579_v3  ;;  %412 = vst.msk [vmem:[#allocation2 + $0x20] sm:$0xf] %vm403_vm1, %v587_v4  ;;  %v580_v11 = vpack.c.bf16 %v324_v5, %v324_v5  ;;  %v588_v12 = vpack.c.bf16 %v332_v6, %v332_v6  ;;  %v621_v13 = vpop.f32.mrb[4].mxu0  ;;  %v629_v14 = vpop.f32.mrb[4].mxu1 }
  0xee   :  { %407 = vst.msk [vmem:[#allocation2 + $0xc] sm:$0xf] %vm403_vm1, %v582_v9  ;;  %415 = vst.msk [vmem:[#allocation2 + $0x2c] sm:$0xf] %vm403_vm1, %v590_v10  ;;  %v285_v15 = vadd.f32 %v621_v13, %v90_v36  ;;  %v317_v16 = vadd.f32 %v629_v14, %v130_v8  ;;  %v276_v17 = vpop.f32.mrb[5].mxu0  ;;  %v308_v18 = vpop.f32.mrb[5].mxu1 }
  0xef   :  { %405 = vst.msk [vmem:[#allocation2 + $0x4] sm:$0xf] %vm403_vm1, %v580_v11  ;;  %413 = vst.msk [vmem:[#allocation2 + $0x24] sm:$0xf] %vm403_vm1, %v588_v12  ;;  %v277_v19 = vadd.f32 %v276_v17, %v80_v34  ;;  %v309_v20 = vadd.f32 %v308_v18, %v120_v42  ;;  %v622_v21 = vpop.f32.mrb[6].mxu0  ;;  %v630_v22 = vpop.f32.mrb[6].mxu1 }
  0xf0   :  { %v329_v23 = vmax.f32 %v285_v15, 0.0  ;;  %v337_v24 = vmax.f32 %v317_v16, 0.0  ;;  %v288_v25 = vadd.f32 %v622_v21, %v774_v35  ;;  %v320_v26 = vadd.f32 %v630_v22, %v135_v7  ;;  %v279_v27 = vpop.f32.mrb[7].mxu0  ;;  %v311_v28 = vpop.f32.mrb[7].mxu1 }
  0xf1   :  { %v327_v29 = vmax.f32 %v277_v19, 0.0  ;;  %v335_v30 = vmax.f32 %v309_v20, 0.0  ;;  %v280_v31 = vadd.f32 %v279_v27, %v772_v33  ;;  %v312_v32 = vadd.f32 %v311_v28, %v776_v41 }
  0xf2   :  { %v585_v36 = vpack.c.bf16 %v329_v23, %v329_v23  ;;  %v593_v37 = vpack.c.bf16 %v337_v24, %v337_v24  ;;  %v330_v38 = vmax.f32 %v288_v25, 0.0  ;;  %v338_v34 = vmax.f32 %v320_v26, 0.0 }
  0xf3   :  { %v441_v39 = vld [vmem:[#allocation2 + $0x8] sm:$0xf]  ;;  %v583_v42 = vpack.c.bf16 %v327_v29, %v327_v29  ;;  %v591_v43 = vpack.c.bf16 %v335_v30, %v335_v30  ;;  %v328_v44 = vmax.f32 %v280_v31, 0.0  ;;  %v336_v45 = vmax.f32 %v312_v32, 0.0 }
  0xf4   :  { %v457_v40 = vld [vmem:[#allocation2 + $0x28] sm:$0xf]  ;;  %565 = vst [vmem:[%s849_s4 + $0x108] sm:$0xf] %v441_v39  ;;  %v437_v33 = vld [vmem:[#allocation2] sm:$0xf]  ;;  %v586_v41 = vpack.c.bf16 %v330_v38, %v330_v38  ;;  %v594_v46 = vpack.c.bf16 %v338_v34, %v338_v34 }
  0xf5   :  { %573 = vst [vmem:[%s849_s4 + $0x128] sm:$0xf] %v457_v40  ;;  %v453_v35 = vld [vmem:[#allocation2 + $0x20] sm:$0xf]  ;;  %410 = vst.msk [vmem:[#allocation2 + $0x18] sm:$0xf] %vm403_vm1, %v585_v36  ;;  %v584_v49 = vpack.c.bf16 %v328_v44, %v328_v44  ;;  %v592_v50 = vpack.c.bf16 %v336_v45, %v336_v45 }
  0xf6   :  { %418 = vst.msk [vmem:[#allocation2 + $0x38] sm:$0xf] %vm403_vm1, %v593_v37  ;;  %563 = vst [vmem:[%s849_s4 + $0x100] sm:$0xf] %v437_v33  ;;  %v443_v47 = vld [vmem:[#allocation2 + $0xc] sm:$0xf] }
  0xf7   :  { %571 = vst [vmem:[%s849_s4 + $0x120] sm:$0xf] %v453_v35  ;;  %v459_v48 = vld [vmem:[#allocation2 + $0x2c] sm:$0xf]  ;;  %408 = vst.msk [vmem:[#allocation2 + $0x10] sm:$0xf] %vm403_vm1, %v583_v42 }
  0xf8   :  { %416 = vst.msk [vmem:[#allocation2 + $0x30] sm:$0xf] %vm403_vm1, %v591_v43  ;;  %566 = vst [vmem:[%s849_s4 + $0x10c] sm:$0xf] %v443_v47  ;;  %v439_v51 = vld [vmem:[#allocation2 + $0x4] sm:$0xf] }
  0xf9   :  { %574 = vst [vmem:[%s849_s4 + $0x12c] sm:$0xf] %v459_v48  ;;  %v455_v52 = vld [vmem:[#allocation2 + $0x24] sm:$0xf]  ;;  %411 = vst.msk [vmem:[#allocation2 + $0x1c] sm:$0xf] %vm403_vm1, %v586_v41 }
  0xfa   :  { %419 = vst.msk [vmem:[#allocation2 + $0x3c] sm:$0xf] %vm403_vm1, %v594_v46  ;;  %564 = vst [vmem:[%s849_s4 + $0x104] sm:$0xf] %v439_v51 }
  0xfb   :  { %572 = vst [vmem:[%s849_s4 + $0x124] sm:$0xf] %v455_v52  ;;  %409 = vst.msk [vmem:[#allocation2 + $0x14] sm:$0xf] %vm403_vm1, %v584_v49 }
  0xfc   :  { %417 = vst.msk [vmem:[#allocation2 + $0x34] sm:$0xf] %vm403_vm1, %v592_v50  ;;  %v449_v53 = vld [vmem:[#allocation2 + $0x18] sm:$0xf] }
  0xfd   :  { %v465_v54 = vld [vmem:[#allocation2 + $0x38] sm:$0xf]  ;;  %569 = vst [vmem:[%s849_s4 + $0x118] sm:$0xf] %v449_v53 }
  0xfe   :  { %577 = vst [vmem:[%s849_s4 + $0x138] sm:$0xf] %v465_v54  ;;  %v445_v55 = vld [vmem:[#allocation2 + $0x10] sm:$0xf] }
  0xff   :  { %v461_v56 = vld [vmem:[#allocation2 + $0x30] sm:$0xf]  ;;  %567 = vst [vmem:[%s849_s4 + $0x110] sm:$0xf] %v445_v55 }
 0x100   :  { %575 = vst [vmem:[%s849_s4 + $0x130] sm:$0xf] %v461_v56  ;;  %v451_v57 = vld [vmem:[#allocation2 + $0x1c] sm:$0xf] }
 0x101   :  { %v467_v58 = vld [vmem:[#allocation2 + $0x3c] sm:$0xf]  ;;  %570 = vst [vmem:[%s849_s4 + $0x11c] sm:$0xf] %v451_v57 }
 0x102   :  { %578 = vst [vmem:[%s849_s4 + $0x13c] sm:$0xf] %v467_v58  ;;  %v447_v59 = vld [vmem:[#allocation2 + $0x14] sm:$0xf] }
 0x103   :  { %v463_v60 = vld [vmem:[#allocation2 + $0x34] sm:$0xf]  ;;  %568 = vst [vmem:[%s849_s4 + $0x114] sm:$0xf] %v447_v59 }
 0x104   :  { %576 = vst [vmem:[%s849_s4 + $0x134] sm:$0xf] %v463_v60 }

// kernel: cond1_forward.25
= control target key start
LH: loop header
LB: loop body
LE: loop exit
PB: predicated region body
PF: predicated region fallthrough
CT: control target
= control target key end

     0   :  { %v883_v1 = vmov 0   ;;  %vm567_vm0 = vcmask 523264   ;;  %vm699_vm1 = vcmask 11264   ;;  %s1108_s0 = inlined_call_operand.vmem [shape: bf16[128,2], index: 0, kind: input, shape index: {}]   ;;  %s1109_s1 = inlined_call_operand.vmem [shape: bf16[128,128], index: 1, kind: input, shape index: {}]   ;;  %s1110_s2 = inlined_call_operand.vmem [shape: f32[128,1], index: 2, kind: input, shape index: {}]   ;;  %s1111_s4 = inlined_call_operand.vmem [shape: f32[64,1], index: 4, kind: input, shape index: {}]   ;;  %s1112_s6 = inlined_call_operand.vmem [shape: f32[32,1], index: 6, kind: input, shape index: {}]   ;;  %s1113_s3 = inlined_call_operand.vmem [shape: bf16[64,128], index: 3, kind: input, shape index: {}]   ;;  %s1114_s5 = inlined_call_operand.vmem [shape: bf16[32,64], index: 5, kind: input, shape index: {}]   ;;  %s1115_s7 = inlined_call_operand.vmem [shape: bf16[32,2], index: 7, kind: output, shape index: {}]  }
   0x1   :  { %v845_v0 = vld [vmem:[%s1108_s0] sm:$0xff]   ;;  %843 = vset.pattern.permute.xlu0 %v883_v1  ;;  %844 = vset.pattern.permute.xlu1 %v883_v1  ;;  %v846_v2 = vld [vmem:[%s1108_s0 + $0x8] sm:$0xff]   ;;  %v847_v3 = vld [vmem:[%s1108_s0 + $0x10] sm:$0xff]  }
   0x2   :  { %774 = vmatprep.subr.bf16.mxu0 %v845_v0  ;;  %v848_v4 = vld [vmem:[%s1108_s0 + $0x18] sm:$0xff]   ;;  %v853_v5 = vld [vmem:[%s1109_s1] sm:$0xff]   ;;  %v850_v7 = vld [vmem:[%s1108_s0 + $0x28] sm:$0xff]  }
   0x3   :  { %775 = vmatpush3.bf16.msra.mxu0 %v845_v0  ;;  %790 = vmatprep.mubr.bf16.mxu0 %v853_v5  ;;  %v849_v6 = vld [vmem:[%s1108_s0 + $0x20] sm:$0xff]   ;;  %v61_v9 = vld [vmem:[%s1110_s2 + $0x10] sm:$0xff]  ;;  %v60_v10 = vld [vmem:[%s1110_s2 + $0x8] sm:$0xff] }
   0x4   :  { %776 = vmatprep.subr.bf16.mxu0 %v846_v2  ;;  %v59_v8 = vld [vmem:[%s1110_s2] sm:$0xff]  ;;  %87 = vperm.xlu1 %844, %v61_v9   ;;  %v62_v11 = vld [vmem:[%s1110_s2 + $0x18] sm:$0xff]  ;;  %v851_v12 = vld [vmem:[%s1108_s0 + $0x30] sm:$0xff]  }
   0x5   :  { %77 = vperm.xlu0 %843, %v59_v8   ;;  %v63_v13 = vld [vmem:[%s1110_s2 + $0x20] sm:$0xff]  ;;  %v64_v14 = vld [vmem:[%s1110_s2 + $0x28] sm:$0xff]  ;;  %v852_v15 = vld [vmem:[%s1108_s0 + $0x38] sm:$0xff]  }
   0x6   :  { %v65_v16 = vld [vmem:[%s1110_s2 + $0x30] sm:$0xff]  ;;  %v66_v17 = vld [vmem:[%s1110_s2 + $0x38] sm:$0xff]  ;;  %v854_v18 = vld [vmem:[%s1109_s1 + $0x8] sm:$0xff]  }
   0x7   :  { %777 = vmatpush3.bf16.msra.mxu0 %v846_v2  ;;  %v67_v19 = vld [vmem:[%s1110_s2 + $0x40] sm:$0xff]  ;;  %v68_v20 = vld [vmem:[%s1110_s2 + $0x48] sm:$0xff]  ;;  %v855_v21 = vld [vmem:[%s1109_s1 + $0x10] sm:$0xff]  }
   0x8   :  { %778 = vmatprep.subr.bf16.mxu0 %v847_v3  ;;  %92 = vperm.xlu1 %844, %v62_v11   ;;  %v69_v22 = vld [vmem:[%s1110_s2 + $0x50] sm:$0xff]  ;;  %v70_v23 = vld [vmem:[%s1110_s2 + $0x58] sm:$0xff]  ;;  %v71_v25 = vld [vmem:[%s1110_s2 + $0x60] sm:$0xff] }
   0x9   :  { %82 = vperm.xlu0 %843, %v60_v10   ;;  %v856_v24 = vld [vmem:[%s1109_s1 + $0x18] sm:$0xff]   ;;  %v72_v26 = vld [vmem:[%s1110_s2 + $0x68] sm:$0xff]  ;;  %v857_v27 = vld [vmem:[%s1109_s1 + $0x20] sm:$0xff]  }
   0xa   :  { %v73_v28 = vld [vmem:[%s1110_s2 + $0x70] sm:$0xff]  ;;  %v74_v29 = vld [vmem:[%s1110_s2 + $0x78] sm:$0xff]  ;;  %v858_v30 = vld [vmem:[%s1109_s1 + $0x28] sm:$0xff]  }
   0xb   :  { %779 = vmatpush3.bf16.msra.mxu0 %v847_v3  ;;  %v380_v31 = vld [vmem:[%s1111_s4] sm:$0xff]  ;;  %v381_v32 = vld [vmem:[%s1111_s4 + $0x8] sm:$0xff]  ;;  %v859_v33 = vld [vmem:[%s1109_s1 + $0x30] sm:$0xff]  }
   0xc   :  { %780 = vmatprep.subr.bf16.mxu0 %v848_v4  ;;  %102 = vperm.xlu1 %844, %v64_v14   ;;  %v382_v34 = vld [vmem:[%s1111_s4 + $0x10] sm:$0xff]  ;;  %v383_v35 = vld [vmem:[%s1111_s4 + $0x18] sm:$0xff]  ;;  %v384_v37 = vld [vmem:[%s1111_s4 + $0x20] sm:$0xff] }
   0xd   :  { %97 = vperm.xlu0 %843, %v63_v13   ;;  %v860_v36 = vld [vmem:[%s1109_s1 + $0x38] sm:$0xff]   ;;  %v385_v38 = vld [vmem:[%s1111_s4 + $0x28] sm:$0xff]  ;;  %v386_v39 = vld [vmem:[%s1111_s4 + $0x30] sm:$0xff] }
   0xe   :  { %v387_v40 = vld [vmem:[%s1111_s4 + $0x38] sm:$0xff]  ;;  %v533_v41 = vld [vmem:[%s1112_s6] sm:$0xff]  ;;  %v534_v42 = vld [vmem:[%s1112_s6 + $0x8] sm:$0xff] }
   0xf   :  { %781 = vmatpush3.bf16.msra.mxu0 %v848_v4  ;;  %v535_v43 = vld [vmem:[%s1112_s6 + $0x10] sm:$0xff]  ;;  %v536_v44 = vld [vmem:[%s1112_s6 + $0x18] sm:$0xff]  ;;  %v861_v45 = vld [vmem:[%s1113_s3] sm:$0xff]  }
  0x10   :  { %782 = vmatprep.subr.bf16.mxu0 %v849_v6  ;;  %112 = vperm.xlu1 %844, %v66_v17  }
  0x11   :  { %107 = vperm.xlu0 %843, %v65_v16   ;;  %822 = vmatprep.mubr.bf16.mxu1 %v861_v45 }
  0x13   :  { %783 = vmatpush3.bf16.msra.mxu0 %v849_v6 }
  0x14   :  { %784 = vmatprep.subr.bf16.mxu0 %v850_v7  ;;  %122 = vperm.xlu1 %844, %v68_v20  }
  0x15   :  { %117 = vperm.xlu0 %843, %v67_v19  }
  0x17   :  { %785 = vmatpush3.bf16.msra.mxu0 %v850_v7 }
  0x18   :  { %786 = vmatprep.subr.bf16.mxu0 %v851_v12  ;;  %132 = vperm.xlu1 %844, %v70_v23  }
  0x19   :  { %127 = vperm.xlu0 %843, %v69_v22  }
  0x1b   :  { %787 = vmatpush3.bf16.msra.mxu0 %v851_v12 }
  0x1c   :  { %788 = vmatprep.subr.bf16.mxu0 %v852_v15  ;;  %142 = vperm.xlu1 %844, %v72_v26  }
  0x1d   :  { %137 = vperm.xlu0 %843, %v71_v25  }
  0x1f   :  { %789 = vmatpush3.bf16.msra.mxu0 %v852_v15 }
  0x20   :  { %152 = vperm.xlu1 %844, %v74_v29  }
  0x21   :  { %147 = vperm.xlu0 %843, %v73_v28  }
  0x22   :  { %791 = vmatmul.mubr.bf16.vlgmr.msra.gmra.mrb[0].mxu0 %v854_v18 }
  0x23   :  { %794 = vmatprep.mubr.bf16.mxu0 %v855_v21 }
  0x24   :  { %395 = vperm.xlu1 %844, %v381_v32  }
  0x25   :  { %390 = vperm.xlu0 %843, %v380_v31  }
  0x28   :  { %405 = vperm.xlu1 %844, %v383_v35  }
  0x29   :  { %400 = vperm.xlu0 %843, %v382_v34  }
  0x2a   :  { %795 = vmatmul.mubr.bf16.gmra.mrb[4].mxu0 %v856_v24 }
  0x2b   :  { %798 = vmatprep.mubr.bf16.mxu0 %v857_v27 }
  0x2c   :  { %415 = vperm.xlu1 %844, %v385_v38  }
  0x2d   :  { %410 = vperm.xlu0 %843, %v384_v37  }
  0x30   :  { %425 = vperm.xlu1 %844, %v387_v40  }
  0x31   :  { %420 = vperm.xlu0 %843, %v386_v39  }
  0x32   :  { %799 = vmatmul.mubr.bf16.gmra.mrb[8].mxu0 %v858_v30 }
  0x33   :  { %802 = vmatprep.mubr.bf16.mxu0 %v859_v33 }
  0x34   :  { %544 = vperm.xlu1 %844, %v534_v42  }
  0x35   :  { %539 = vperm.xlu0 %843, %v533_v41  }
  0x38   :  { %554 = vperm.xlu1 %844, %v536_v44  }
  0x39   :  { %549 = vperm.xlu0 %843, %v535_v43  }
  0x3a   :  { %803 = vmatmul.mubr.bf16.gmra.mrb[12].mxu0 %v860_v36 }
  0x83   :  { %v88_v47 = vpop.permute.xlu1 %87 }
  0x84   :  { %v78_v46 = vpop.permute.xlu0 %77 }
  0x87   :  { %v93_v49 = vpop.permute.xlu1 %92 }
  0x88   :  { %v83_v48 = vpop.permute.xlu0 %82 }
  0x8b   :  { %v103_v51 = vpop.permute.xlu1 %102 }
  0x8c   :  { %v98_v50 = vpop.permute.xlu0 %97 }
  0x8f   :  { %v113_v56 = vpop.permute.xlu1 %112 }
  0x90   :  { %v108_v52 = vpop.permute.xlu0 %107 }
  0x93   :  { %v123_v4 = vpop.permute.xlu1 %122 }
  0x94   :  { %v118_v0 = vpop.permute.xlu0 %117 }
  0x97   :  { %v133_v17 = vpop.permute.xlu1 %132 }
  0x98   :  { %v128_v13 = vpop.permute.xlu0 %127 }
  0x9b   :  { %v143_v30 = vpop.permute.xlu1 %142 }
  0x9c   :  { %v138_v25 = vpop.permute.xlu0 %137 }
  0x9f   :  { %v153_v42 = vpop.permute.xlu1 %152 }
  0xa0   :  { %v148_v37 = vpop.permute.xlu0 %147 }
  0xf5   :  { %v792_v53 = vpop.f32.mrb[0].mxu0 }
  0xf6   :  { %v294_v54 = vadd.f32 %v792_v53, %v88_v47  ;;  %v285_v55 = vpop.f32.mrb[1].mxu0 }
  0xf7   :  { %v286_v57 = vadd.f32 %v285_v55, %v78_v46  ;;  %v793_v58 = vpop.f32.mrb[2].mxu0  ;;  %v863_v55 = vld [vmem:[%s1113_s3 + $0x10] sm:$0xff]  }
  0xf8   :  { %v297_v59 = vadd.f32 %v793_v58, %v93_v49  ;;  %v288_v60 = vpop.f32.mrb[3].mxu0  ;;  %v350_v62 = vmax.f32 %v294_v54, 0.0  ;;  %v862_v54 = vld [vmem:[%s1113_s3 + $0x8] sm:$0xff]   ;;  %v391_v58 = vpop.permute.xlu0 %390 }
  0xf9   :  { %v289_v61 = vadd.f32 %v288_v60, %v83_v48  ;;  %v348_v1 = vmax.f32 %v286_v57, 0.0  ;;  %v865_v57 = vld [vmem:[%s1114_s5] sm:$0xff]  }
  0xfa   :  { %v351_v63 = vmax.f32 %v297_v59, 0.0  ;;  %v396_v59 = vpop.permute.xlu1 %395 }
  0xfb   :  { %v349_v2 = vmax.f32 %v289_v61, 0.0 }
  0xfc   :  { %v365_v3 = vpack.c.bf16 %v351_v63, %v350_v62  ;;  %v401_v60 = vpop.permute.xlu0 %400 }
  0xfd   :  { %v796_v5 = vpop.f32.mrb[4].mxu0  ;;  %v364_v6 = vpack.c.bf16 %v349_v2, %v348_v1 }
  0xfe   :  { %v310_v7 = vadd.f32 %v796_v5, %v108_v52  ;;  %v301_v8 = vpop.f32.mrb[5].mxu0  ;;  %v406_v61 = vpop.permute.xlu1 %405 }
  0xff   :  { %v302_v9 = vadd.f32 %v301_v8, %v98_v50  ;;  %v797_v10 = vpop.f32.mrb[6].mxu0  ;;  %806 = vmatprep.subr.bf16.mxu1 %v364_v6 }
 0x100   :  { %v313_v11 = vadd.f32 %v797_v10, %v113_v56  ;;  %v304_v12 = vpop.f32.mrb[7].mxu0  ;;  %807 = vmatpush3.bf16.msra.mxu1 %v364_v6  ;;  %v354_v15 = vmax.f32 %v310_v7, 0.0  ;;  %v864_v56 = vld [vmem:[%s1113_s3 + $0x18] sm:$0xff]   ;;  %v411_v1 = vpop.permute.xlu0 %410 }
 0x101   :  { %v305_v14 = vadd.f32 %v304_v12, %v103_v51  ;;  %808 = vmatprep.subr.bf16.mxu1 %v365_v3  ;;  %v352_v18 = vmax.f32 %v302_v9, 0.0 }
 0x102   :  { %v355_v16 = vmax.f32 %v313_v11, 0.0  ;;  %v416_v6 = vpop.permute.xlu1 %415 }
 0x103   :  { %v353_v19 = vmax.f32 %v305_v14, 0.0 }
 0x104   :  { %v367_v20 = vpack.c.bf16 %v355_v16, %v354_v15  ;;  %809 = vmatpush3.bf16.msra.mxu1 %v365_v3 }
 0x105   :  { %v366_v21 = vpack.c.bf16 %v353_v19, %v352_v18  ;;  %v800_v22 = vpop.f32.mrb[8].mxu0 }
 0x106   :  { %v326_v23 = vadd.f32 %v800_v22, %v128_v13  ;;  %v317_v24 = vpop.f32.mrb[9].mxu0  ;;  %v421_v13 = vpop.permute.xlu0 %420 }
 0x107   :  { %v318_v26 = vadd.f32 %v317_v24, %v118_v0  ;;  %v801_v27 = vpop.f32.mrb[10].mxu0  ;;  %810 = vmatprep.subr.bf16.mxu1 %v366_v21  ;;  %v426_v18 = vpop.permute.xlu1 %425 }
 0x108   :  { %v329_v28 = vadd.f32 %v801_v27, %v133_v17  ;;  %v320_v29 = vpop.f32.mrb[11].mxu0  ;;  %811 = vmatpush3.bf16.msra.mxu1 %v366_v21  ;;  %v358_v32 = vmax.f32 %v326_v23, 0.0 }
 0x109   :  { %v321_v31 = vadd.f32 %v320_v29, %v123_v4  ;;  %812 = vmatprep.subr.bf16.mxu1 %v367_v20  ;;  %v356_v34 = vmax.f32 %v318_v26, 0.0 }
 0x10a   :  { %v359_v33 = vmax.f32 %v329_v28, 0.0 }
 0x10b   :  { %v357_v35 = vmax.f32 %v321_v31, 0.0  ;;  %v540_v31 = vpop.permute.xlu0 %539 }
 0x10c   :  { %v369_v36 = vpack.c.bf16 %v359_v33, %v358_v32  ;;  %813 = vmatpush3.bf16.msra.mxu1 %v367_v20  ;;  %v545_v32 = vpop.permute.xlu1 %544 }
 0x10d   :  { %v368_v38 = vpack.c.bf16 %v357_v35, %v356_v34  ;;  %v804_v39 = vpop.f32.mrb[12].mxu0 }
 0x10e   :  { %v342_v40 = vadd.f32 %v804_v39, %v148_v37  ;;  %v333_v41 = vpop.f32.mrb[13].mxu0 }
 0x10f   :  { %v334_v43 = vadd.f32 %v333_v41, %v138_v25  ;;  %v805_v44 = vpop.f32.mrb[14].mxu0  ;;  %814 = vmatprep.subr.bf16.mxu1 %v368_v38  ;;  %v550_v33 = vpop.permute.xlu0 %549 }
 0x110   :  { %v345_v45 = vadd.f32 %v805_v44, %v153_v42  ;;  %v336_v46 = vpop.f32.mrb[15].mxu0  ;;  %815 = vmatpush3.bf16.msra.mxu1 %v368_v38  ;;  %v362_v48 = vmax.f32 %v342_v40, 0.0  ;;  %v555_v37 = vpop.permute.xlu1 %554 }
 0x111   :  { %v337_v47 = vadd.f32 %v336_v46, %v143_v30  ;;  %816 = vmatprep.subr.bf16.mxu1 %v369_v36  ;;  %v360_v50 = vmax.f32 %v334_v43, 0.0  ;;  %v866_v30 = vld [vmem:[%s1114_s5 + $0x8] sm:$0xff]  }
 0x112   :  { %v363_v49 = vmax.f32 %v345_v45, 0.0 }
 0x113   :  { %v361_v51 = vmax.f32 %v337_v47, 0.0 }
 0x114   :  { %v371_v52 = vpack.c.bf16 %v363_v49, %v362_v48  ;;  %817 = vmatpush3.bf16.msra.mxu1 %v369_v36 }
 0x115   :  { %v370_v53 = vpack.c.bf16 %v361_v51, %v360_v50 }
 0x117   :  { %818 = vmatprep.subr.bf16.mxu1 %v370_v53 }
 0x118   :  { %819 = vmatpush3.bf16.msra.mxu1 %v370_v53 }
 0x119   :  { %820 = vmatprep.subr.bf16.mxu1 %v371_v52 }
 0x11c   :  { %821 = vmatpush3.bf16.msra.mxu1 %v371_v52 }
 0x11f   :  { %823 = vmatmul.mubr.bf16.vlgmr.msra.gmra.mrb[0].mxu1 %v862_v54 }
 0x120   :  { %826 = vmatprep.mubr.bf16.mxu1 %v863_v55 }
 0x127   :  { %827 = vmatmul.mubr.bf16.gmra.mrb[4].mxu1 %v864_v56 }
 0x128   :  { %838 = vmatprep.mubr.msk.bf16.mxu1 %vm567_vm0, %v865_v57 }
 0x1f2   :  { %v824_v62 = vpop.f32.mrb[0].mxu1 }
 0x1f3   :  { %v495_v63 = vadd.f32 %v824_v62, %v401_v60  ;;  %v486_v0 = vpop.f32.mrb[1].mxu1 }
 0x1f4   :  { %v487_v2 = vadd.f32 %v486_v0, %v391_v58  ;;  %v825_v3 = vpop.f32.mrb[2].mxu1 }
 0x1f5   :  { %v498_v4 = vadd.f32 %v825_v3, %v406_v61  ;;  %v489_v5 = vpop.f32.mrb[3].mxu1  ;;  %v519_v8 = vmax.f32 %v495_v63, 0.0 }
 0x1f6   :  { %v490_v7 = vadd.f32 %v489_v5, %v396_v59  ;;  %v517_v10 = vmax.f32 %v487_v2, 0.0 }
 0x1f7   :  { %v520_v9 = vmax.f32 %v498_v4, 0.0 }
 0x1f8   :  { %v518_v11 = vmax.f32 %v490_v7, 0.0 }
 0x1f9   :  { %v526_v12 = vpack.c.bf16 %v520_v9, %v519_v8 }
 0x1fa   :  { %v525_v14 = vpack.c.bf16 %v518_v11, %v517_v10  ;;  %v828_v15 = vpop.f32.mrb[4].mxu1 }
 0x1fb   :  { %v511_v16 = vadd.f32 %v828_v15, %v421_v13  ;;  %v502_v17 = vpop.f32.mrb[5].mxu1 }
 0x1fc   :  { %v503_v19 = vadd.f32 %v502_v17, %v411_v1  ;;  %v829_v20 = vpop.f32.mrb[6].mxu1  ;;  %830 = vmatprep.subr.bf16.mxu1 %v525_v14 }
 0x1fd   :  { %v514_v21 = vadd.f32 %v829_v20, %v426_v18  ;;  %v505_v22 = vpop.f32.mrb[7].mxu1  ;;  %831 = vmatpush3.bf16.msra.mxu1 %v525_v14  ;;  %v523_v24 = vmax.f32 %v511_v16, 0.0 }
 0x1fe   :  { %v506_v23 = vadd.f32 %v505_v22, %v416_v6  ;;  %832 = vmatprep.subr.bf16.mxu1 %v526_v12  ;;  %v521_v26 = vmax.f32 %v503_v19, 0.0 }
 0x1ff   :  { %v524_v25 = vmax.f32 %v514_v21, 0.0 }
 0x200   :  { %v522_v27 = vmax.f32 %v506_v23, 0.0 }
 0x201   :  { %v528_v28 = vpack.c.bf16 %v524_v25, %v523_v24  ;;  %833 = vmatpush3.bf16.msra.mxu1 %v526_v12 }
 0x202   :  { %v527_v29 = vpack.c.bf16 %v522_v27, %v521_v26 }
 0x204   :  { %834 = vmatprep.subr.bf16.mxu1 %v527_v29 }
 0x205   :  { %835 = vmatpush3.bf16.msra.mxu1 %v527_v29 }
 0x206   :  { %836 = vmatprep.subr.bf16.mxu1 %v528_v28 }
 0x209   :  { %837 = vmatpush3.bf16.msra.mxu1 %v528_v28 }
 0x20c   :  { %839 = vmatmul.mubr.msk.bf16.vlgmr.msra.gmra.mrb[8].mxu1 %vm567_vm0, %v866_v30 }
 0x2df   :  { %v840_v34 = vpop.f32.mrb[8].mxu1 }
 0x2e0   :  { %v1076_v35 = vadd.f32 %v840_v34, %v550_v33  ;;  %v608_v36 = vpop.f32.mrb[9].mxu1 }
 0x2e1   :  { %v1078_v38 = vadd.f32 %v608_v36, %v540_v31  ;;  %v841_v39 = vpop.f32.mrb[10].mxu1 }
 0x2e2   :  { %v629_v40 = vand.u32 2147483647, %v1076_v35  ;;  %v1081_v41 = vadd.f32 %v841_v39, %v555_v37  ;;  %v611_v42 = vpop.f32.mrb[11].mxu1  ;;  %v625_v9 = vmin.f32 %v1076_v35, 0.0 }
 0x2e3   :  { %v627_v43 = vand.u32 2147483647, %v1078_v38  ;;  %v1084_v44 = vadd.f32 %v611_v42, %v545_v32  ;;  %v623_v14 = vmin.f32 %v1078_v38, 0.0 }
 0x2e4   :  { %v633_v45 = vsub.f32 0.0, %v629_v40  ;;  %v630_v46 = vand.u32 2147483647, %v1081_v41  ;;  %v626_v26 = vmin.f32 %v1081_v41, 0.0 }
 0x2e5   :  { %v631_v47 = vsub.f32 0.0, %v627_v43  ;;  %v628_v48 = vand.u32 2147483647, %v1084_v44  ;;  %v624_v33 = vmin.f32 %v1084_v44, 0.0 }
 0x2e6   :  { %v639_v49 = vmul.f32 1.442695, %v633_v45  ;;  %v634_v50 = vsub.f32 0.0, %v630_v46 }
 0x2e7   :  { %v635_v51 = vmul.f32 1.442695, %v631_v47  ;;  %v632_v52 = vsub.f32 0.0, %v628_v48 }
 0x2e8   :  { %867 = vpow2.f32 %v639_v49  ;;  %v641_v53 = vmul.f32 1.442695, %v634_v50 }
 0x2e9   :  { %869 = vpow2.f32 %v635_v51  ;;  %v637_v54 = vmul.f32 1.442695, %v632_v52 }
 0x2ea   :  { %871 = vpow2.f32 %v641_v53 }
 0x2eb   :  { %873 = vpow2.f32 %v637_v54 }
 0x2f2   :  { %v868_v55 = vpop.eup %867 }
 0x2f3   :  { %v870_v56 = vpop.eup %869  ;;  %v661_v57 = vadd.f32 1.0, %v868_v55  ;;  %v664_v63 = vmul.f32 -0.5, %v868_v55  ;;  %v667_v4 = vand.u32 2147483647, %v868_v55 }
 0x2f4   :  { %v872_v58 = vpop.eup %871  ;;  %v643_v59 = vadd.f32 1.0, %v870_v56  ;;  %v646_v0 = vmul.f32 -0.5, %v870_v56  ;;  %v649_v6 = vand.u32 2147483647, %v870_v56 }
 0x2f5   :  { %v874_v60 = vpop.eup %873  ;;  %875 = vlog2.f32 %v661_v57  ;;  %v670_v61 = vadd.f32 1.0, %v872_v58  ;;  %v673_v1 = vmul.f32 -0.5, %v872_v58  ;;  %v665_v2 = vadd.f32 1.0, %v664_v63 }
 0x2f6   :  { %877 = vlog2.f32 %v643_v59  ;;  %v652_v62 = vadd.f32 1.0, %v874_v60  ;;  %v655_v3 = vmul.f32 -0.5, %v874_v60  ;;  %v647_v5 = vadd.f32 1.0, %v646_v0 }
 0x2f7   :  { %879 = vlog2.f32 %v670_v61  ;;  %v674_v7 = vadd.f32 1.0, %v673_v1  ;;  %v676_v10 = vand.u32 2147483647, %v872_v58  ;;  %v666_v13 = vmul.f32 %v868_v55, %v665_v2 }
 0x2f8   :  { %881 = vlog2.f32 %v652_v62  ;;  %v656_v15 = vadd.f32 1.0, %v655_v3  ;;  %vm668_vm2 = vcmp.lt.f32.partialorder %v667_v4, 0.0004427343  ;;  %v648_v18 = vmul.f32 %v870_v56, %v647_v5 }
 0x2f9   :  { %v658_v19 = vand.u32 2147483647, %v874_v60  ;;  %vm650_vm3 = vcmp.lt.f32.partialorder %v649_v6, 0.0004427343  ;;  %v675_v22 = vmul.f32 %v872_v58, %v674_v7  ;;  %vm677_vm4 = vcmp.lt.f32.partialorder %v676_v10, 0.0004427343 }
 0x2fa   :  { %v657_v30 = vmul.f32 %v874_v60, %v656_v15 }
 0x2fb   :  { %vm659_vm5 = vcmp.lt.f32.partialorder %v658_v19, 0.0004427343 }
 0x2ff   :  { %v876_v8 = vpop.eup %875 }
 0x300   :  { %v878_v11 = vpop.eup %877  ;;  %v663_v12 = vmul.f32 0.6931472, %v876_v8 }
 0x301   :  { %v880_v16 = vpop.eup %879  ;;  %v645_v17 = vmul.f32 0.6931472, %v878_v11 }
 0x302   :  { %v669_v20 = vsel %vm668_vm2, %v666_v13, %v663_v12  ;;  %v672_v21 = vmul.f32 0.6931472, %v880_v16  ;;  %v882_v23 = vpop.eup %881 }
 0x303   :  { %v681_v24 = vsub.f32 %v625_v9, %v669_v20  ;;  %v651_v25 = vsel %vm650_vm3, %v648_v18, %v645_v17  ;;  %v654_v29 = vmul.f32 0.6931472, %v882_v23 }
 0x304   :  { %v679_v27 = vsub.f32 %v623_v14, %v651_v25  ;;  %v678_v28 = vsel %vm677_vm4, %v675_v22, %v672_v21 }
 0x305   :  { %v738_v31 = vpack.c.bf16 %v681_v24, %v681_v24  ;;  %v682_v32 = vsub.f32 %v626_v26, %v678_v28  ;;  %v660_v35 = vsel %vm659_vm5, %v657_v30, %v654_v29 }
 0x306   :  { %v736_v34 = vpack.c.bf16 %v679_v27, %v679_v27  ;;  %v680_v37 = vsub.f32 %v624_v33, %v660_v35 }
 0x307   :  { %702 = vst.msk [vmem:[%s1115_s7 + $0x8] sm:$0xf] %vm699_vm1, %v738_v31  ;;  %v739_v36 = vpack.c.bf16 %v682_v32, %v682_v32 }
 0x308   :  { %700 = vst.msk [vmem:[%s1115_s7] sm:$0xf] %vm699_vm1, %v736_v34  ;;  %v737_v38 = vpack.c.bf16 %v680_v37, %v680_v37 }
 0x309   :  { %703 = vst.msk [vmem:[%s1115_s7 + $0xc] sm:$0xf] %vm699_vm1, %v739_v36 }
 0x30a   :  { %701 = vst.msk [vmem:[%s1115_s7 + $0x4] sm:$0xf] %vm699_vm1, %v737_v38 }

// kernel: cond1_forward.32
= control target key start
LH: loop header
LB: loop body
LE: loop exit
PB: predicated region body
PF: predicated region fallthrough
CT: control target
= control target key end

     0   :  { %v506_v1 = vmov 0   ;;  %vm119_vm0 = vcmask 261120   ;;  %vm247_vm1 = vcmask 523264   ;;  %v507_v59 = vmov 0.0   ;;  %s631_s0 = inlined_call_operand.vmem [shape: bf16[32,54], index: 0, kind: input, shape index: {}]   ;;  %s632_s1 = inlined_call_operand.vmem [shape: bf16[64,32], index: 1, kind: input, shape index: {}]   ;;  %s633_s2 = inlined_call_operand.vmem [shape: f32[64,1], index: 2, kind: input, shape index: {}]   ;;  %s634_s4 = inlined_call_operand.vmem [shape: f32[32,1], index: 4, kind: input, shape index: {}]   ;;  %s635_s6 = inlined_call_operand.vmem [shape: f32[16,1], index: 6, kind: input, shape index: {}]   ;;  %s636_s3 = inlined_call_operand.vmem [shape: bf16[32,64], index: 3, kind: input, shape index: {}]   ;;  %s637_s5 = inlined_call_operand.vmem [shape: bf16[16,32], index: 5, kind: input, shape index: {}]   ;;  %s638_s7 = inlined_call_operand.vmem [shape: bf16[16,54], index: 7, kind: output, shape index: {}]  }
   0x1   :  { %v489_v0 = vld [vmem:[%s631_s0] sm:$0xff]   ;;  %487 = vset.pattern.permute.xlu0 %v506_v1  ;;  %488 = vset.pattern.permute.xlu1 %v506_v1  ;;  %v490_v2 = vld [vmem:[%s631_s0 + $0x8] sm:$0xff]   ;;  %v41_v6 = vld [vmem:[%s633_s2 + $0x10] sm:$0xff]  ;;  %vm508_vm2 = vmmov 0   ;;  %vm410_vm5 = vcmask 437248  }
   0x2   :  { %452 = vmatprep.subr.bf16.mxu0 %v489_v0  ;;  %v491_v3 = vld [vmem:[%s632_s1] sm:$0xff]   ;;  %v492_v4 = vld [vmem:[%s632_s1 + $0x8] sm:$0xff]   ;;  %v493_v7 = vld [vmem:[%s632_s1 + $0x10] sm:$0xff]   ;;  %59 = vperm.xlu1 %488, %v41_v6  }
   0x3   :  { %453 = vmatpush3.bf16.msra.mxu0 %v489_v0  ;;  %456 = vmatprep.mubr.msk.bf16.mxu0 %vm119_vm0, %v491_v3  ;;  %v39_v5 = vld [vmem:[%s633_s2] sm:$0xff]  ;;  %v40_v8 = vld [vmem:[%s633_s2 + $0x8] sm:$0xff]  ;;  %v42_v9 = vld [vmem:[%s633_s2 + $0x18] sm:$0xff] }
   0x4   :  { %454 = vmatprep.subr.bf16.mxu0 %v490_v2  ;;  %49 = vperm.xlu0 %487, %v39_v5   ;;  %v43_v10 = vld [vmem:[%s633_s2 + $0x20] sm:$0xff]  ;;  %v44_v11 = vld [vmem:[%s633_s2 + $0x28] sm:$0xff]  ;;  %v494_v12 = vld [vmem:[%s632_s1 + $0x18] sm:$0xff]  }
   0x5   :  { %v45_v13 = vld [vmem:[%s633_s2 + $0x30] sm:$0xff]  ;;  %v46_v14 = vld [vmem:[%s633_s2 + $0x38] sm:$0xff]  ;;  %v213_v15 = vld [vmem:[%s634_s4] sm:$0xff] }
   0x6   :  { %64 = vperm.xlu1 %488, %v42_v9   ;;  %v214_v16 = vld [vmem:[%s634_s4 + $0x8] sm:$0xff]  ;;  %v215_v17 = vld [vmem:[%s634_s4 + $0x10] sm:$0xff]  ;;  %v216_v18 = vld [vmem:[%s634_s4 + $0x18] sm:$0xff] }
   0x7   :  { %455 = vmatpush3.bf16.msra.mxu0 %v490_v2  ;;  %v311_v19 = vld [vmem:[%s635_s6] sm:$0xff]  ;;  %v312_v20 = vld [vmem:[%s635_s6 + $0x8] sm:$0xff] }
   0x8   :  { %54 = vperm.xlu0 %487, %v40_v8   ;;  %v495_v21 = vld [vmem:[%s636_s3] sm:$0xff]   ;;  %v496_v58 = vld [vmem:[%s636_s3 + $0x8] sm:$0xff]   ;;  %476 = vmatprep.subr.bf16.mxu0 %v507_v59 }
   0x9   :  { %472 = vmatprep.mubr.msk.bf16.mxu1 %vm247_vm1, %v495_v21 }
   0xa   :  { %457 = vmatmul.mubr.msk.bf16.vlgmr.msra.gmra.mrb[0].mxu0 %vm119_vm0, %v492_v4  ;;  %74 = vperm.xlu1 %488, %v44_v11  }
   0xb   :  { %460 = vmatprep.mubr.msk.bf16.mxu0 %vm119_vm0, %v493_v7 }
   0xc   :  { %69 = vperm.xlu0 %487, %v43_v10  }
   0xe   :  { %84 = vperm.xlu1 %488, %v46_v14   ;;  %v497_v14 = vld [vmem:[%s637_s5] sm:$0xff]  }
  0x10   :  { %79 = vperm.xlu0 %487, %v45_v13  }
  0x12   :  { %461 = vmatmul.mubr.msk.bf16.gmra.mrb[4].mxu0 %vm119_vm0, %v494_v12  ;;  %224 = vperm.xlu1 %488, %v214_v16  }
  0x13   :  { %480 = vmatprep.mubr.msk.bf16.mxu0 %vm508_vm2, %v507_v59 }
  0x14   :  { %219 = vperm.xlu0 %487, %v213_v15  }
  0x16   :  { %234 = vperm.xlu1 %488, %v216_v18  }
  0x18   :  { %229 = vperm.xlu0 %487, %v215_v17  }
  0x1a   :  { %320 = vperm.xlu1 %488, %v312_v20  }
  0x1c   :  { %315 = vperm.xlu0 %487, %v311_v19  }
  0x81   :  { %v60_v23 = vpop.permute.xlu1 %59 }
  0x83   :  { %v50_v22 = vpop.permute.xlu0 %49 }
  0x85   :  { %v65_v25 = vpop.permute.xlu1 %64 }
  0x87   :  { %v55_v24 = vpop.permute.xlu0 %54 }
  0x89   :  { %v75_v34 = vpop.permute.xlu1 %74 }
  0x8b   :  { %v70_v29 = vpop.permute.xlu0 %69 }
  0x8d   :  { %v85_v46 = vpop.permute.xlu1 %84 }
  0x8f   :  { %v80_v41 = vpop.permute.xlu0 %79 }
  0x91   :  { %v225_v61 = vpop.permute.xlu1 %224 }
  0x93   :  { %v220_v60 = vpop.permute.xlu0 %219 }
  0x95   :  { %v235_v2 = vpop.permute.xlu1 %234 }
  0x97   :  { %v230_v62 = vpop.permute.xlu0 %229 }
  0x99   :  { %v321_v19 = vpop.permute.xlu1 %320 }
  0x9b   :  { %v316_v15 = vpop.permute.xlu0 %315 }
  0xdd   :  { %v458_v26 = vpop.f32.mrb[0].mxu0 }
  0xde   :  { %v175_v27 = vadd.f32 %v458_v26, %v60_v23  ;;  %v166_v28 = vpop.f32.mrb[1].mxu0 }
  0xdf   :  { %v167_v30 = vadd.f32 %v166_v28, %v50_v22  ;;  %v459_v31 = vpop.f32.mrb[2].mxu0 }
  0xe0   :  { %v178_v32 = vadd.f32 %v459_v31, %v65_v25  ;;  %v169_v33 = vpop.f32.mrb[3].mxu0  ;;  %v199_v36 = vmax.f32 %v175_v27, 0.0 }
  0xe1   :  { %v170_v35 = vadd.f32 %v169_v33, %v55_v24  ;;  %v197_v38 = vmax.f32 %v167_v30, 0.0 }
  0xe2   :  { %v200_v37 = vmax.f32 %v178_v32, 0.0 }
  0xe3   :  { %v198_v39 = vmax.f32 %v170_v35, 0.0 }
  0xe4   :  { %v206_v40 = vpack.c.bf16 %v200_v37, %v199_v36 }
  0xe5   :  { %v462_v42 = vpop.f32.mrb[4].mxu0  ;;  %v205_v43 = vpack.c.bf16 %v198_v39, %v197_v38 }
  0xe6   :  { %v191_v44 = vadd.f32 %v462_v42, %v80_v41  ;;  %v182_v45 = vpop.f32.mrb[5].mxu0 }
  0xe7   :  { %v183_v47 = vadd.f32 %v182_v45, %v70_v29  ;;  %v463_v48 = vpop.f32.mrb[6].mxu0  ;;  %464 = vmatprep.subr.bf16.mxu1 %v205_v43 }
  0xe8   :  { %v194_v49 = vadd.f32 %v463_v48, %v85_v46  ;;  %v185_v50 = vpop.f32.mrb[7].mxu0  ;;  %465 = vmatpush3.bf16.msra.mxu1 %v205_v43  ;;  %v203_v52 = vmax.f32 %v191_v44, 0.0 }
  0xe9   :  { %v186_v51 = vadd.f32 %v185_v50, %v75_v34  ;;  %466 = vmatprep.subr.bf16.mxu1 %v206_v40  ;;  %v201_v54 = vmax.f32 %v183_v47, 0.0 }
  0xea   :  { %v204_v53 = vmax.f32 %v194_v49, 0.0 }
  0xeb   :  { %v202_v55 = vmax.f32 %v186_v51, 0.0 }
  0xec   :  { %v208_v56 = vpack.c.bf16 %v204_v53, %v203_v52  ;;  %467 = vmatpush3.bf16.msra.mxu1 %v206_v40 }
  0xed   :  { %v207_v57 = vpack.c.bf16 %v202_v55, %v201_v54 }
  0xef   :  { %468 = vmatprep.subr.bf16.mxu1 %v207_v57 }
  0xf0   :  { %469 = vmatpush3.bf16.msra.mxu1 %v207_v57 }
  0xf1   :  { %470 = vmatprep.subr.bf16.mxu1 %v208_v56 }
  0xf4   :  { %471 = vmatpush3.bf16.msra.mxu1 %v208_v56 }
  0xf7   :  { %473 = vmatmul.mubr.msk.bf16.vlgmr.msra.gmra.mrb[0].mxu1 %vm247_vm1, %v496_v58 }
 0x1ca   :  { %v474_v63 = vpop.f32.mrb[0].mxu1 }
 0x1cb   :  { %v297_v0 = vadd.f32 %v474_v63, %v230_v62  ;;  %v288_v1 = vpop.f32.mrb[1].mxu1 }
 0x1cc   :  { %v289_v3 = vadd.f32 %v288_v1, %v220_v60  ;;  %v475_v4 = vpop.f32.mrb[2].mxu1 }
 0x1cd   :  { %v300_v5 = vadd.f32 %v475_v4, %v235_v2  ;;  %v291_v6 = vpop.f32.mrb[3].mxu1  ;;  %v305_v8 = vmax.f32 %v297_v0, 0.0 }
 0x1ce   :  { %v292_v7 = vadd.f32 %v291_v6, %v225_v61  ;;  %v303_v10 = vmax.f32 %v289_v3, 0.0 }
 0x1cf   :  { %v306_v9 = vmax.f32 %v300_v5, 0.0 }
 0x1d0   :  { %v304_v11 = vmax.f32 %v292_v7, 0.0 }
 0x1d1   :  { %v308_v12 = vpack.c.bf16 %v306_v9, %v305_v8 }
 0x1d2   :  { %v307_v13 = vpack.c.bf16 %v304_v11, %v303_v10 }
 0x1d4   :  { %477 = vmatpush3.bf16.msra.mxu0 %v307_v13 }
 0x1d5   :  { %478 = vmatprep.subr.bf16.mxu0 %v507_v59 }
 0x1d8   :  { %479 = vmatpush3.bf16.msra.mxu0 %v308_v12 }
 0x1db   :  { %481 = vmatmul.mubr.msk.bf16.vlgmr.msra.gmra.mrb[8].mxu0 %vm119_vm0, %v497_v14 }
 0x2ae   :  { %v365_v16 = vpop.f32.mrb[8].mxu0 }
 0x2af   :  { %v366_v17 = vadd.f32 %v365_v16, %v316_v15  ;;  %v482_v18 = vpop.f32.mrb[9].mxu0 }
 0x2b0   :  { %v368_v20 = vpop.f32.mrb[10].mxu0 }
 0x2b1   :  { %v374_v21 = vand.u32 2147483647, %v366_v17  ;;  %v369_v22 = vadd.f32 %v368_v20, %v321_v19  ;;  %v483_v23 = vpop.f32.mrb[11].mxu0  ;;  %v372_v43 = vmin.f32 %v366_v17, 0.0 }
 0x2b3   :  { %v376_v24 = vsub.f32 0.0, %v374_v21  ;;  %v375_v25 = vand.u32 2147483647, %v369_v22  ;;  %v373_v48 = vmin.f32 %v369_v22, 0.0 }
 0x2b5   :  { %v378_v26 = vmul.f32 1.442695, %v376_v24  ;;  %v377_v27 = vsub.f32 0.0, %v375_v25 }
 0x2b7   :  { %498 = vpow2.f32 %v378_v26  ;;  %v380_v28 = vmul.f32 1.442695, %v377_v27 }
 0x2b9   :  { %500 = vpow2.f32 %v380_v28 }
 0x2c1   :  { %v499_v29 = vpop.eup %498 }
 0x2c2   :  { %v382_v30 = vadd.f32 1.0, %v499_v29  ;;  %v385_v33 = vmul.f32 -0.5, %v499_v29  ;;  %v388_v36 = vand.u32 2147483647, %v499_v29 }
 0x2c3   :  { %v501_v31 = vpop.eup %500 }
 0x2c4   :  { %502 = vlog2.f32 %v382_v30  ;;  %v391_v32 = vadd.f32 1.0, %v501_v31  ;;  %v394_v34 = vmul.f32 -0.5, %v501_v31  ;;  %v386_v35 = vadd.f32 1.0, %v385_v33 }
 0x2c5   :  { %v397_v39 = vand.u32 2147483647, %v501_v31  ;;  %vm389_vm3 = vcmp.lt.f32.partialorder %v388_v36, 0.0004427343 }
 0x2c6   :  { %504 = vlog2.f32 %v391_v32  ;;  %v395_v37 = vadd.f32 1.0, %v394_v34  ;;  %v387_v41 = vmul.f32 %v499_v29, %v386_v35 }
 0x2c7   :  { %vm398_vm4 = vcmp.lt.f32.partialorder %v397_v39, 0.0004427343 }
 0x2c8   :  { %v396_v46 = vmul.f32 %v501_v31, %v395_v37 }
 0x2ce   :  { %v503_v38 = vpop.eup %502 }
 0x2cf   :  { %v384_v40 = vmul.f32 0.6931472, %v503_v38 }
 0x2d0   :  { %v505_v42 = vpop.eup %504 }
 0x2d1   :  { %v390_v44 = vsel %vm389_vm3, %v387_v41, %v384_v40  ;;  %v393_v45 = vmul.f32 0.6931472, %v505_v42 }
 0x2d2   :  { %v400_v47 = vsub.f32 %v372_v43, %v390_v44 }
 0x2d3   :  { %v399_v49 = vsel %vm398_vm4, %v396_v46, %v393_v45 }
 0x2d4   :  { %v435_v50 = vpack.c.bf16 %v400_v47, %v400_v47  ;;  %v401_v51 = vsub.f32 %v373_v48, %v399_v49 }
 0x2d6   :  { %411 = vst.msk [vmem:[%s638_s7] sm:$0xf] %vm410_vm5, %v435_v50  ;;  %v436_v52 = vpack.c.bf16 %v401_v51, %v401_v51 }
 0x2d8   :  { %412 = vst.msk [vmem:[%s638_s7 + $0x4] sm:$0xf] %vm410_vm5, %v436_v52 }

// kernel: cond1_forward.33
= control target key start
LH: loop header
LB: loop body
LE: loop exit
PB: predicated region body
PF: predicated region fallthrough
CT: control target
= control target key end

     0   :  { %v346_v1 = vmov 0   ;;  %vm77_vm0 = vcmask 130048   ;;  %vm168_vm1 = vcmask 261120   ;;  %vm310_vm2 = vcmask 1043456   ;;  %s438_s0 = inlined_call_operand.vmem [shape: bf16[16,250], index: 0, kind: input, shape index: {}]   ;;  %s439_s1 = inlined_call_operand.vmem [shape: bf16[32,16], index: 1, kind: input, shape index: {}]   ;;  %s440_s2 = inlined_call_operand.vmem [shape: f32[32,1], index: 2, kind: input, shape index: {}]   ;;  %s441_s4 = inlined_call_operand.vmem [shape: f32[16,1], index: 4, kind: input, shape index: {}]   ;;  %s442_s6 = inlined_call_operand.vmem [shape: f32[8,1], index: 6, kind: input, shape index: {}]   ;;  %s443_s3 = inlined_call_operand.vmem [shape: bf16[16,32], index: 3, kind: input, shape index: {}]   ;;  %s444_s5 = inlined_call_operand.vmem [shape: bf16[8,16], index: 5, kind: input, shape index: {}]   ;;  %s445_s7 = inlined_call_operand.vmem [shape: bf16[8,250], index: 7, kind: output, shape index: {}]  }
   0x1   :  { %v332_v0 = vld [vmem:[%s438_s0 + $0x4] ss:$8 sps:$4 sm:$0xff]   ;;  %116 = vmatprep.mubr.bf16.mxu0 %v346_v1  ;;  %330 = vset.pattern.permute.xlu0 %v346_v1  ;;  %v334_v2 = vld [vmem:[%s438_s0] ss:$8 sps:$4 sm:$0xff]   ;;  %v35_v5 = vld [vmem:[%s440_s2 + $0x10] sm:$0xff]  ;;  %vm311_vm5 = vcmask 998404  }
   0x2   :  { %331 = vset.pattern.permute.xlu1 %v346_v1  ;;  %204 = vmatprep.mubr.bf16.mxu1 %v346_v1  ;;  %v335_v3 = vld [vmem:[%s439_s1] sm:$0xff]   ;;  %v34_v6 = vld [vmem:[%s440_s2 + $0x8] sm:$0xff]  ;;  %v36_v7 = vld [vmem:[%s440_s2 + $0x18] sm:$0xff] }
   0x3   :  { %84 = vmatprep.subr.bf16.mxu0 %v332_v0  ;;  %v33_v4 = vld [vmem:[%s440_s2] sm:$0xff]  ;;  %49 = vperm.xlu1 %331, %v35_v5   ;;  %v336_v9 = vld [vmem:[%s439_s1 + $0x8] sm:$0xff]   ;;  %vm312_vm6 = vmor %vm311_vm5, %vm310_vm2 }
   0x4   :  { %85 = vmatpush1.bf16.msra.mxu0 %v334_v2  ;;  %39 = vperm.xlu0 %330, %v33_v4   ;;  %v151_v8 = vld [vmem:[%s441_s4] sm:$0xff]  ;;  %v152_v10 = vld [vmem:[%s441_s4 + $0x8] sm:$0xff] }
   0x5   :  { %v222_v11 = vld [vmem:[%s442_s6] sm:$0xff] }
   0x6   :  { %v337_v44 = vld [vmem:[%s443_s3] sm:$0xff]  }
   0x7   :  { %322 = vmatmul.mubr.msk.bf16.vlgmr.msra.gmra.mrb[0].mxu0 %vm77_vm0, %v335_v3  ;;  %54 = vperm.xlu1 %331, %v36_v7   ;;  %v221_v61 = vld [vmem:[%s444_s5] sm:$0xf] }
   0x8   :  { %126 = vmatprep.mubr.bf16.mxu0 %v346_v1  ;;  %44 = vperm.xlu0 %330, %v34_v6  }
   0xb   :  { %160 = vperm.xlu1 %331, %v152_v10  }
   0xc   :  { %155 = vperm.xlu0 %330, %v151_v8  }
   0xf   :  { %323 = vmatmul.mubr.msk.bf16.gmra.mrb[4].mxu0 %vm77_vm0, %v336_v9 }
  0x10   :  { %225 = vperm.xlu0 %330, %v222_v11  }
  0x82   :  { %v50_v21 = vpop.permute.xlu1 %49 }
  0x83   :  { %v40_v12 = vpop.permute.xlu0 %39 }
  0x86   :  { %v55_v32 = vpop.permute.xlu1 %54 }
  0x87   :  { %v45_v16 = vpop.permute.xlu0 %44 }
  0x8a   :  { %v161_v49 = vpop.permute.xlu1 %160 }
  0x8b   :  { %v156_v45 = vpop.permute.xlu0 %155 }
  0x8f   :  { %v226_v62 = vpop.permute.xlu0 %225 }
  0xda   :  { %v118_v13 = vpop.f32.mrb[0].mxu0 }
  0xdb   :  { %v119_v14 = vadd.f32 %v118_v13, %v40_v12  ;;  %v120_v15 = vpop.f32.mrb[1].mxu0 }
  0xdc   :  { %v121_v17 = vadd.f32 %v120_v15, %v40_v12  ;;  %v122_v18 = vpop.f32.mrb[2].mxu0 }
  0xdd   :  { %v123_v19 = vadd.f32 %v122_v18, %v45_v16  ;;  %v124_v20 = vpop.f32.mrb[3].mxu0  ;;  %v137_v23 = vmax.f32 %v119_v14, 0.0 }
  0xde   :  { %v125_v22 = vadd.f32 %v124_v20, %v45_v16  ;;  %v138_v25 = vmax.f32 %v121_v17, 0.0 }
  0xdf   :  { %v139_v24 = vmax.f32 %v123_v19, 0.0 }
  0xe0   :  { %v140_v26 = vmax.f32 %v125_v22, 0.0 }
  0xe1   :  { %v145_v27 = vpack.c.bf16 %v139_v24, %v137_v23 }
  0xe2   :  { %v128_v28 = vpop.f32.mrb[4].mxu0  ;;  %v146_v29 = vpack.c.bf16 %v140_v26, %v138_v25 }
  0xe3   :  { %v129_v30 = vadd.f32 %v128_v28, %v50_v21  ;;  %v130_v31 = vpop.f32.mrb[5].mxu0 }
  0xe4   :  { %v131_v33 = vadd.f32 %v130_v31, %v50_v21  ;;  %v132_v34 = vpop.f32.mrb[6].mxu0  ;;  %172 = vmatprep.subr.bf16.mxu1 %v146_v29 }
  0xe5   :  { %v133_v35 = vadd.f32 %v132_v34, %v55_v32  ;;  %v134_v36 = vpop.f32.mrb[7].mxu0  ;;  %173 = vmatpush1.bf16.msra.mxu1 %v145_v27  ;;  %v141_v38 = vmax.f32 %v129_v30, 0.0 }
  0xe6   :  { %v135_v37 = vadd.f32 %v134_v36, %v55_v32  ;;  %v142_v40 = vmax.f32 %v131_v33, 0.0 }
  0xe7   :  { %v143_v39 = vmax.f32 %v133_v35, 0.0 }
  0xe8   :  { %v144_v41 = vmax.f32 %v135_v37, 0.0 }
  0xe9   :  { %v147_v42 = vpack.c.bf16 %v143_v39, %v141_v38 }
  0xea   :  { %v148_v43 = vpack.c.bf16 %v144_v41, %v142_v40 }
  0xec   :  { %174 = vmatprep.subr.bf16.mxu1 %v148_v43 }
  0xed   :  { %175 = vmatpush1.bf16.msra.mxu1 %v147_v42 }
  0xf0   :  { %325 = vmatmul.mubr.msk.bf16.vlgmr.msra.gmra.mrb[0].mxu1 %vm168_vm1, %v337_v44 }
  0xf1   :  { %263 = vmatprep.mubr.bf16.mxu1 %v346_v1 }
 0x1c3   :  { %v206_v46 = vpop.f32.mrb[0].mxu1 }
 0x1c4   :  { %v207_v47 = vadd.f32 %v206_v46, %v156_v45  ;;  %v208_v48 = vpop.f32.mrb[1].mxu1 }
 0x1c5   :  { %v209_v50 = vadd.f32 %v208_v48, %v156_v45  ;;  %v210_v51 = vpop.f32.mrb[2].mxu1 }
 0x1c6   :  { %v211_v52 = vadd.f32 %v210_v51, %v161_v49  ;;  %v212_v53 = vpop.f32.mrb[3].mxu1  ;;  %v215_v55 = vmax.f32 %v207_v47, 0.0 }
 0x1c7   :  { %v213_v54 = vadd.f32 %v212_v53, %v161_v49  ;;  %v216_v57 = vmax.f32 %v209_v50, 0.0 }
 0x1c8   :  { %v217_v56 = vmax.f32 %v211_v52, 0.0 }
 0x1c9   :  { %v218_v58 = vmax.f32 %v213_v54, 0.0 }
 0x1ca   :  { %v219_v59 = vpack.c.bf16 %v217_v56, %v215_v55 }
 0x1cb   :  { %v220_v60 = vpack.c.bf16 %v218_v58, %v216_v57 }
 0x1cd   :  { %231 = vmatprep.subr.bf16.mxu1 %v220_v60 }
 0x1ce   :  { %232 = vmatpush1.bf16.msra.mxu1 %v219_v59 }
 0x1d1   :  { %326 = vmatmul.mubr.msk.bf16.vlgmr.msra.gmra.mrb[4].mxu1 %vm77_vm0, %v221_v61 }
 0x2a4   :  { %v265_v63 = vpop.f32.mrb[4].mxu1 }
 0x2a5   :  { %v266_v0 = vadd.f32 %v265_v63, %v226_v62  ;;  %v267_v1 = vpop.f32.mrb[5].mxu1 }
 0x2a6   :  { %v268_v2 = vadd.f32 %v267_v1, %v226_v62  ;;  %v269_v3 = vpop.f32.mrb[6].mxu1 }
 0x2a7   :  { %v274_v4 = vand.u32 2147483647, %v266_v0  ;;  %v270_v5 = vpop.f32.mrb[7].mxu1  ;;  %v272_v25 = vmin.f32 %v266_v0, 0.0 }
 0x2a8   :  { %v275_v6 = vand.u32 2147483647, %v268_v2  ;;  %v273_v29 = vmin.f32 %v268_v2, 0.0 }
 0x2a9   :  { %v276_v7 = vsub.f32 0.0, %v274_v4 }
 0x2aa   :  { %v277_v8 = vsub.f32 0.0, %v275_v6 }
 0x2ab   :  { %v278_v9 = vmul.f32 1.442695, %v276_v7 }
 0x2ac   :  { %v280_v10 = vmul.f32 1.442695, %v277_v8 }
 0x2ad   :  { %338 = vpow2.f32 %v278_v9 }
 0x2ae   :  { %340 = vpow2.f32 %v280_v10 }
 0x2b7   :  { %v339_v11 = vpop.eup %338 }
 0x2b8   :  { %v341_v12 = vpop.eup %340  ;;  %v282_v13 = vadd.f32 1.0, %v339_v11  ;;  %v285_v15 = vmul.f32 -0.5, %v339_v11  ;;  %v288_v18 = vand.u32 2147483647, %v339_v11 }
 0x2b9   :  { %v291_v14 = vadd.f32 1.0, %v341_v12  ;;  %v294_v16 = vmul.f32 -0.5, %v341_v12  ;;  %v297_v20 = vand.u32 2147483647, %v341_v12 }
 0x2ba   :  { %342 = vlog2.f32 %v282_v13  ;;  %v286_v17 = vadd.f32 1.0, %v285_v15  ;;  %vm289_vm3 = vcmp.lt.f32.partialorder %v288_v18, 0.0004427343 }
 0x2bb   :  { %344 = vlog2.f32 %v291_v14  ;;  %v295_v19 = vadd.f32 1.0, %v294_v16  ;;  %vm298_vm4 = vcmp.lt.f32.partialorder %v297_v20, 0.0004427343 }
 0x2bc   :  { %v287_v24 = vmul.f32 %v339_v11, %v286_v17 }
 0x2bd   :  { %v296_v27 = vmul.f32 %v341_v12, %v295_v19 }
 0x2c4   :  { %v343_v21 = vpop.eup %342 }
 0x2c5   :  { %v345_v22 = vpop.eup %344  ;;  %v284_v23 = vmul.f32 0.6931472, %v343_v21 }
 0x2c6   :  { %v293_v26 = vmul.f32 0.6931472, %v345_v22 }
 0x2c7   :  { %v290_v28 = vsel %vm289_vm3, %v287_v24, %v284_v23 }
 0x2c8   :  { %v300_v30 = vsub.f32 %v272_v25, %v290_v28  ;;  %v299_v31 = vsel %vm298_vm4, %v296_v27, %v293_v26 }
 0x2c9   :  { %v301_v32 = vsub.f32 %v273_v29, %v299_v31 }
 0x2cb   :  { %v328_v33 = vpack.c.bf16 %v301_v32, %v300_v30 }
 0x2cd   :  { %313 = vst.msk [vmem:[%s445_s7] sm:$0xff] %vm312_vm6, %v328_v33 }

// kernel: cond1_forward.34
= control target key start
LH: loop header
LB: loop body
LE: loop exit
PB: predicated region body
PF: predicated region fallthrough
CT: control target
= control target key end

     0   :  { %vm68_vm0 = vcmask 1043456   ;;  %v729_v3 = vmov 0   ;;  %vm64_vm1 = vcmask 64512   ;;  %vm241_vm2 = vcmask 130048   ;;  %s871_s0 = inlined_call_operand.vmem [shape: bf16[8,686], index: 0, kind: input, shape index: {}]   ;;  %s872_s2 = inlined_call_operand.vmem [shape: f32[16,1], index: 2, kind: input, shape index: {}]   ;;  %s873_s1 = inlined_call_operand.vmem [shape: bf16[16,8], index: 1, kind: input, shape index: {}]   ;;  %s874_s4 = inlined_call_operand.vmem [shape: f32[8,1], index: 4, kind: input, shape index: {}]   ;;  %s875_s6 = inlined_call_operand.vmem [shape: f32[4,1], index: 6, kind: input, shape index: {}]   ;;  %s876_s3 = inlined_call_operand.vmem [shape: bf16[8,16], index: 3, kind: input, shape index: {}]   ;;  %s877_s5 = inlined_call_operand.vmem [shape: bf16[4,8], index: 5, kind: input, shape index: {}]   ;;  %s878_s7 = inlined_call_operand.vmem [shape: bf16[4,686], index: 7, kind: output, shape index: {}]  }
   0x1   :  { %v29_v0 = vld [vmem:[%s871_s0] sm:$0xff]  ;;  %v31_v1 = vld [vmem:[%s871_s0 + $0x10] sm:$0xff]  ;;  %v30_v2 = vld [vmem:[%s871_s0 + $0x8] sm:$0xff]  ;;  %119 = vmatprep.mubr.bf16.mxu0 %v729_v3  ;;  %162 = vmatprep.mubr.bf16.mxu1 %v729_v3  ;;  %vm661_vm9 = vcmask 1041408   ;;  %vm662_vm10 = vcmask 371714  }
   0x2   :  { %v671_v4 = vcombine.high %v29_v0, %v29_v0  ;;  %v673_v5 = vcombine.high %v30_v2, %v30_v2  ;;  %v670_v6 = vcombine.low %v29_v0, %v29_v0  ;;  %v672_v7 = vcombine.low %v30_v2, %v30_v2  ;;  %696 = vset.pattern.permute.xlu0 %v729_v3  ;;  %v32_v10 = vld [vmem:[%s872_s2] sm:$0xff]  ;;  %v33_v15 = vld [vmem:[%s872_s2 + $0x8] sm:$0xff]  ;;  %vm663_vm11 = vmor %vm662_vm10, %vm661_vm9 }
   0x3   :  { %v675_v8 = vcombine.high %v31_v1, %v31_v1  ;;  %v674_v9 = vcombine.low %v31_v1, %v31_v1  ;;  %697 = vset.pattern.permute.xlu1 %v729_v3  ;;  %v702_v13 = vld [vmem:[%s873_s1] sm:$0xff]   ;;  %36 = vperm.xlu0 %696, %v32_v10  }
   0x4   :  { %676 = vmatprep.subr.msk.bf16.mxu0 %vm68_vm0, %v671_v4  ;;  %678 = vmatprep.subr.msk.bf16.mxu1 %vm68_vm0, %v673_v5  ;;  %v70_v11 = vsel %vm68_vm0, %v670_v6, 0  ;;  %v76_v12 = vsel %vm68_vm0, %v672_v7, 0  ;;  %v235_v16 = vld [vmem:[%s874_s4] sm:$0xff] }
   0x5   :  { %88 = vmatpush1.bf16.msra.mxu0 %v70_v11  ;;  %131 = vmatpush1.bf16.msra.mxu1 %v76_v12  ;;  %v82_v14 = vsel %vm68_vm0, %v674_v9, 0  ;;  %v381_v17 = vld [vmem:[%s875_s6] sm:$0xf] }
   0x6   :  { %680 = vmatprep.subr.msk.bf16.mxu0 %vm68_vm0, %v675_v8  ;;  %238 = vperm.xlu1 %697, %v235_v16   ;;  %v234_v55 = vld [vmem:[%s876_s3] sm:$0xf] }
   0x7   :  { %41 = vperm.xlu0 %696, %v33_v15  }
   0x8   :  { %677 = vmatmul.mubr.msk.bf16.vlgmr.msra.gmra.mrb[0].mxu0 %vm64_vm1, %v702_v13  ;;  %679 = vmatmul.mubr.msk.bf16.vlgmr.msra.gmra.mrb[0].mxu1 %vm64_vm1, %v702_v13 }
   0x9   :  { %174 = vmatpush1.bf16.msra.mxu0 %v82_v14  ;;  %205 = vmatprep.mubr.bf16.mxu0 %v729_v3 }
   0xa   :  { %277 = vmatprep.mubr.bf16.mxu1 %v729_v3  ;;  %384 = vperm.xlu1 %697, %v381_v17  }
  0x10   :  { %681 = vmatmul.mubr.msk.bf16.vlgmr.msra.gmra.mrb[4].mxu0 %vm64_vm1, %v702_v13 }
  0x11   :  { %318 = vmatprep.mubr.bf16.mxu0 %v729_v3 }
  0x82   :  { %v37_v18 = vpop.permute.xlu0 %36 }
  0x85   :  { %v239_v63 = vpop.permute.xlu1 %238 }
  0x86   :  { %v42_v19 = vpop.permute.xlu0 %41 }
  0xdb   :  { %v121_v20 = vpop.f32.mrb[0].mxu0  ;;  %v164_v21 = vpop.f32.mrb[0].mxu1 }
  0xdc   :  { %v122_v22 = vadd.f32 %v121_v20, %v37_v18  ;;  %v165_v23 = vadd.f32 %v164_v21, %v37_v18  ;;  %v123_v24 = vpop.f32.mrb[1].mxu0  ;;  %v166_v25 = vpop.f32.mrb[1].mxu1 }
  0xdd   :  { %v124_v26 = vadd.f32 %v123_v24, %v37_v18  ;;  %v167_v27 = vadd.f32 %v166_v25, %v37_v18  ;;  %v125_v28 = vpop.f32.mrb[2].mxu0  ;;  %v168_v29 = vpop.f32.mrb[2].mxu1 }
  0xde   :  { %v126_v30 = vadd.f32 %v125_v28, %v42_v19  ;;  %v169_v31 = vadd.f32 %v168_v29, %v42_v19  ;;  %v127_v32 = vpop.f32.mrb[3].mxu0  ;;  %v170_v33 = vpop.f32.mrb[3].mxu1  ;;  %v216_v36 = vmax.f32 %v122_v22, 0.0  ;;  %v218_v37 = vmax.f32 %v165_v23, 0.0 }
  0xdf   :  { %v128_v34 = vadd.f32 %v127_v32, %v42_v19  ;;  %v171_v35 = vadd.f32 %v170_v33, %v42_v19  ;;  %v217_v40 = vmax.f32 %v124_v26, 0.0  ;;  %v219_v41 = vmax.f32 %v167_v27, 0.0  ;;  %v380_v26 = vld [vmem:[%s877_s5] sm:$0x3] }
  0xe0   :  { %v222_v38 = vmax.f32 %v126_v30, 0.0  ;;  %v224_v39 = vmax.f32 %v169_v31, 0.0 }
  0xe1   :  { %v223_v42 = vmax.f32 %v128_v34, 0.0  ;;  %v225_v43 = vmax.f32 %v171_v35, 0.0  ;;  %v385_v35 = vpop.permute.xlu1 %384 }
  0xe2   :  { %v228_v44 = vpack.c.bf16 %v222_v38, %v216_v36  ;;  %v230_v45 = vpack.c.bf16 %v224_v39, %v218_v37 }
  0xe3   :  { %v229_v46 = vpack.c.bf16 %v223_v42, %v217_v40  ;;  %v231_v47 = vpack.c.bf16 %v225_v43, %v219_v41  ;;  %v207_v48 = vpop.f32.mrb[4].mxu0 }
  0xe4   :  { %v208_v49 = vadd.f32 %v207_v48, %v37_v18  ;;  %v209_v50 = vpop.f32.mrb[5].mxu0 }
  0xe5   :  { %v210_v51 = vadd.f32 %v209_v50, %v37_v18  ;;  %v211_v52 = vpop.f32.mrb[6].mxu0  ;;  %245 = vmatprep.subr.bf16.mxu1 %v229_v46  ;;  %286 = vmatprep.subr.bf16.mxu0 %v231_v47 }
  0xe6   :  { %v212_v53 = vadd.f32 %v211_v52, %v42_v19  ;;  %v213_v54 = vpop.f32.mrb[7].mxu0  ;;  %246 = vmatpush1.bf16.msra.mxu1 %v228_v44  ;;  %287 = vmatpush1.bf16.msra.mxu0 %v230_v45  ;;  %v220_v57 = vmax.f32 %v208_v49, 0.0 }
  0xe7   :  { %v214_v56 = vadd.f32 %v213_v54, %v42_v19  ;;  %v221_v59 = vmax.f32 %v210_v51, 0.0 }
  0xe8   :  { %v226_v58 = vmax.f32 %v212_v53, 0.0 }
  0xe9   :  { %v227_v60 = vmax.f32 %v214_v56, 0.0  ;;  %682 = vmatmul.mubr.msk.bf16.vlgmr.msra.gmra.mrb[4].mxu1 %vm241_vm2, %v234_v55  ;;  %683 = vmatmul.mubr.msk.bf16.vlgmr.msra.gmra.mrb[8].mxu0 %vm241_vm2, %v234_v55 }
  0xea   :  { %v232_v61 = vpack.c.bf16 %v226_v58, %v220_v57  ;;  %359 = vmatprep.mubr.bf16.mxu1 %v729_v3  ;;  %440 = vmatprep.mubr.bf16.mxu0 %v729_v3 }
  0xeb   :  { %v233_v62 = vpack.c.bf16 %v227_v60, %v221_v59 }
  0xed   :  { %327 = vmatprep.subr.bf16.mxu1 %v233_v62 }
  0xee   :  { %328 = vmatpush1.bf16.msra.mxu1 %v232_v61 }
  0xf1   :  { %684 = vmatmul.mubr.msk.bf16.vlgmr.msra.gmra.mrb[8].mxu1 %vm241_vm2, %v234_v55 }
  0xf2   :  { %481 = vmatprep.mubr.bf16.mxu1 %v729_v3 }
 0x1bc   :  { %v279_v0 = vpop.f32.mrb[4].mxu1  ;;  %v320_v1 = vpop.f32.mrb[8].mxu0 }
 0x1bd   :  { %v280_v2 = vadd.f32 %v279_v0, %v239_v63  ;;  %v321_v4 = vadd.f32 %v320_v1, %v239_v63  ;;  %v281_v5 = vpop.f32.mrb[5].mxu1  ;;  %v322_v6 = vpop.f32.mrb[9].mxu0 }
 0x1be   :  { %v282_v7 = vadd.f32 %v281_v5, %v239_v63  ;;  %v323_v8 = vadd.f32 %v322_v6, %v239_v63  ;;  %v283_v9 = vpop.f32.mrb[6].mxu1  ;;  %v324_v10 = vpop.f32.mrb[10].mxu0 }
 0x1bf   :  { %v368_v11 = vmax.f32 %v280_v2, 0.0  ;;  %v370_v12 = vmax.f32 %v321_v4, 0.0  ;;  %v284_v13 = vpop.f32.mrb[7].mxu1  ;;  %v325_v14 = vpop.f32.mrb[11].mxu0 }
 0x1c0   :  { %v369_v15 = vmax.f32 %v282_v7, 0.0  ;;  %v371_v16 = vmax.f32 %v323_v8, 0.0 }
 0x1c1   :  { %v374_v17 = vpack.c.bf16 %v368_v11, %v368_v11  ;;  %v376_v18 = vpack.c.bf16 %v370_v12, %v370_v12 }
 0x1c2   :  { %v375_v19 = vpack.c.bf16 %v369_v15, %v369_v15  ;;  %v377_v20 = vpack.c.bf16 %v371_v16, %v371_v16  ;;  %v730_v15 = vmov 1983009808  }
 0x1c3   :  { %v391_v21 = vsel %vm68_vm0, %v374_v17, 0  ;;  %v397_v22 = vsel %vm68_vm0, %v376_v18, 0  ;;  %v636_v16 = vunpack.c.l.s4 %v730_v15  ;;  %v638_v17 = vlaneseq }
 0x1c4   :  { %v361_v23 = vpop.f32.mrb[8].mxu1  ;;  %685 = vmatprep.subr.msk.bf16.mxu0 %vm68_vm0, %v375_v19  ;;  %687 = vmatprep.subr.msk.bf16.mxu1 %vm68_vm0, %v377_v20 }
 0x1c5   :  { %v362_v24 = vadd.f32 %v361_v23, %v239_v63  ;;  %v363_v25 = vpop.f32.mrb[9].mxu1  ;;  %409 = vmatpush1.bf16.msra.mxu0 %v391_v21  ;;  %450 = vmatpush1.bf16.msra.mxu1 %v397_v22  ;;  %v637_v21 = vunpack.c.0.s8 %v636_v16  ;;  %v639_v22 = vshrl.u32 %v638_v17, 7 }
 0x1c6   :  { %v364_v27 = vadd.f32 %v363_v25, %v239_v63  ;;  %v365_v28 = vpop.f32.mrb[10].mxu1 }
 0x1c7   :  { %v372_v29 = vmax.f32 %v362_v24, 0.0  ;;  %v366_v30 = vpop.f32.mrb[11].mxu1 }
 0x1c8   :  { %v373_v31 = vmax.f32 %v364_v27, 0.0  ;;  %686 = vmatmul.mubr.msk.bf16.vlgmr.msra.gmra.mrb[12].mxu0 %vm64_vm1, %v380_v26  ;;  %688 = vmatmul.mubr.msk.bf16.vlgmr.msra.gmra.mrb[12].mxu1 %vm64_vm1, %v380_v26 }
 0x1c9   :  { %v378_v32 = vpack.c.bf16 %v372_v29, %v372_v29  ;;  %522 = vmatprep.mubr.bf16.mxu0 %v729_v3 }
 0x1ca   :  { %v379_v33 = vpack.c.bf16 %v373_v31, %v373_v31 }
 0x1cb   :  { %v403_v34 = vsel %vm68_vm0, %v378_v32, 0 }
 0x1cc   :  { %689 = vmatprep.subr.msk.bf16.mxu0 %vm68_vm0, %v379_v33  ;;  %v849_v33 = vsub.s32 %v637_v21, %v639_v22 }
 0x1cd   :  { %491 = vmatpush1.bf16.msra.mxu0 %v403_v34 }
 0x1d0   :  { %690 = vmatmul.mubr.msk.bf16.vlgmr.msra.gmra.mrb[16].mxu0 %vm64_vm1, %v380_v26 }
 0x29b   :  { %v442_v36 = vpop.f32.mrb[12].mxu0  ;;  %v483_v37 = vpop.f32.mrb[12].mxu1 }
 0x29c   :  { %v830_v38 = vadd.f32 %v442_v36, %v385_v35  ;;  %v832_v39 = vadd.f32 %v483_v37, %v385_v35  ;;  %v444_v40 = vpop.f32.mrb[13].mxu0  ;;  %v485_v41 = vpop.f32.mrb[13].mxu1 }
 0x29d   :  { %v834_v42 = vadd.f32 %v444_v40, %v385_v35  ;;  %v836_v3 = vadd.f32 %v485_v41, %v385_v35  ;;  %v446_v43 = vpop.f32.mrb[14].mxu0  ;;  %v487_v44 = vpop.f32.mrb[14].mxu1 }
 0x29e   :  { %v537_v45 = vand.u32 2147483647, %v830_v38  ;;  %v539_v46 = vand.u32 2147483647, %v832_v39  ;;  %v447_v51 = vpop.f32.mrb[15].mxu0  ;;  %v488_v52 = vpop.f32.mrb[15].mxu1 }
 0x29f   :  { %v538_v47 = vand.u32 2147483647, %v834_v42  ;;  %v540_v48 = vand.u32 2147483647, %v836_v3  ;;  %v531_v31 = vmin.f32 %v830_v38, 0.0  ;;  %v533_v34 = vmin.f32 %v832_v39, 0.0 }
 0x2a0   :  { %v543_v49 = vsub.f32 0.0, %v537_v45  ;;  %v545_v50 = vsub.f32 0.0, %v539_v46  ;;  %v532_v41 = vmin.f32 %v834_v42, 0.0  ;;  %v534_v44 = vmin.f32 %v836_v3, 0.0 }
 0x2a1   :  { %v544_v53 = vsub.f32 0.0, %v538_v47  ;;  %v546_v54 = vsub.f32 0.0, %v540_v48 }
 0x2a2   :  { %v549_v55 = vmul.f32 1.442695, %v543_v49  ;;  %v553_v56 = vmul.f32 1.442695, %v545_v50 }
 0x2a3   :  { %v551_v57 = vmul.f32 1.442695, %v544_v53  ;;  %v555_v58 = vmul.f32 1.442695, %v546_v54  ;;  %v524_v59 = vpop.f32.mrb[16].mxu0 }
 0x2a4   :  { %705 = vpow2.f32 %v549_v55  ;;  %v842_v60 = vadd.f32 %v524_v59, %v385_v35  ;;  %v526_v61 = vpop.f32.mrb[17].mxu0 }
 0x2a5   :  { %707 = vpow2.f32 %v553_v56  ;;  %v844_v62 = vadd.f32 %v526_v61, %v385_v35  ;;  %v528_v63 = vpop.f32.mrb[18].mxu0 }
 0x2a6   :  { %709 = vpow2.f32 %v551_v57  ;;  %v541_v0 = vand.u32 2147483647, %v842_v60  ;;  %v529_v1 = vpop.f32.mrb[19].mxu0 }
 0x2a7   :  { %711 = vpow2.f32 %v555_v58  ;;  %v542_v2 = vand.u32 2147483647, %v844_v62 }
 0x2a8   :  { %v547_v4 = vsub.f32 0.0, %v541_v0 }
 0x2a9   :  { %v548_v5 = vsub.f32 0.0, %v542_v2 }
 0x2aa   :  { %v557_v6 = vmul.f32 1.442695, %v547_v4 }
 0x2ab   :  { %v559_v7 = vmul.f32 1.442695, %v548_v5 }
 0x2ac   :  { %713 = vpow2.f32 %v557_v6 }
 0x2ad   :  { %715 = vpow2.f32 %v559_v7 }
 0x2ae   :  { %v706_v8 = vpop.eup %705 }
 0x2af   :  { %v708_v9 = vpop.eup %707  ;;  %v561_v10 = vadd.f32 1.0, %v706_v8  ;;  %v564_v19 = vmul.f32 -0.5, %v706_v8  ;;  %v567_v26 = vand.u32 2147483647, %v706_v8 }
 0x2b0   :  { %v710_v11 = vpop.eup %709  ;;  %v579_v12 = vadd.f32 1.0, %v708_v9  ;;  %v582_v20 = vmul.f32 -0.5, %v708_v9  ;;  %v585_v35 = vand.u32 2147483647, %v708_v9 }
 0x2b1   :  { %v712_v13 = vpop.eup %711  ;;  %717 = vlog2.f32 %v561_v10  ;;  %v570_v14 = vadd.f32 1.0, %v710_v11  ;;  %v573_v24 = vmul.f32 -0.5, %v710_v11  ;;  %v565_v28 = vadd.f32 1.0, %v564_v19 }
 0x2b2   :  { %719 = vlog2.f32 %v579_v12  ;;  %v588_v18 = vadd.f32 1.0, %v712_v13  ;;  %v591_v29 = vmul.f32 -0.5, %v712_v13  ;;  %v583_v32 = vadd.f32 1.0, %v582_v20 }
 0x2b3   :  { %721 = vlog2.f32 %v570_v14  ;;  %v574_v36 = vadd.f32 1.0, %v573_v24  ;;  %vm852_vm3 = vcmp.lt.f32.partialorder %v567_v26, 0.0004427343  ;;  %v576_v43 = vand.u32 2147483647, %v710_v11 }
 0x2b4   :  { %723 = vlog2.f32 %v588_v18  ;;  %v566_v46 = vmul.f32 %v706_v8, %v565_v28  ;;  %v592_v47 = vadd.f32 1.0, %v591_v29  ;;  %v584_v50 = vmul.f32 %v708_v9, %v583_v32 }
 0x2b5   :  { %v594_v51 = vand.u32 2147483647, %v712_v13  ;;  %vm586_vm4 = vcmp.lt.f32.partialorder %v585_v35, 0.0004427343  ;;  %v575_v55 = vmul.f32 %v710_v11, %v574_v36  ;;  %vm577_vm5 = vcmp.lt.f32.partialorder %v576_v43, 0.0004427343 }
 0x2b6   :  { %v714_v23 = vpop.eup %713  ;;  %v593_v61 = vmul.f32 %v712_v13, %v592_v47  ;;  %v535_v10 = vmin.f32 %v842_v60, 0.0  ;;  %v536_v18 = vmin.f32 %v844_v62, 0.0 }
 0x2b7   :  { %v716_v25 = vpop.eup %715  ;;  %v597_v27 = vadd.f32 1.0, %v714_v23  ;;  %v600_v48 = vmul.f32 -0.5, %v714_v23  ;;  %v603_v3 = vand.u32 2147483647, %v714_v23  ;;  %vm595_vm6 = vcmp.lt.f32.partialorder %v594_v51, 0.0004427343 }
 0x2b8   :  { %v606_v30 = vadd.f32 1.0, %v716_v25  ;;  %v609_v52 = vmul.f32 -0.5, %v716_v25  ;;  %v612_v5 = vand.u32 2147483647, %v716_v25 }
 0x2b9   :  { %725 = vlog2.f32 %v597_v27  ;;  %v601_v63 = vadd.f32 1.0, %v600_v48  ;;  %vm604_vm7 = vcmp.lt.f32.partialorder %v603_v3, 0.0004427343 }
 0x2ba   :  { %727 = vlog2.f32 %v606_v30  ;;  %v610_v2 = vadd.f32 1.0, %v609_v52  ;;  %vm613_vm8 = vcmp.lt.f32.partialorder %v612_v5, 0.0004427343 }
 0x2bb   :  { %v718_v37 = vpop.eup %717  ;;  %v602_v12 = vmul.f32 %v714_v23, %v601_v63 }
 0x2bc   :  { %v720_v38 = vpop.eup %719  ;;  %v563_v45 = vmul.f32 0.6931472, %v718_v37  ;;  %v611_v16 = vmul.f32 %v716_v25, %v610_v2 }
 0x2bd   :  { %v722_v49 = vpop.eup %721  ;;  %v581_v39 = vmul.f32 0.6931472, %v720_v38 }
 0x2be   :  { %v569_v53 = vsel %vm852_vm3, %v566_v46, %v563_v45  ;;  %v572_v54 = vmul.f32 0.6931472, %v722_v49  ;;  %v724_v42 = vpop.eup %723 }
 0x2bf   :  { %v615_v56 = vsub.f32 %v531_v31, %v569_v53  ;;  %v587_v57 = vsel %vm586_vm4, %v584_v50, %v581_v39  ;;  %v590_v59 = vmul.f32 0.6931472, %v724_v42 }
 0x2c0   :  { %v578_v58 = vsel %vm577_vm5, %v575_v55, %v572_v54  ;;  %v617_v0 = vsub.f32 %v533_v34, %v587_v57 }
 0x2c1   :  { %v616_v1 = vsub.f32 %v532_v41, %v578_v58  ;;  %v596_v4 = vsel %vm595_vm6, %v593_v61, %v590_v59 }
 0x2c2   :  { %v618_v8 = vsub.f32 %v534_v44, %v596_v4 }
 0x2c3   :  { %v726_v6 = vpop.eup %725  ;;  %v691_v7 = vpack.c.bf16 %v616_v1, %v615_v56 }
 0x2c4   :  { %v728_v9 = vpop.eup %727  ;;  %v599_v11 = vmul.f32 0.6931472, %v726_v6  ;;  %v692_v15 = vpack.c.bf16 %v618_v8, %v617_v0 }
 0x2c5   :  { %v641_v14 = vrot.slane %v691_v7, %v849_v33  ;;  %v608_v13 = vmul.f32 0.6931472, %v728_v9 }
 0x2c6   :  { %v605_v17 = vsel %vm604_vm7, %v602_v12, %v599_v11  ;;  %v648_v19 = vrot.slane %v692_v15, %v849_v33 }
 0x2c7   :  { %v619_v20 = vsub.f32 %v535_v10, %v605_v17  ;;  %v614_v21 = vsel %vm613_vm8, %v611_v16, %v608_v13 }
 0x2c8   :  { %v620_v22 = vsub.f32 %v536_v18, %v614_v21  ;;  %v649_v60 = vcombine.low %v641_v14, %v648_v19 }
 0x2ca   :  { %v693_v24 = vpack.c.bf16 %v620_v22, %v619_v20  ;;  %660 = vst [vmem:[%s878_s7] sm:$0xff] %v649_v60 }
 0x2cc   :  { %v657_v23 = vrot.slane %v693_v24, %v849_v33 }
 0x2ce   :  { %664 = vst.msk [vmem:[%s878_s7 + $0x8] sm:$0xf] %vm663_vm11, %v657_v23 }

// kernel: cond1_forward.35
= control target key start
LH: loop header
LB: loop body
LE: loop exit
PB: predicated region body
PF: predicated region fallthrough
CT: control target
= control target key end

     0   :  { %v44_v0 = vlaneseq  ;;  %v1402_v3 = vmov 1983009808   ;;  %v1403_v6 = vmov 0   ;;  %vm95_vm0 = vcmask 1041408   ;;  %s1727_s0 = inlined_call_operand.vmem [shape: bf16[4,1458], index: 0, kind: input, shape index: {}]   ;;  %s1728_s2 = inlined_call_operand.vmem [shape: f32[8,1], index: 2, kind: input, shape index: {}]   ;;  %s1729_s4 = inlined_call_operand.vmem [shape: f32[4,1], index: 4, kind: input, shape index: {}]   ;;  %s1730_s1 = inlined_call_operand.vmem [shape: bf16[8,4], index: 1, kind: input, shape index: {}]   ;;  %s1731_s3 = inlined_call_operand.vmem [shape: bf16[4,8], index: 3, kind: input, shape index: {}]   ;;  %s1732_s6 = inlined_call_operand.vmem [shape: f32[2,1], index: 6, kind: input, shape index: {}]   ;;  %s1733_s5 = inlined_call_operand.vmem [shape: bf16[2,4], index: 5, kind: input, shape index: {}]   ;;  %s1734_s7 = inlined_call_operand.vmem [shape: bf16[2,1458], index: 7, kind: output, shape index: {}]  }
   0x1   :  { %v28_v1 = vld [vmem:[%s1727_s0] sm:$0xff]  ;;  %v29_v2 = vld [vmem:[%s1727_s0 + $0x8] sm:$0xff]  ;;  %v42_v4 = vunpack.c.l.s4 %v1402_v3  ;;  %164 = vmatprep.mubr.bf16.mxu0 %v1403_v6  ;;  %205 = vmatprep.mubr.bf16.mxu1 %v1403_v6  ;;  %v30_v8 = vld [vmem:[%s1727_s0 + $0x10] sm:$0xff]  ;;  %vm91_vm1 = vcmask 31744   ;;  %vm413_vm2 = vcmask 1043456   ;;  %vm409_vm3 = vcmask 64512  }
   0x2   :  { %v1451_v5 = vshrl.u32 %v44_v0, 7  ;;  %v31_v7 = vld [vmem:[%s1728_s2] sm:$0xff]  ;;  %v57_v10 = vcombine.high %v29_v2, %v29_v2  ;;  %v40_v11 = vcombine.high %v28_v1, %v28_v1  ;;  %1349 = vset.pattern.permute.xlu0 %v1403_v6  ;;  %1350 = vset.pattern.permute.xlu1 %v1403_v6  ;;  %v74_v14 = vcombine.high %v30_v8, %v30_v8 }
   0x3   :  { %v43_v9 = vunpack.c.0.s8 %v42_v4  ;;  %34 = vperm.xlu0 %1349, %v31_v7   ;;  %v403_v13 = vld [vmem:[%s1729_s4] sm:$0xf]  ;;  %vm1292_vm15 = vcmask 1040384  }
   0x4   :  { %v27_v27 = vld [vmem:[%s1730_s1] sm:$0xf] }
   0x5   :  { %v46_v12 = vsub.s32 %v43_v9, %v1451_v5  ;;  %v402_v63 = vld [vmem:[%s1731_s3] sm:$0x3] }
   0x7   :  { %v47_v15 = vrot.slane %v28_v1, %v46_v12  ;;  %v54_v16 = vrot.slane %v40_v11, %v46_v12  ;;  %v64_v17 = vrot.slane %v29_v2, %v46_v12  ;;  %v71_v18 = vrot.slane %v57_v10, %v46_v12  ;;  %406 = vperm.xlu0 %1349, %v403_v13  }
   0x8   :  { %v81_v25 = vrot.slane %v30_v8, %v46_v12  ;;  %v88_v26 = vrot.slane %v74_v14, %v46_v12 }
   0x9   :  { %v55_v19 = vcombine.high %v47_v15, %v47_v15  ;;  %v56_v20 = vcombine.high %v54_v16, %v54_v16  ;;  %v97_v21 = vsel %vm95_vm0, %v47_v15, 0  ;;  %v103_v22 = vsel %vm95_vm0, %v54_v16, 0 }
   0xa   :  { %v72_v23 = vcombine.high %v64_v17, %v64_v17  ;;  %v73_v24 = vcombine.high %v71_v18, %v71_v18  ;;  %v109_v28 = vsel %vm95_vm0, %v64_v17, 0  ;;  %v115_v29 = vsel %vm95_vm0, %v71_v18, 0 }
   0xb   :  { %1304 = vmatprep.subr.msk.bf16.mxu0 %vm95_vm0, %v55_v19  ;;  %1306 = vmatprep.subr.msk.bf16.mxu1 %vm95_vm0, %v56_v20  ;;  %v89_v30 = vcombine.high %v81_v25, %v81_v25  ;;  %v90_v31 = vcombine.high %v88_v26, %v88_v26  ;;  %v121_v32 = vsel %vm95_vm0, %v81_v25, 0  ;;  %v127_v33 = vsel %vm95_vm0, %v88_v26, 0 }
   0xc   :  { %133 = vmatpush1.bf16.msra.mxu0 %v97_v21  ;;  %174 = vmatpush1.bf16.msra.mxu1 %v103_v22 }
   0xd   :  { %1308 = vmatprep.subr.msk.bf16.mxu0 %vm95_vm0, %v72_v23  ;;  %1310 = vmatprep.subr.msk.bf16.mxu1 %vm95_vm0, %v73_v24 }
   0xf   :  { %1305 = vmatmul.mubr.msk.bf16.vlgmr.msra.gmra.mrb[0].mxu0 %vm91_vm1, %v27_v27  ;;  %1307 = vmatmul.mubr.msk.bf16.vlgmr.msra.gmra.mrb[0].mxu1 %vm91_vm1, %v27_v27 }
  0x10   :  { %215 = vmatpush1.bf16.msra.mxu0 %v109_v28  ;;  %256 = vmatpush1.bf16.msra.mxu1 %v115_v29 }
  0x11   :  { %246 = vmatprep.mubr.bf16.mxu0 %v1403_v6  ;;  %287 = vmatprep.mubr.bf16.mxu1 %v1403_v6 }
  0x12   :  { %1312 = vmatprep.subr.msk.bf16.mxu0 %vm95_vm0, %v89_v30  ;;  %1314 = vmatprep.subr.msk.bf16.mxu1 %vm95_vm0, %v90_v31 }
  0x17   :  { %1309 = vmatmul.mubr.msk.bf16.vlgmr.msra.gmra.mrb[4].mxu0 %vm91_vm1, %v27_v27  ;;  %1311 = vmatmul.mubr.msk.bf16.vlgmr.msra.gmra.mrb[4].mxu1 %vm91_vm1, %v27_v27 }
  0x18   :  { %297 = vmatpush1.bf16.msra.mxu0 %v121_v32  ;;  %338 = vmatpush1.bf16.msra.mxu1 %v127_v33 }
  0x19   :  { %328 = vmatprep.mubr.bf16.mxu0 %v1403_v6  ;;  %369 = vmatprep.mubr.bf16.mxu1 %v1403_v6 }
  0x1f   :  { %1313 = vmatmul.mubr.msk.bf16.vlgmr.msra.gmra.mrb[8].mxu0 %vm91_vm1, %v27_v27  ;;  %1315 = vmatmul.mubr.msk.bf16.vlgmr.msra.gmra.mrb[8].mxu1 %vm91_vm1, %v27_v27 }
  0x20   :  { %482 = vmatprep.mubr.bf16.mxu0 %v1403_v6  ;;  %523 = vmatprep.mubr.bf16.mxu1 %v1403_v6 }
  0x82   :  { %v1494_v34 = vpop.permute.xlu0 %34 }
  0xe2   :  { %v166_v35 = vpop.f32.mrb[0].mxu0  ;;  %v207_v36 = vpop.f32.mrb[0].mxu1 }
  0xe3   :  { %v167_v37 = vadd.f32 %v166_v35, %v1494_v34  ;;  %v208_v38 = vadd.f32 %v207_v36, %v1494_v34  ;;  %v168_v39 = vpop.f32.mrb[1].mxu0  ;;  %v209_v40 = vpop.f32.mrb[1].mxu1 }
  0xe4   :  { %v169_v41 = vadd.f32 %v168_v39, %v1494_v34  ;;  %v210_v42 = vadd.f32 %v209_v40, %v1494_v34  ;;  %v170_v43 = vpop.f32.mrb[2].mxu0  ;;  %v211_v44 = vpop.f32.mrb[2].mxu1  ;;  %v721_v40 = vld [vmem:[%s1732_s6] sm:$0x3] }
  0xe5   :  { %v378_v45 = vmax.f32 %v167_v37, 0.0  ;;  %v380_v46 = vmax.f32 %v208_v38, 0.0  ;;  %v171_v47 = vpop.f32.mrb[3].mxu0  ;;  %v212_v48 = vpop.f32.mrb[3].mxu1  ;;  %724 = vperm.xlu1 %1350, %v721_v40  }
  0xe6   :  { %v379_v49 = vmax.f32 %v169_v41, 0.0  ;;  %v381_v50 = vmax.f32 %v210_v42, 0.0  ;;  %v1538_v41 = vpop.permute.xlu0 %406 }
  0xe7   :  { %v390_v51 = vpack.c.bf16 %v378_v45, %v378_v45  ;;  %v392_v52 = vpack.c.bf16 %v380_v46, %v380_v46 }
  0xe8   :  { %v391_v53 = vpack.c.bf16 %v379_v49, %v379_v49  ;;  %v393_v54 = vpack.c.bf16 %v381_v50, %v381_v50 }
  0xe9   :  { %v415_v55 = vsel %vm413_vm2, %v390_v51, 0  ;;  %v421_v56 = vsel %vm413_vm2, %v392_v52, 0 }
  0xea   :  { %v248_v57 = vpop.f32.mrb[4].mxu0  ;;  %v289_v58 = vpop.f32.mrb[4].mxu1  ;;  %1316 = vmatprep.subr.msk.bf16.mxu0 %vm413_vm2, %v391_v53  ;;  %1318 = vmatprep.subr.msk.bf16.mxu1 %vm413_vm2, %v393_v54 }
  0xeb   :  { %v249_v59 = vadd.f32 %v248_v57, %v1494_v34  ;;  %v290_v60 = vadd.f32 %v289_v58, %v1494_v34  ;;  %v250_v61 = vpop.f32.mrb[5].mxu0  ;;  %v291_v62 = vpop.f32.mrb[5].mxu1  ;;  %451 = vmatpush1.bf16.msra.mxu0 %v415_v55  ;;  %492 = vmatpush1.bf16.msra.mxu1 %v421_v56 }
  0xec   :  { %v251_v0 = vadd.f32 %v250_v61, %v1494_v34  ;;  %v292_v1 = vadd.f32 %v291_v62, %v1494_v34  ;;  %v252_v2 = vpop.f32.mrb[6].mxu0  ;;  %v293_v3 = vpop.f32.mrb[6].mxu1 }
  0xed   :  { %v382_v4 = vmax.f32 %v249_v59, 0.0  ;;  %v384_v7 = vmax.f32 %v290_v60, 0.0  ;;  %v253_v8 = vpop.f32.mrb[7].mxu0  ;;  %v294_v9 = vpop.f32.mrb[7].mxu1 }
  0xee   :  { %v383_v10 = vmax.f32 %v251_v0, 0.0  ;;  %v385_v11 = vmax.f32 %v292_v1, 0.0  ;;  %1317 = vmatmul.mubr.msk.bf16.vlgmr.msra.gmra.mrb[12].mxu0 %vm409_vm3, %v402_v63  ;;  %1319 = vmatmul.mubr.msk.bf16.vlgmr.msra.gmra.mrb[12].mxu1 %vm409_vm3, %v402_v63  ;;  %v720_v8 = vld [vmem:[%s1733_s5] sm:$0x1] }
  0xef   :  { %v394_v12 = vpack.c.bf16 %v382_v4, %v382_v4  ;;  %v396_v13 = vpack.c.bf16 %v384_v7, %v384_v7  ;;  %564 = vmatprep.mubr.bf16.mxu0 %v1403_v6  ;;  %605 = vmatprep.mubr.bf16.mxu1 %v1403_v6 }
  0xf0   :  { %v395_v14 = vpack.c.bf16 %v383_v10, %v383_v10  ;;  %v397_v15 = vpack.c.bf16 %v385_v11, %v385_v11 }
  0xf1   :  { %v427_v16 = vsel %vm413_vm2, %v394_v12, 0  ;;  %v433_v17 = vsel %vm413_vm2, %v396_v13, 0 }
  0xf2   :  { %v330_v18 = vpop.f32.mrb[8].mxu0  ;;  %v371_v19 = vpop.f32.mrb[8].mxu1  ;;  %1320 = vmatprep.subr.msk.bf16.mxu0 %vm413_vm2, %v395_v14  ;;  %1322 = vmatprep.subr.msk.bf16.mxu1 %vm413_vm2, %v397_v15 }
  0xf3   :  { %v331_v20 = vadd.f32 %v330_v18, %v1494_v34  ;;  %v372_v21 = vadd.f32 %v371_v19, %v1494_v34  ;;  %v332_v22 = vpop.f32.mrb[9].mxu0  ;;  %v373_v23 = vpop.f32.mrb[9].mxu1  ;;  %533 = vmatpush1.bf16.msra.mxu0 %v427_v16  ;;  %574 = vmatpush1.bf16.msra.mxu1 %v433_v17 }
  0xf4   :  { %v333_v24 = vadd.f32 %v332_v22, %v1494_v34  ;;  %v374_v25 = vadd.f32 %v373_v23, %v1494_v34  ;;  %v334_v26 = vpop.f32.mrb[10].mxu0  ;;  %v375_v27 = vpop.f32.mrb[10].mxu1 }
  0xf5   :  { %v386_v28 = vmax.f32 %v331_v20, 0.0  ;;  %v388_v29 = vmax.f32 %v372_v21, 0.0  ;;  %v335_v30 = vpop.f32.mrb[11].mxu0  ;;  %v376_v31 = vpop.f32.mrb[11].mxu1 }
  0xf6   :  { %v387_v32 = vmax.f32 %v333_v24, 0.0  ;;  %v389_v33 = vmax.f32 %v374_v25, 0.0  ;;  %1321 = vmatmul.mubr.msk.bf16.vlgmr.msra.gmra.mrb[16].mxu0 %vm409_vm3, %v402_v63  ;;  %1323 = vmatmul.mubr.msk.bf16.vlgmr.msra.gmra.mrb[16].mxu1 %vm409_vm3, %v402_v63 }
  0xf7   :  { %v398_v35 = vpack.c.bf16 %v386_v28, %v386_v28  ;;  %v400_v36 = vpack.c.bf16 %v388_v29, %v388_v29  ;;  %646 = vmatprep.mubr.bf16.mxu0 %v1403_v6  ;;  %687 = vmatprep.mubr.bf16.mxu1 %v1403_v6 }
  0xf8   :  { %v399_v37 = vpack.c.bf16 %v387_v32, %v387_v32  ;;  %v401_v34 = vpack.c.bf16 %v389_v33, %v389_v33 }
  0xf9   :  { %v439_v38 = vsel %vm413_vm2, %v398_v35, 0  ;;  %v445_v39 = vsel %vm413_vm2, %v400_v36, 0 }
  0xfa   :  { %1324 = vmatprep.subr.msk.bf16.mxu0 %vm413_vm2, %v399_v37  ;;  %1326 = vmatprep.subr.msk.bf16.mxu1 %vm413_vm2, %v401_v34 }
  0xfb   :  { %615 = vmatpush1.bf16.msra.mxu0 %v439_v38  ;;  %656 = vmatpush1.bf16.msra.mxu1 %v445_v39 }
  0xfe   :  { %1325 = vmatmul.mubr.msk.bf16.vlgmr.msra.gmra.mrb[20].mxu0 %vm409_vm3, %v402_v63  ;;  %1327 = vmatmul.mubr.msk.bf16.vlgmr.msra.gmra.mrb[20].mxu1 %vm409_vm3, %v402_v63  ;;  %vm1295_vm3 = vcmask 1042434  }
  0xff   :  { %798 = vmatprep.mubr.bf16.mxu0 %v1403_v6  ;;  %839 = vmatprep.mubr.bf16.mxu1 %v1403_v6 }
 0x1c1   :  { %v484_v42 = vpop.f32.mrb[12].mxu0  ;;  %v525_v43 = vpop.f32.mrb[12].mxu1 }
 0x1c2   :  { %v485_v44 = vadd.f32 %v484_v42, %v1538_v41  ;;  %v526_v45 = vadd.f32 %v525_v43, %v1538_v41  ;;  %v486_v46 = vpop.f32.mrb[13].mxu0  ;;  %v527_v47 = vpop.f32.mrb[13].mxu1 }
 0x1c3   :  { %v487_v48 = vadd.f32 %v486_v46, %v1538_v41  ;;  %v528_v49 = vadd.f32 %v527_v47, %v1538_v41  ;;  %v488_v50 = vpop.f32.mrb[14].mxu0  ;;  %v529_v51 = vpop.f32.mrb[14].mxu1 }
 0x1c4   :  { %v696_v52 = vmax.f32 %v485_v44, 0.0  ;;  %v698_v53 = vmax.f32 %v526_v45, 0.0  ;;  %v489_v54 = vpop.f32.mrb[15].mxu0  ;;  %v530_v55 = vpop.f32.mrb[15].mxu1 }
 0x1c5   :  { %v697_v56 = vmax.f32 %v487_v48, 0.0  ;;  %v699_v57 = vmax.f32 %v528_v49, 0.0  ;;  %v1577_v47 = vpop.permute.xlu1 %724 }
 0x1c6   :  { %v708_v58 = vpack.c.bf16 %v696_v52, %v696_v52  ;;  %v710_v59 = vpack.c.bf16 %v698_v53, %v698_v53 }
 0x1c7   :  { %v709_v60 = vpack.c.bf16 %v697_v56, %v697_v56  ;;  %v711_v61 = vpack.c.bf16 %v699_v57, %v699_v57 }
 0x1c8   :  { %v731_v62 = vsel %vm95_vm0, %v708_v58, 0  ;;  %v737_v63 = vsel %vm95_vm0, %v710_v59, 0 }
 0x1c9   :  { %v566_v0 = vpop.f32.mrb[16].mxu0  ;;  %v607_v1 = vpop.f32.mrb[16].mxu1  ;;  %1328 = vmatprep.subr.msk.bf16.mxu0 %vm95_vm0, %v709_v60  ;;  %1330 = vmatprep.subr.msk.bf16.mxu1 %vm95_vm0, %v711_v61 }
 0x1ca   :  { %v567_v2 = vadd.f32 %v566_v0, %v1538_v41  ;;  %v608_v3 = vadd.f32 %v607_v1, %v1538_v41  ;;  %v568_v4 = vpop.f32.mrb[17].mxu0  ;;  %v609_v7 = vpop.f32.mrb[17].mxu1  ;;  %767 = vmatpush1.bf16.msra.mxu0 %v731_v62  ;;  %808 = vmatpush1.bf16.msra.mxu1 %v737_v63 }
 0x1cb   :  { %v569_v9 = vadd.f32 %v568_v4, %v1538_v41  ;;  %v610_v10 = vadd.f32 %v609_v7, %v1538_v41  ;;  %v570_v11 = vpop.f32.mrb[18].mxu0  ;;  %v611_v12 = vpop.f32.mrb[18].mxu1 }
 0x1cc   :  { %v700_v13 = vmax.f32 %v567_v2, 0.0  ;;  %v702_v14 = vmax.f32 %v608_v3, 0.0  ;;  %v571_v15 = vpop.f32.mrb[19].mxu0  ;;  %v612_v16 = vpop.f32.mrb[19].mxu1 }
 0x1cd   :  { %v701_v17 = vmax.f32 %v569_v9, 0.0  ;;  %v703_v18 = vmax.f32 %v610_v10, 0.0  ;;  %1329 = vmatmul.mubr.msk.bf16.vlgmr.msra.gmra.mrb[24].mxu0 %vm91_vm1, %v720_v8  ;;  %1331 = vmatmul.mubr.msk.bf16.vlgmr.msra.gmra.mrb[24].mxu1 %vm91_vm1, %v720_v8 }
 0x1ce   :  { %v712_v19 = vpack.c.bf16 %v700_v13, %v700_v13  ;;  %v714_v20 = vpack.c.bf16 %v702_v14, %v702_v14  ;;  %880 = vmatprep.mubr.bf16.mxu0 %v1403_v6  ;;  %921 = vmatprep.mubr.bf16.mxu1 %v1403_v6 }
 0x1cf   :  { %v713_v21 = vpack.c.bf16 %v701_v17, %v701_v17  ;;  %v715_v22 = vpack.c.bf16 %v703_v18, %v703_v18 }
 0x1d0   :  { %v743_v23 = vsel %vm95_vm0, %v712_v19, 0  ;;  %v749_v24 = vsel %vm95_vm0, %v714_v20, 0  ;;  %v1404_v19 = vmov 1966171168  }
 0x1d1   :  { %v648_v25 = vpop.f32.mrb[20].mxu0  ;;  %v689_v26 = vpop.f32.mrb[20].mxu1  ;;  %1332 = vmatprep.subr.msk.bf16.mxu0 %vm95_vm0, %v713_v21  ;;  %1334 = vmatprep.subr.msk.bf16.mxu1 %vm95_vm0, %v715_v22  ;;  %v1221_v20 = vunpack.c.l.s4 %v1404_v19 }
 0x1d2   :  { %v649_v27 = vadd.f32 %v648_v25, %v1538_v41  ;;  %v690_v28 = vadd.f32 %v689_v26, %v1538_v41  ;;  %v650_v29 = vpop.f32.mrb[21].mxu0  ;;  %v691_v30 = vpop.f32.mrb[21].mxu1  ;;  %849 = vmatpush1.bf16.msra.mxu0 %v743_v23  ;;  %890 = vmatpush1.bf16.msra.mxu1 %v749_v24 }
 0x1d3   :  { %v651_v31 = vadd.f32 %v650_v29, %v1538_v41  ;;  %v692_v32 = vadd.f32 %v691_v30, %v1538_v41  ;;  %v652_v33 = vpop.f32.mrb[22].mxu0  ;;  %v693_v35 = vpop.f32.mrb[22].mxu1  ;;  %v1222_v30 = vunpack.c.0.s8 %v1221_v20 }
 0x1d4   :  { %v704_v36 = vmax.f32 %v649_v27, 0.0  ;;  %v706_v37 = vmax.f32 %v690_v28, 0.0  ;;  %v653_v34 = vpop.f32.mrb[23].mxu0  ;;  %v694_v38 = vpop.f32.mrb[23].mxu1 }
 0x1d5   :  { %v705_v39 = vmax.f32 %v651_v31, 0.0  ;;  %v707_v40 = vmax.f32 %v692_v32, 0.0  ;;  %1333 = vmatmul.mubr.msk.bf16.vlgmr.msra.gmra.mrb[28].mxu0 %vm91_vm1, %v720_v8  ;;  %1335 = vmatmul.mubr.msk.bf16.vlgmr.msra.gmra.mrb[28].mxu1 %vm91_vm1, %v720_v8 }
 0x1d6   :  { %v716_v42 = vpack.c.bf16 %v704_v36, %v704_v36  ;;  %v718_v43 = vpack.c.bf16 %v706_v37, %v706_v37  ;;  %962 = vmatprep.mubr.bf16.mxu0 %v1403_v6  ;;  %1003 = vmatprep.mubr.bf16.mxu1 %v1403_v6 }
 0x1d7   :  { %v717_v44 = vpack.c.bf16 %v705_v39, %v705_v39  ;;  %v719_v41 = vpack.c.bf16 %v707_v40, %v707_v40 }
 0x1d8   :  { %v755_v45 = vsel %vm95_vm0, %v716_v42, 0  ;;  %v761_v46 = vsel %vm95_vm0, %v718_v43, 0 }
 0x1d9   :  { %1336 = vmatprep.subr.msk.bf16.mxu0 %vm95_vm0, %v717_v44  ;;  %1338 = vmatprep.subr.msk.bf16.mxu1 %vm95_vm0, %v719_v41  ;;  %v1615_v41 = vsub.s32 %v1222_v30, %v1451_v5 }
 0x1da   :  { %931 = vmatpush1.bf16.msra.mxu0 %v755_v45  ;;  %972 = vmatpush1.bf16.msra.mxu1 %v761_v46 }
 0x1dd   :  { %1337 = vmatmul.mubr.msk.bf16.vlgmr.msra.gmra.mrb[32].mxu0 %vm91_vm1, %v720_v8  ;;  %1339 = vmatmul.mubr.msk.bf16.vlgmr.msra.gmra.mrb[32].mxu1 %vm91_vm1, %v720_v8  ;;  %vm1293_vm1 = vcmask 1041409  }
 0x1de   :  { %vm1294_vm2 = vmor %vm1293_vm1, %vm1292_vm15 }
 0x2a0   :  { %v800_v48 = vpop.f32.mrb[24].mxu0  ;;  %v841_v6 = vpop.f32.mrb[24].mxu1 }
 0x2a1   :  { %v1580_v49 = vadd.f32 %v800_v48, %v1577_v47  ;;  %v1583_v50 = vadd.f32 %v841_v6, %v1577_v47  ;;  %v802_v51 = vpop.f32.mrb[25].mxu0  ;;  %v843_v52 = vpop.f32.mrb[25].mxu1 }
 0x2a2   :  { %v1586_v53 = vadd.f32 %v802_v51, %v1577_v47  ;;  %v1589_v54 = vadd.f32 %v843_v52, %v1577_v47  ;;  %v804_v55 = vpop.f32.mrb[26].mxu0  ;;  %v845_v56 = vpop.f32.mrb[26].mxu1 }
 0x2a3   :  { %v1024_v57 = vand.u32 2147483647, %v1580_v49  ;;  %v1026_v58 = vand.u32 2147483647, %v1583_v50  ;;  %v805_v63 = vpop.f32.mrb[27].mxu0  ;;  %v846_v0 = vpop.f32.mrb[27].mxu1 }
 0x2a4   :  { %v1025_v59 = vand.u32 2147483647, %v1586_v53  ;;  %v1027_v60 = vand.u32 2147483647, %v1589_v54  ;;  %v1012_v45 = vmin.f32 %v1580_v49, 0.0  ;;  %v1014_v56 = vmin.f32 %v1583_v50, 0.0 }
 0x2a5   :  { %v1036_v61 = vsub.f32 0.0, %v1024_v57  ;;  %v1038_v62 = vsub.f32 0.0, %v1026_v58  ;;  %v1015_v5 = vmin.f32 %v1589_v54, 0.0 }
 0x2a6   :  { %v1037_v1 = vsub.f32 0.0, %v1025_v59  ;;  %v1039_v2 = vsub.f32 0.0, %v1027_v60  ;;  %v1013_v60 = vmin.f32 %v1586_v53, 0.0 }
 0x2a7   :  { %v1048_v3 = vmul.f32 1.442695, %v1036_v61  ;;  %v1052_v4 = vmul.f32 1.442695, %v1038_v62 }
 0x2a8   :  { %v1050_v7 = vmul.f32 1.442695, %v1037_v1  ;;  %v1054_v8 = vmul.f32 1.442695, %v1039_v2  ;;  %v882_v9 = vpop.f32.mrb[28].mxu0  ;;  %v923_v10 = vpop.f32.mrb[28].mxu1 }
 0x2a9   :  { %1354 = vpow2.f32 %v1048_v3  ;;  %v1596_v11 = vadd.f32 %v882_v9, %v1577_v47  ;;  %v1599_v12 = vadd.f32 %v923_v10, %v1577_v47  ;;  %v884_v13 = vpop.f32.mrb[29].mxu0  ;;  %v925_v14 = vpop.f32.mrb[29].mxu1 }
 0x2aa   :  { %1356 = vpow2.f32 %v1052_v4  ;;  %v1602_v15 = vadd.f32 %v884_v13, %v1577_v47  ;;  %v1605_v16 = vadd.f32 %v925_v14, %v1577_v47  ;;  %v886_v17 = vpop.f32.mrb[30].mxu0  ;;  %v927_v18 = vpop.f32.mrb[30].mxu1 }
 0x2ab   :  { %1358 = vpow2.f32 %v1050_v7  ;;  %v1028_v21 = vand.u32 2147483647, %v1596_v11  ;;  %v887_v22 = vpop.f32.mrb[31].mxu0  ;;  %v928_v23 = vpop.f32.mrb[31].mxu1  ;;  %v1030_v24 = vand.u32 2147483647, %v1599_v12 }
 0x2ac   :  { %1360 = vpow2.f32 %v1054_v8  ;;  %v1029_v25 = vand.u32 2147483647, %v1602_v15  ;;  %v1031_v27 = vand.u32 2147483647, %v1605_v16  ;;  %v1016_v63 = vmin.f32 %v1596_v11, 0.0 }
 0x2ad   :  { %v1040_v26 = vsub.f32 0.0, %v1028_v21  ;;  %v1042_v28 = vsub.f32 0.0, %v1030_v24  ;;  %v1018_v10 = vmin.f32 %v1599_v12, 0.0  ;;  %v1017_v13 = vmin.f32 %v1602_v15, 0.0 }
 0x2ae   :  { %v1041_v29 = vsub.f32 0.0, %v1029_v25  ;;  %v1043_v32 = vsub.f32 0.0, %v1031_v27  ;;  %v1019_v14 = vmin.f32 %v1605_v16, 0.0 }
 0x2af   :  { %v1056_v31 = vmul.f32 1.442695, %v1040_v26  ;;  %v1060_v33 = vmul.f32 1.442695, %v1042_v28 }
 0x2b0   :  { %v1058_v35 = vmul.f32 1.442695, %v1041_v29  ;;  %v964_v36 = vpop.f32.mrb[32].mxu0  ;;  %v1005_v37 = vpop.f32.mrb[32].mxu1  ;;  %v1062_v34 = vmul.f32 1.442695, %v1043_v32 }
 0x2b1   :  { %1362 = vpow2.f32 %v1056_v31  ;;  %v1612_v38 = vadd.f32 %v964_v36, %v1577_v47  ;;  %v966_v39 = vpop.f32.mrb[33].mxu0  ;;  %v1007_v40 = vpop.f32.mrb[33].mxu1  ;;  %v1627_v18 = vadd.f32 %v1005_v37, %v1577_v47 }
 0x2b2   :  { %1364 = vpow2.f32 %v1060_v33  ;;  %v968_v42 = vpop.f32.mrb[34].mxu0  ;;  %v1009_v43 = vpop.f32.mrb[34].mxu1  ;;  %v1630_v19 = vadd.f32 %v966_v39, %v1577_v47  ;;  %v1641_v24 = vadd.f32 %v1007_v40, %v1577_v47 }
 0x2b3   :  { %v1355_v44 = vpop.eup %1354  ;;  %1366 = vpow2.f32 %v1058_v35  ;;  %v1032_v46 = vand.u32 2147483647, %v1612_v38  ;;  %v969_v48 = vpop.f32.mrb[35].mxu0  ;;  %v1034_v40 = vand.u32 2147483647, %v1627_v18 }
 0x2b4   :  { %v1010_v6 = vpop.f32.mrb[35].mxu1  ;;  %v1357_v51 = vpop.eup %1356  ;;  %v1072_v52 = vadd.f32 1.0, %v1355_v44  ;;  %v1075_v55 = vmul.f32 -0.5, %v1355_v44  ;;  %1368 = vpow2.f32 %v1062_v34  ;;  %v1078_v2 = vand.u32 2147483647, %v1355_v44 }
 0x2b5   :  { %v1359_v57 = vpop.eup %1358  ;;  %v1090_v58 = vadd.f32 1.0, %v1357_v51  ;;  %v1093_v59 = vmul.f32 -0.5, %v1357_v51  ;;  %v1044_v0 = vsub.f32 0.0, %v1032_v46  ;;  %v1096_v3 = vand.u32 2147483647, %v1357_v51 }
 0x2b6   :  { %v1361_v61 = vpop.eup %1360  ;;  %1370 = vlog2.f32 %v1072_v52  ;;  %v1081_v62 = vadd.f32 1.0, %v1359_v57  ;;  %v1076_v1 = vadd.f32 1.0, %v1075_v55  ;;  %v1084_v7 = vmul.f32 -0.5, %v1359_v57 }
 0x2b7   :  { %1372 = vlog2.f32 %v1090_v58  ;;  %v1094_v4 = vadd.f32 1.0, %v1093_v59  ;;  %v1099_v8 = vadd.f32 1.0, %v1361_v61  ;;  %v1102_v9 = vmul.f32 -0.5, %v1361_v61 }
 0x2b8   :  { %1374 = vlog2.f32 %v1081_v62  ;;  %v1064_v17 = vmul.f32 1.442695, %v1044_v0  ;;  %vm1632_vm4 = vcmp.lt.f32.partialorder %v1078_v2, 0.0004427343  ;;  %vm1636_vm5 = vcmp.lt.f32.partialorder %v1096_v3, 0.0004427343 }
 0x2b9   :  { %1376 = vlog2.f32 %v1099_v8  ;;  %v1087_v23 = vand.u32 2147483647, %v1359_v57  ;;  %v1077_v26 = vmul.f32 %v1355_v44, %v1076_v1  ;;  %v1095_v27 = vmul.f32 %v1357_v51, %v1094_v4 }
 0x2ba   :  { %v1085_v28 = vadd.f32 1.0, %v1084_v7  ;;  %v1103_v31 = vadd.f32 1.0, %v1102_v9  ;;  %v1105_v32 = vand.u32 2147483647, %v1361_v61  ;;  %1378 = vpow2.f32 %v1064_v17 }
 0x2bb   :  { %v1363_v20 = vpop.eup %1362  ;;  %vm1645_vm6 = vcmp.lt.f32.partialorder %v1087_v23, 0.0004427343  ;;  %v1046_v9 = vsub.f32 0.0, %v1034_v40  ;;  %v1033_v22 = vand.u32 2147483647, %v1630_v19 }
 0x2bc   :  { %v1365_v25 = vpop.eup %1364  ;;  %v1108_v29 = vadd.f32 1.0, %v1363_v20  ;;  %v1111_v36 = vmul.f32 -0.5, %v1363_v20  ;;  %v1114_v37 = vand.u32 2147483647, %v1363_v20  ;;  %v1086_v43 = vmul.f32 %v1359_v57, %v1085_v28 }
 0x2bd   :  { %v1367_v30 = vpop.eup %1366  ;;  %v1126_v33 = vadd.f32 1.0, %v1365_v25  ;;  %v1129_v47 = vmul.f32 -0.5, %v1365_v25  ;;  %v1132_v44 = vand.u32 2147483647, %v1365_v25  ;;  %v1104_v51 = vmul.f32 %v1361_v61, %v1103_v31 }
 0x2be   :  { %v1643_v35 = vpop.eup %1368  ;;  %1380 = vlog2.f32 %v1108_v29  ;;  %v1117_v34 = vadd.f32 1.0, %v1367_v30  ;;  %vm1651_vm7 = vcmp.lt.f32.partialorder %v1105_v32, 0.0004427343  ;;  %v1120_v55 = vmul.f32 -0.5, %v1367_v30 }
 0x2bf   :  { %1382 = vlog2.f32 %v1126_v33  ;;  %v1135_v46 = vadd.f32 1.0, %v1643_v35  ;;  %v1112_v62 = vadd.f32 1.0, %v1111_v36  ;;  %vm1655_vm8 = vcmp.lt.f32.partialorder %v1114_v37, 0.0004427343 }
 0x2c0   :  { %v1371_v42 = vpop.eup %1370  ;;  %1384 = vlog2.f32 %v1117_v34  ;;  %v1130_v2 = vadd.f32 1.0, %v1129_v47  ;;  %v1123_v3 = vand.u32 2147483647, %v1367_v30  ;;  %vm1665_vm9 = vcmp.lt.f32.partialorder %v1132_v44, 0.0004427343 }
 0x2c1   :  { %v1373_v48 = vpop.eup %1372  ;;  %v1074_v6 = vmul.f32 0.6931472, %v1371_v42  ;;  %1386 = vlog2.f32 %v1135_v46  ;;  %v1121_v23 = vadd.f32 1.0, %v1120_v55  ;;  %v1113_v31 = vmul.f32 %v1363_v20, %v1112_v62 }
 0x2c2   :  { %v1375_v58 = vpop.eup %1374  ;;  %v1092_v59 = vmul.f32 0.6931472, %v1373_v48  ;;  %v1131_v32 = vmul.f32 %v1365_v25, %v1130_v2  ;;  %vm1681_vm10 = vcmp.lt.f32.partialorder %v1123_v3, 0.0004427343  ;;  %v1141_v47 = vand.u32 2147483647, %v1643_v35 }
 0x2c3   :  { %v1080_v57 = vsel %vm1632_vm4, %v1077_v26, %v1074_v6  ;;  %v1083_v1 = vmul.f32 0.6931472, %v1375_v58  ;;  %v1377_v61 = vpop.eup %1376  ;;  %v1138_v26 = vmul.f32 -0.5, %v1643_v35  ;;  %v1122_v34 = vmul.f32 %v1367_v30, %v1121_v23  ;;  %vm1296_vm4 = vmor %vm1295_vm3, %vm1294_vm2 }
 0x2c4   :  { %v1180_v4 = vsub.f32 %v1012_v45, %v1080_v57  ;;  %v1098_v7 = vsel %vm1636_vm5, %v1095_v27, %v1092_v59  ;;  %v1101_v21 = vmul.f32 0.6931472, %v1377_v61  ;;  %v1068_v45 = vmul.f32 1.442695, %v1046_v9  ;;  %v1677_v27 = vpop.eup %1378 }
 0x2c5   :  { %v1089_v17 = vsel %vm1645_vm6, %v1086_v43, %v1083_v1  ;;  %v1182_v28 = vsub.f32 %v1014_v56, %v1098_v7  ;;  %v1045_v56 = vsub.f32 0.0, %v1033_v22  ;;  %v1139_v39 = vadd.f32 1.0, %v1138_v26 }
 0x2c6   :  { %v1181_v49 = vsub.f32 %v1013_v60, %v1089_v17  ;;  %v1107_v29 = vsel %vm1651_vm7, %v1104_v51, %v1101_v21  ;;  %1388 = vpow2.f32 %v1068_v45  ;;  %v1144_v54 = vadd.f32 1.0, %v1677_v27 }
 0x2c7   :  { %v1183_v53 = vsub.f32 %v1015_v5, %v1107_v29  ;;  %v1066_v43 = vmul.f32 1.442695, %v1045_v56  ;;  %v1035_v5 = vand.u32 2147483647, %v1641_v24  ;;  %v1140_v58 = vmul.f32 %v1643_v35, %v1139_v39 }
 0x2c8   :  { %v1381_v36 = vpop.eup %1380  ;;  %v1340_v50 = vpack.c.bf16 %v1181_v49, %v1180_v4  ;;  %vm1142_vm11 = vcmp.lt.f32.partialorder %v1141_v47, 0.0004427343  ;;  %v1147_v9 = vmul.f32 -0.5, %v1677_v27  ;;  %vm1297_vm5 = vcmask 404483  }
 0x2c9   :  { %v1383_v60 = vpop.eup %1382  ;;  %v1110_v37 = vmul.f32 0.6931472, %v1381_v36  ;;  %v1341_v25 = vpack.c.bf16 %v1183_v53, %v1182_v28  ;;  %1390 = vpow2.f32 %v1066_v43  ;;  %v1047_v59 = vsub.f32 0.0, %v1035_v5  ;;  %vm1298_vm6 = vmor %vm1297_vm5, %vm1296_vm4 }
 0x2ca   :  { %v1385_v40 = vpop.eup %1384  ;;  %v1226_v20 = vrot.slane %v1340_v50, %v1615_v41  ;;  %v1128_v42 = vmul.f32 0.6931472, %v1383_v60  ;;  %1392 = vlog2.f32 %v1144_v54  ;;  %v1148_v21 = vadd.f32 1.0, %v1147_v9 }
 0x2cb   :  { %v1116_v44 = vsel %vm1655_vm8, %v1113_v31, %v1110_v37  ;;  %v1119_v46 = vmul.f32 0.6931472, %v1385_v40  ;;  %v1387_v48 = vpop.eup %1386  ;;  %v1233_v30 = vrot.slane %v1341_v25, %v1615_v41  ;;  %v1150_v28 = vand.u32 2147483647, %v1677_v27 }
 0x2cc   :  { %v1184_v6 = vsub.f32 %v1016_v63, %v1116_v44  ;;  %v1134_v51 = vsel %vm1665_vm9, %v1131_v32, %v1128_v42  ;;  %v1137_v55 = vmul.f32 0.6931472, %v1387_v48  ;;  %v1070_v63 = vmul.f32 1.442695, %v1047_v59 }
 0x2cd   :  { %v1125_v52 = vsel %vm1681_vm10, %v1122_v34, %v1119_v46  ;;  %v1248_v62 = vcombine.low %v1226_v20, %v1233_v30  ;;  %v1186_v0 = vsub.f32 %v1018_v10, %v1134_v51  ;;  %v1149_v29 = vmul.f32 %v1677_v27, %v1148_v21 }
 0x2ce   :  { %v1185_v57 = vsub.f32 %v1017_v13, %v1125_v52  ;;  %v1143_v11 = vsel %vm1142_vm11, %v1140_v58, %v1137_v55  ;;  %1394 = vpow2.f32 %v1070_v63  ;;  %vm1151_vm12 = vcmp.lt.f32.partialorder %v1150_v28, 0.0004427343 }
 0x2cf   :  { %v1256_v1 = vrot.slane %v1248_v62, %v1615_v41  ;;  %v1187_v3 = vsub.f32 %v1019_v14, %v1143_v11  ;;  %v1020_v60 = vmin.f32 %v1612_v38, 0.0  ;;  %v1021_v34 = vmin.f32 %v1630_v19, 0.0 }
 0x2d0   :  { %v1342_v2 = vpack.c.bf16 %v1185_v57, %v1184_v6  ;;  %v1389_v35 = vpop.eup %1388  ;;  %v1022_v54 = vmin.f32 %v1627_v18, 0.0  ;;  %v1023_v19 = vmin.f32 %v1641_v24, 0.0 }
 0x2d1   :  { %v1343_v4 = vpack.c.bf16 %v1187_v3, %v1186_v0  ;;  %v1162_v12 = vadd.f32 1.0, %v1389_v35  ;;  %v1165_v49 = vmul.f32 -0.5, %v1389_v35  ;;  %v1168_v53 = vand.u32 2147483647, %v1389_v35 }
 0x2d2   :  { %v1240_v61 = vrot.slane %v1342_v2, %v1615_v41 }
 0x2d3   :  { %v1247_v10 = vrot.slane %v1343_v4, %v1615_v41  ;;  %v1391_v15 = vpop.eup %1390  ;;  %1396 = vlog2.f32 %v1162_v12  ;;  %v1166_v32 = vadd.f32 1.0, %v1165_v49  ;;  %vm1169_vm14 = vcmp.lt.f32.partialorder %v1168_v53, 0.0004427343 }
 0x2d4   :  { %v1153_v7 = vadd.f32 1.0, %v1391_v15  ;;  %v1393_v16 = vpop.eup %1392  ;;  %v1156_v23 = vmul.f32 -0.5, %v1391_v15  ;;  %v1159_v33 = vand.u32 2147483647, %v1391_v15 }
 0x2d5   :  { %v1249_v13 = vcombine.low %v1240_v61, %v1247_v10  ;;  %v1146_v45 = vmul.f32 0.6931472, %v1393_v16  ;;  %v1167_v20 = vmul.f32 %v1389_v35, %v1166_v32 }
 0x2d6   :  { %1398 = vlog2.f32 %v1153_v7  ;;  %v1157_v31 = vadd.f32 1.0, %v1156_v23  ;;  %vm1160_vm13 = vcmp.lt.f32.partialorder %v1159_v33, 0.0004427343 }
 0x2d7   :  { %v1263_v8 = vrot.slane %v1249_v13, %v1615_v41  ;;  %v1152_v50 = vsel %vm1151_vm12, %v1149_v29, %v1146_v45 }
 0x2d8   :  { %v1395_v17 = vpop.eup %1394  ;;  %v1158_v47 = vmul.f32 %v1391_v15, %v1157_v31  ;;  %v1188_v40 = vsub.f32 %v1020_v60, %v1152_v50 }
 0x2d9   :  { %v1264_v14 = vcombine.low %v1256_v1, %v1263_v8  ;;  %v1171_v26 = vadd.f32 1.0, %v1395_v17  ;;  %v1174_v36 = vmul.f32 -0.5, %v1395_v17  ;;  %v1177_v42 = vand.u32 2147483647, %v1395_v17 }
 0x2db   :  { %1291 = vst [vmem:[%s1734_s7] sm:$0xff] %v1264_v14  ;;  %1400 = vlog2.f32 %v1171_v26  ;;  %v1175_v25 = vadd.f32 1.0, %v1174_v36  ;;  %vm1178_vm0 = vcmp.lt.f32.partialorder %v1177_v42, 0.0004427343 }
 0x2dd   :  { %v1397_v22 = vpop.eup %1396  ;;  %v1176_v38 = vmul.f32 %v1395_v17, %v1175_v25 }
 0x2de   :  { %v1164_v37 = vmul.f32 0.6931472, %v1397_v22 }
 0x2e0   :  { %v1399_v56 = vpop.eup %1398  ;;  %v1170_v43 = vsel %vm1169_vm14, %v1167_v20, %v1164_v37 }
 0x2e1   :  { %v1155_v39 = vmul.f32 0.6931472, %v1399_v56  ;;  %v1190_v30 = vsub.f32 %v1022_v54, %v1170_v43 }
 0x2e3   :  { %v1161_v27 = vsel %vm1160_vm13, %v1158_v47, %v1155_v39 }
 0x2e4   :  { %v1189_v44 = vsub.f32 %v1021_v34, %v1161_v27 }
 0x2e5   :  { %v1401_v46 = vpop.eup %1400 }
 0x2e6   :  { %v1344_v5 = vpack.c.bf16 %v1189_v44, %v1188_v40  ;;  %v1173_v48 = vmul.f32 0.6931472, %v1401_v46 }
 0x2e8   :  { %v1273_v6 = vrot.slane %v1344_v5, %v1615_v41  ;;  %v1179_v51 = vsel %vm1178_vm0, %v1176_v38, %v1173_v48 }
 0x2e9   :  { %v1191_v52 = vsub.f32 %v1023_v19, %v1179_v51 }
 0x2eb   :  { %v1345_v55 = vpack.c.bf16 %v1191_v52, %v1190_v30 }
 0x2ed   :  { %v1280_v58 = vrot.slane %v1345_v55, %v1615_v41 }
 0x2ef   :  { %v1281_v18 = vcombine.low %v1273_v6, %v1280_v58 }
 0x2f1   :  { %v1288_v59 = vrot.slane %v1281_v18, %v1615_v41 }
 0x2f3   :  { %1299 = vst.msk [vmem:[%s1734_s7 + $0x8] sm:$0xf] %vm1298_vm6, %v1288_v59 }

</bundles_post_ra>
